<compile_context>
chip_gen: v7x
topology: tpu7x:2x2x1
jax: 0.10.0
libtpu: 0.0.40
codegen_flags: <defaults>
</compile_context>

<pallas_src>
import functools

import jax
import jax.numpy as jnp
from jax.experimental import pallas as pl
from jax.experimental.pallas import tpu as pltpu

BN_EPS = 1e-5


def _default_vmem_limit():
    try:
        cap = int(pltpu.get_tpu_info().vmem_capacity_bytes)
        return max(min(cap * 3 // 4, 96 * 1024 * 1024), 32 * 1024 * 1024)
    except Exception:
        return 48 * 1024 * 1024


_VMEM_LIMIT = _default_vmem_limit()


def _pick_tile(n, target):
    t = min(target, n)
    while t > 1 and n % t != 0:
        t //= 2
    return max(t, 1)


# ---------------------------------------------------------------------------
# Kernel 1: single-K-tile fused matmul  y = act(x @ w (+ b))  (bf16 in/out),
# optionally emitting per-column sum / sum-of-squares of the f32 pre-act
# (accumulated over the N grid axis) for BatchNorm batch statistics.
# grid = (C_tiles, N_tiles);  C parallel, N arbitrary only when stats kept.
# ---------------------------------------------------------------------------
def _mm_kernel(*refs, act, use_bias, with_stats):
    x_ref, w_ref = refs[0], refs[1]
    idx = 2
    if use_bias:
        b_ref = refs[idx]
        idx += 1
    y_ref = refs[idx]
    if with_stats:
        cs_ref, cq_ref = refs[idx + 1], refs[idx + 2]

        @pl.when(pl.program_id(1) == 0)
        def _():
            cs_ref[...] = jnp.zeros_like(cs_ref)
            cq_ref[...] = jnp.zeros_like(cq_ref)

    y = jnp.dot(x_ref[...], w_ref[...], preferred_element_type=jnp.float32)
    if use_bias:
        y = y + b_ref[...]
    if with_stats:
        cs_ref[...] += jnp.sum(y, axis=0, keepdims=True)
        cq_ref[...] += jnp.sum(y * y, axis=0, keepdims=True)
    if act == "relu":
        y = jnp.maximum(y, 0.0)
    elif act == "tanh":
        y = jnp.tanh(y)
    y_ref[...] = y.astype(y_ref.dtype)


def fused_matmul(x, w, bias=None, act="none", with_stats=False,
                 tn=1024, tc=1024):
    n, k = x.shape
    k2, c = w.shape
    assert k == k2
    tn = _pick_tile(n, tn)
    tc = _pick_tile(c, tc)
    grid = (c // tc, n // tn)
    use_bias = bias is not None

    in_specs = [pl.BlockSpec((tn, k), lambda ci, ni: (ni, 0)),
                pl.BlockSpec((k, tc), lambda ci, ni: (0, ci))]
    args = [x.astype(jnp.bfloat16), w.astype(jnp.bfloat16)]
    if use_bias:
        in_specs.append(pl.BlockSpec((1, tc), lambda ci, ni: (0, ci)))
        args.append(bias.reshape(1, c).astype(jnp.float32))

    out_shape = [jax.ShapeDtypeStruct((n, c), jnp.bfloat16)]
    out_specs = [pl.BlockSpec((tn, tc), lambda ci, ni: (ni, ci))]
    if with_stats:
        out_shape += [jax.ShapeDtypeStruct((1, c), jnp.float32)] * 2
        out_specs += [pl.BlockSpec((1, tc), lambda ci, ni: (0, ci))] * 2

    sem = ("parallel", "arbitrary") if with_stats else ("parallel", "parallel")
    kernel = functools.partial(_mm_kernel, act=act, use_bias=use_bias,
                               with_stats=with_stats)
    outs = pl.pallas_call(
        kernel,
        out_shape=tuple(out_shape),
        grid_spec=pltpu.PrefetchScalarGridSpec(
            num_scalar_prefetch=0, grid=grid,
            in_specs=in_specs, out_specs=tuple(out_specs)),
        compiler_params=pltpu.CompilerParams(
            dimension_semantics=sem, vmem_limit_bytes=_VMEM_LIMIT),
    )(*args)
    if with_stats:
        return outs[0], outs[1][0], outs[2][0]
    return outs[0]


# ---------------------------------------------------------------------------
# Kernel 2: per-channel affine (folded BatchNorm) + ReLU, bf16 in/out.
# Only used for the tiny conv0 / conv1 planar outputs.
# ---------------------------------------------------------------------------
def _affine_kernel(y_ref, s_ref, t_ref, o_ref):
    y = y_ref[...].astype(jnp.float32) * s_ref[...] + t_ref[...]
    o_ref[...] = jnp.maximum(y, 0.0).astype(o_ref.dtype)


def affine_relu(y, scale, shift, tn=1024, tc=1024):
    n, c = y.shape
    tn = _pick_tile(n, tn)
    tc = _pick_tile(c, tc)
    return pl.pallas_call(
        _affine_kernel,
        out_shape=jax.ShapeDtypeStruct((n, c), jnp.bfloat16),
        grid_spec=pltpu.PrefetchScalarGridSpec(
            num_scalar_prefetch=0, grid=(n // tn, c // tc),
            in_specs=[pl.BlockSpec((tn, tc), lambda i, j: (i, j)),
                      pl.BlockSpec((1, tc), lambda i, j: (0, j)),
                      pl.BlockSpec((1, tc), lambda i, j: (0, j))],
            out_specs=pl.BlockSpec((tn, tc), lambda i, j: (i, j))),
        compiler_params=pltpu.CompilerParams(
            dimension_semantics=("parallel", "parallel"),
            vmem_limit_bytes=_VMEM_LIMIT),
    )(y.astype(jnp.bfloat16), scale.reshape(1, c).astype(jnp.float32),
      shift.reshape(1, c).astype(jnp.float32))


# ---------------------------------------------------------------------------
# Kernel 3: fused folded-BN affine + ReLU + pixel shuffle for the stride-4
# layers.  Input is the planar matmul output viewed as (B, H, W, 4, 4, C);
# output is (B, H, 4, 4W, C) bf16, which reshapes for free (row-major) to the
# NHWC activation (B, 4H, 4W, C) consumed by the next layer.
# ---------------------------------------------------------------------------
def _shuffle_kernel(y_ref, s_ref, t_ref, o_ref, *, hh, wdim, c):
    s = s_ref[...].reshape(1, 1, 1, c)
    t = t_ref[...].reshape(1, 1, 1, c)
    for kh in range(4):
        v = y_ref[0, :, :, kh, :, :].astype(jnp.float32)      # (hh, W, 4, C)
        v = jnp.maximum(v * s + t, 0.0)
        o_ref[0, :, kh, :, :] = v.reshape(hh, 4 * wdim, c).astype(o_ref.dtype)


def shuffle_affine_relu(y6, scale, shift):
    b, h, wd, _, _, c = y6.shape
    hh = 8 if h % 8 == 0 else h
    kernel = functools.partial(_shuffle_kernel, hh=hh, wdim=wd, c=c)
    return pl.pallas_call(
        kernel,
        out_shape=jax.ShapeDtypeStruct((b, h, 4, 4 * wd, c), jnp.bfloat16),
        grid_spec=pltpu.PrefetchScalarGridSpec(
            num_scalar_prefetch=0, grid=(b, h // hh),
            in_specs=[
                pl.BlockSpec((1, hh, wd, 4, 4, c),
                             lambda b_, j: (b_, j, 0, 0, 0, 0)),
                pl.BlockSpec((1, c), lambda b_, j: (0, 0)),
                pl.BlockSpec((1, c), lambda b_, j: (0, 0)),
            ],
            out_specs=pl.BlockSpec((1, hh, 4, 4 * wd, c),
                                   lambda b_, j: (b_, j, 0, 0, 0))),
        compiler_params=pltpu.CompilerParams(
            dimension_semantics=("parallel", "parallel"),
            vmem_limit_bytes=_VMEM_LIMIT),
    )(y6.astype(jnp.bfloat16), scale.reshape(1, c).astype(jnp.float32),
      shift.reshape(1, c).astype(jnp.float32))


# ---------------------------------------------------------------------------
# Kernel 4: generator tail.  Folded-BN affine + ReLU + 1x1 conv (C->3) + tanh
# over the conv4 pre-activation rows, writing a lane-dense (3, N) f32 output.
# ---------------------------------------------------------------------------
def _tail_kernel(y_ref, s_ref, t_ref, w_ref, o_ref):
    y = y_ref[...].astype(jnp.float32) * s_ref[...] + t_ref[...]
    y = jnp.maximum(y, 0.0).astype(jnp.bfloat16)
    # (3, C) x (tn, C)^T -> (3, tn): channels on sublanes, pixels on lanes,
    # so the (N, 3) layout (masked narrow stores) is never materialised.
    z = jax.lax.dot_general(w_ref[...], y,
                            dimension_numbers=(((1,), (1,)), ((), ())),
                            preferred_element_type=jnp.float32)
    o_ref[...] = jnp.tanh(z)


def bn_relu_1x1_tanh(y, scale, shift, w1x1, tn=8192):
    n, c = y.shape
    cout = w1x1.shape[1]
    tn = _pick_tile(n, tn)
    return pl.pallas_call(
        _tail_kernel,
        out_shape=jax.ShapeDtypeStruct((cout, n), jnp.float32),
        grid_spec=pltpu.PrefetchScalarGridSpec(
            num_scalar_prefetch=0, grid=(n // tn,),
            in_specs=[pl.BlockSpec((tn, c), lambda i: (i, 0)),
                      pl.BlockSpec((1, c), lambda i: (0, 0)),
                      pl.BlockSpec((1, c), lambda i: (0, 0)),
                      pl.BlockSpec((cout, c), lambda i: (0, 0))],
            out_specs=pl.BlockSpec((cout, tn), lambda i: (0, i))),
        compiler_params=pltpu.CompilerParams(
            dimension_semantics=("parallel",),
            vmem_limit_bytes=_VMEM_LIMIT),
    )(y.astype(jnp.bfloat16), scale.reshape(1, c).astype(jnp.float32),
      shift.reshape(1, c).astype(jnp.float32),
      jnp.transpose(w1x1).astype(jnp.bfloat16))


# ---------------------------------------------------------------------------
# Kernel 5: ConvTranspose2d(k=4, stride=2, padding=1, bias=False).
# Reads the un-duplicated NHWC input (bulk th rows + 2 halo rows); builds the
# zero-padded, column-stacked window in VMEM; writes the sub-pixel planar
# pre-activation  y4[b, r, c, m, n, :] = out[b, 2m+r, 2n+c, :]  plus
# per-batch-slab channel sum / sum-of-squares of the f32 pre-activation.
# ---------------------------------------------------------------------------
def _convt_s2_kernel(bulk_ref, top_ref, bot_ref, wk_ref, y_ref, cs_ref, cq_ref,
                     *, th, cin, cout, width):
    i = pl.program_id(1)
    nlast = pl.num_programs(1) - 1

    @pl.when(i == 0)
    def _():
        cs_ref[...] = jnp.zeros_like(cs_ref)
        cq_ref[...] = jnp.zeros_like(cq_ref)

    bulk = bulk_ref[0]                                     # (th, W, Cin)
    keep_top = (i > 0).astype(jnp.float32)
    keep_bot = (i < nlast).astype(jnp.float32)
    top = (top_ref[0].astype(jnp.float32) * keep_top).astype(bulk.dtype)
    bot = (bot_ref[0].astype(jnp.float32) * keep_bot).astype(bulk.dtype)

    win = jnp.concatenate([top, bulk, bot], axis=0)        # (th+2, W, Cin)
    zcol = jnp.zeros((th + 2, 1, cin), win.dtype)
    wp = jnp.concatenate([zcol, win, zcol], axis=1)        # (th+2, W+2, Cin)
    # Column shifts stacked on the lane axis: [col n-1 | col n | col n+1].
    xc = jnp.concatenate([wp[:, 0:width], wp[:, 1:width + 1],
                          wp[:, 2:width + 2]], axis=-1)    # (th+2, W, 3*Cin)
    xd = [xc[d:d + th].reshape(th * width, 3 * cin) for d in range(3)]

    cs = jnp.zeros((1, 1, cout), jnp.float32)
    cq = jnp.zeros((1, 1, cout), jnp.float32)
    for r in range(2):
        for c in range(2):
            acc = jnp.zeros((th * width, cout), jnp.float32)
            for t in range(2):
                lhs = xd[r + t][:, c * cin:(c + 2) * cin]   # aligned lane slice
                acc = acc + jnp.dot(lhs, wk_ref[r, c, t],
                                    preferred_element_type=jnp.float32)
            cs = cs + jnp.sum(acc, axis=0, keepdims=True)[None]
            cq = cq + jnp.sum(acc * acc, axis=0, keepdims=True)[None]
            y_ref[0, r, c] = acc.reshape(th, width, cout).astype(y_ref.dtype)
    cs_ref[...] += cs
    cq_ref[...] += cq


def _pack_s2_weight(w):
    """(cin, cout, 4, 4) torch layout -> (2, 2, 2, 2*cin, cout).

    wk[r, c, t] multiplies lane groups [c, c+1] of the column-stacked input:
    out[2m+r, 2n+c] += x[m+r+t-1, n+c+u-1] @ w[:, :, 3-r-2t, 3-c-2u], u=0,1.
    """
    cin, cout = w.shape[0], w.shape[1]
    blocks = []
    for r in range(2):
        for c in range(2):
            for t in range(2):
                ky = 3 - r - 2 * t
                blocks.append(jnp.concatenate(
                    [w[:, :, ky, 3 - c],      # u=0: lane group c   (col n+c-1)
                     w[:, :, ky, 1 - c]],     # u=1: lane group c+1 (col n+c)
                    axis=0))
    return jnp.stack(blocks, axis=0).reshape(2, 2, 2, 2 * cin, cout)


def conv_t_s2(x, w):
    """ConvTranspose2d(k=4,s=2,p=1,bias=False) on NHWC bf16 input.

    Returns (pre-activation (B,2,2,H,W,Cout) bf16, csum (B,1,Cout) f32,
             csq (B,1,Cout) f32)."""
    b, h, wd, cin = x.shape
    cout = w.shape[1]
    x = x.astype(jnp.bfloat16)
    wk = _pack_s2_weight(w.astype(jnp.float32)).astype(jnp.bfloat16)

    th = 16 if h % 16 == 0 else h
    kernel = functools.partial(_convt_s2_kernel, th=th, cin=cin, cout=cout,
                               width=wd)
    y4, cs, cq = pl.pallas_call(
        kernel,
        out_shape=(jax.ShapeDtypeStruct((b, 2, 2, h, wd, cout), jnp.bfloat16),
                   jax.ShapeDtypeStruct((b, 1, cout), jnp.float32),
                   jax.ShapeDtypeStruct((b, 1, cout), jnp.float32)),
        grid_spec=pltpu.PrefetchScalarGridSpec(
            num_scalar_prefetch=0,
            grid=(b, h // th),
            in_specs=[
                pl.BlockSpec((1, th, wd, cin),
                             lambda b_, i_: (b_, i_, 0, 0)),
                pl.BlockSpec((1, 1, wd, cin),
                             lambda b_, i_: (b_, jnp.maximum(i_ * th - 1, 0),
                                             0, 0)),
                pl.BlockSpec((1, 1, wd, cin),
                             lambda b_, i_: (b_, jnp.minimum(i_ * th + th,
                                                             h - 1), 0, 0)),
                pl.BlockSpec((2, 2, 2, 2 * cin, cout),
                             lambda b_, i_: (0, 0, 0, 0, 0)),
            ],
            out_specs=(
                pl.BlockSpec((1, 2, 2, th, wd, cout),
                             lambda b_, i_: (b_, 0, 0, i_, 0, 0)),
                pl.BlockSpec((1, 1, cout), lambda b_, i_: (b_, 0, 0)),
                pl.BlockSpec((1, 1, cout), lambda b_, i_: (b_, 0, 0)),
            )),
        compiler_params=pltpu.CompilerParams(
            dimension_semantics=("parallel", "arbitrary"),
            vmem_limit_bytes=_VMEM_LIMIT),
    )(x, x, x, wk)
    return y4, cs, cq


# ---------------------------------------------------------------------------
# Layer wrappers.
# ---------------------------------------------------------------------------
def _bn_fold(csum, csq, gamma, beta, n_total):
    mean = csum / n_total
    var = jnp.maximum(csq / n_total - mean * mean, 0.0)    # biased (training BN)
    scale = gamma / jnp.sqrt(var + BN_EPS)
    shift = beta - mean * scale
    return scale, shift


def conv_t_s2_bn_relu(x, w, gamma, beta):
    """ConvT(k4,s2,p1) + BatchNorm2d(batch stats) + ReLU, NHWC bf16 in/out."""
    y4, cs, cq = conv_t_s2(x, w)
    b, _, _, h, wd, cout = y4.shape
    n_total = b * 4 * h * wd
    scale, shift = _bn_fold(cs.sum(axis=(0, 1)), cq.sum(axis=(0, 1)),
                            gamma, beta, n_total)
    y = affine_relu(y4.reshape(-1, cout), scale, shift)
    y = (y.reshape(b, 2, 2, h, wd, cout)
          .transpose(0, 3, 1, 4, 2, 5)
          .reshape(b, 2 * h, 2 * wd, cout))          # sub-pixel planar -> NHWC
    return y


def conv_t_s4_bn_relu(x, w, gamma, beta):
    """ConvT(k4,s4,p0) + BN + ReLU: fused matmul (+stats) then fused
    BN/ReLU/pixel-shuffle kernel; final NHWC is a free reshape."""
    b, h, wd, cin = x.shape
    cout = w.shape[1]
    w_mm = jnp.transpose(w, (0, 2, 3, 1)).reshape(cin, 16 * cout)
    y, cs, cq = fused_matmul(x.reshape(-1, cin), w_mm, with_stats=True)
    n_total = b * 16 * h * wd
    scale, shift = _bn_fold(cs.reshape(16, cout).sum(0),
                            cq.reshape(16, cout).sum(0),
                            gamma, beta, n_total)
    y6 = y.reshape(b, h, wd, 4, 4, cout)
    out = shuffle_affine_relu(y6, scale, shift)      # (b, h, 4, 4*wd, cout)
    return out.reshape(b, 4 * h, 4 * wd, cout)       # free (row-major) reshape


def conv4_tail(x, w4, gamma, beta, w5):
    """ConvT(128->128,k4,s2,p1) + BN + ReLU + ConvT(128->3,1x1) + Tanh."""
    y4, cs, cq = conv_t_s2(x, w4)
    b, _, _, h, wd, cout = y4.shape
    n_total = b * 4 * h * wd
    scale, shift = _bn_fold(cs.sum(axis=(0, 1)), cq.sum(axis=(0, 1)),
                            gamma, beta, n_total)
    # TODO(synk): on v6e recomputing the conv4 pre-activation here (instead of
    # the stored 134 MB y4 round trip) would be ~100 us faster; kept stored.
    z = bn_relu_1x1_tanh(y4.reshape(-1, cout), scale, shift, w5[:, :, 0, 0])
    z = (z.reshape(3, b, 2, 2, h, wd)
          .transpose(1, 0, 4, 2, 5, 3)
          .reshape(b, 3, 2 * h, 2 * wd))             # planar -> NCHW (small)
    return z


# ---------------------------------------------------------------------------
# Parameters (deterministic, shapes from the PyTorch __init__) and forward.
# ---------------------------------------------------------------------------
def init_params(key, noise_dim):
    ks = jax.random.split(key, 20)
    p = {}
    p["fc_w"] = jax.random.normal(ks[0], (noise_dim, 4 * 4 * 512),
                                  jnp.float32) / jnp.sqrt(float(noise_dim))
    p["fc_b"] = 0.1 * jax.random.normal(ks[1], (4 * 4 * 512,), jnp.float32)
    cfgs = [(512, 256), (256, 256), (256, 256), (256, 128), (128, 128)]
    for i, (ci, co) in enumerate(cfgs):
        p[f"conv{i}_w"] = 0.05 * jax.random.normal(ks[2 + 3 * i],
                                                   (ci, co, 4, 4), jnp.float32)
        p[f"bn{i}_g"] = 1.0 + 0.1 * jax.random.normal(ks[3 + 3 * i], (co,),
                                                      jnp.float32)
        p[f"bn{i}_b"] = 0.1 * jax.random.normal(ks[4 + 3 * i], (co,),
                                                jnp.float32)
    p["conv5_w"] = 0.05 * jax.random.normal(ks[17], (128, 3, 1, 1), jnp.float32)
    return p


def spec_generator_forward(params, x):
    b = x.shape[0]
    x = x.reshape(b, -1)
    y = fused_matmul(x, params["fc_w"], bias=params["fc_b"], act="relu")
    out = y.reshape(b, 512, 4, 4).transpose(0, 2, 3, 1)       # NCHW -> NHWC
    out = conv_t_s2_bn_relu(out, params["conv0_w"], params["bn0_g"],
                            params["bn0_b"])                  # 4 -> 8
    out = conv_t_s2_bn_relu(out, params["conv1_w"], params["bn1_g"],
                            params["bn1_b"])                  # 8 -> 16
    out = conv_t_s4_bn_relu(out, params["conv2_w"], params["bn2_g"],
                            params["bn2_b"])                  # 16 -> 64
    out = conv_t_s4_bn_relu(out, params["conv3_w"], params["bn3_g"],
                            params["bn3_b"])                  # 64 -> 256
    out = conv4_tail(out, params["conv4_w"], params["bn4_g"], params["bn4_b"],
                     params["conv5_w"])                       # 256 -> 512 NCHW
    return out


# ---------------------------------------------------------------------------
# Small correctness checks against independent references (tiny shapes).
# ---------------------------------------------------------------------------
def _convt_ref(x, w):
    """Direct NHWC reference of ConvTranspose2d(k=4, stride=2, padding=1)."""
    b, h, wd, _ = x.shape
    cout = w.shape[1]
    xf = x.astype(jnp.float32)
    wf = w.astype(jnp.float32)
    full = jnp.zeros((b, 2 * h + 2, 2 * wd + 2, cout), jnp.float32)
    for kh in range(4):
        for kw in range(4):
            contrib = jnp.einsum("bhwi,io->bhwo", xf, wf[:, :, kh, kw])
            full = full.at[:, kh:kh + 2 * h:2, kw:kw + 2 * wd:2, :].add(contrib)
    return full[:, 1:2 * h + 1, 1:2 * wd + 1, :]


def _self_check():
    key = jax.random.PRNGKey(1)
    k1, k2, k3, k4, k5, k6 = jax.random.split(key, 6)

    # ConvTranspose(k4,s2,p1) kernel, including halo handling across steps.
    x = jax.random.normal(k1, (1, 32, 8, 128), jnp.float32).astype(jnp.bfloat16)
    w = (0.05 * jax.random.normal(k2, (128, 128, 4, 4),
                                  jnp.float32)).astype(jnp.bfloat16)
    y4, _, _ = conv_t_s2(x, w)
    got = (y4.astype(jnp.float32)
             .transpose(0, 3, 1, 4, 2, 5).reshape(1, 64, 16, 128))
    ref = _convt_ref(x, w)
    assert float(jnp.max(jnp.abs(got - ref))) < 5e-2, "conv_t_s2 mismatch"

    # BN-affine + ReLU + pixel-shuffle kernel.
    y6 = jax.random.normal(k3, (1, 8, 8, 4, 4, 128),
                           jnp.float32).astype(jnp.bfloat16)
    sc = 1.0 + 0.1 * jax.random.normal(k4, (128,), jnp.float32)
    sh = 0.1 * jax.random.normal(k5, (128,), jnp.float32)
    got = shuffle_affine_relu(y6, sc, sh).astype(jnp.float32)
    ref = jnp.maximum(y6.astype(jnp.float32) * sc + sh, 0.0)
    ref = (ref.transpose(0, 1, 3, 2, 4, 5).reshape(1, 8, 4, 32, 128)
              .astype(jnp.bfloat16).astype(jnp.float32))
    assert float(jnp.max(jnp.abs(got - ref))) < 2e-2, "shuffle kernel mismatch"

    # Tail kernel (BN affine + ReLU + 1x1 + tanh, lane-dense (3, N) output).
    y = jax.random.normal(k6, (256, 128), jnp.float32).astype(jnp.bfloat16)
    w1 = (0.05 * jax.random.normal(k2, (128, 3), jnp.float32)
          ).astype(jnp.bfloat16)
    got = bn_relu_1x1_tanh(y, sc, sh, w1)                       # (3, 256)
    act = jnp.maximum(y.astype(jnp.float32) * sc + sh, 0.0)
    act = act.astype(jnp.bfloat16).astype(jnp.float32)
    ref = jnp.tanh(act @ w1.astype(jnp.float32))                # (256, 3)
    assert float(jnp.max(jnp.abs(got.T - ref))) < 2e-2, "tail kernel mismatch"


if __name__ == "__main__":
    noise_dim = 64
    batch = 2

    _self_check()

    key = jax.random.PRNGKey(0)
    pkey, xkey = jax.random.split(key)
    params = init_params(pkey, noise_dim)
    x = jax.random.normal(xkey, (batch, noise_dim), jnp.float32)

    fwd = jax.jit(spec_generator_forward)
    out = jax.block_until_ready(fwd(params, x))

    assert out.shape == (batch, 3, 512, 512), out.shape
    assert out.dtype == jnp.float32
    assert bool(jnp.isfinite(out).all())
    assert bool((jnp.abs(out) <= 1.0).all())   # tanh output range
    print("KERNEL_OK")
</pallas_src>

<mosaic_0001>
module attributes {stable_mosaic.version = 11 : i64} {
  func.func @_convt_s2_kernel(%arg0: i32, %arg1: i32, %arg2: memref<1x16x8x128xbf16, #tpu.memory_space<vmem>>, %arg3: memref<1x1x8x128xbf16, #tpu.memory_space<vmem>>, %arg4: memref<1x1x8x128xbf16, #tpu.memory_space<vmem>>, %arg5: memref<2x2x2x256x128xbf16, #tpu.memory_space<vmem>>, %arg6: memref<1x2x2x16x8x128xbf16, #tpu.memory_space<vmem>>, %arg7: memref<1x1x128xf32, #tpu.memory_space<vmem>>, %arg8: memref<1x1x128xf32, #tpu.memory_space<vmem>>) attributes {dimension_semantics = [#tpu.dimension_semantics<parallel>, #tpu.dimension_semantics<arbitrary>], iteration_bounds = array<i64: 1, 2>, scalar_prefetch = 0 : i64, scratch_operands = 0 : i64, tpu.core_type = #tpu.core_type<tc>, window_params = [{transform_indices = @transform_0, window_bounds = array<i64: 1, 16, 8, 128>}, {transform_indices = @transform_1, window_bounds = array<i64: 1, 1, 8, 128>}, {transform_indices = @transform_2, window_bounds = array<i64: 1, 1, 8, 128>}, {pipeline_mode = #tpu.pipeline_mode<synchronous>, transform_indices = @transform_3, window_bounds = array<i64: 2, 2, 2, 256, 128>}, {transform_indices = @transform_4, window_bounds = array<i64: 1, 2, 2, 16, 8, 128>}, {transform_indices = @transform_5, window_bounds = array<i64: 1, 1, 128>}, {transform_indices = @transform_6, window_bounds = array<i64: 1, 1, 128>}]} {
    %c0_i32 = arith.constant 0 : i32
    %0 = arith.cmpi eq, %arg1, %c0_i32 : i32
    %1 = arith.extui %0 : i1 to i32
    %c0_i32_0 = arith.constant 0 : i32
    %2 = arith.cmpi ne, %1, %c0_i32_0 : i32
    scf.if %2 {
      %cst_110 = arith.constant 0.000000e+00 : f32
      %144 = vector.broadcast %cst_110 : f32 to vector<1x1x128xf32>
      %c0_111 = arith.constant 0 : index
      %c0_112 = arith.constant 0 : index
      %c0_113 = arith.constant 0 : index
      %145 = vector.load %arg7[%c0_111, %c0_112, %c0_113] : memref<1x1x128xf32, #tpu.memory_space<vmem>>, vector<1x1x128xf32>
      tpu.vector_store %arg7[%c0_111, %c0_112, %c0_113], %144 {strides = array<i32>} : memref<1x1x128xf32, #tpu.memory_space<vmem>>, vector<1x1x128xf32>,
      %cst_114 = arith.constant 0.000000e+00 : f32
      %146 = vector.broadcast %cst_114 : f32 to vector<1x1x128xf32>
      %c0_115 = arith.constant 0 : index
      %c0_116 = arith.constant 0 : index
      %c0_117 = arith.constant 0 : index
      %147 = vector.load %arg8[%c0_115, %c0_116, %c0_117] : memref<1x1x128xf32, #tpu.memory_space<vmem>>, vector<1x1x128xf32>
      tpu.vector_store %arg8[%c0_115, %c0_116, %c0_117], %146 {strides = array<i32>} : memref<1x1x128xf32, #tpu.memory_space<vmem>>, vector<1x1x128xf32>,
    } else {
    }
    %c0 = arith.constant 0 : index
    %c0_1 = arith.constant 0 : index
    %c0_2 = arith.constant 0 : index
    %c0_3 = arith.constant 0 : index
    %3 = vector.load %arg2[%c0, %c0_1, %c0_2, %c0_3] : memref<1x16x8x128xbf16, #tpu.memory_space<vmem>>, vector<1x16x8x128xbf16>
    %4 = vector.shape_cast %3 : vector<1x16x8x128xbf16> to vector<16x8x128xbf16>
    %c0_i32_4 = arith.constant 0 : i32
    %5 = arith.cmpi sgt, %arg1, %c0_i32_4 : i32
    %6 = arith.extui %5 : i1 to i32
    %7 = arith.sitofp %6 : i32 to f32
    %c1_i32 = arith.constant 1 : i32
    %8 = arith.cmpi slt, %arg1, %c1_i32 : i32
    %9 = arith.extui %8 : i1 to i32
    %10 = arith.sitofp %9 : i32 to f32
    %c0_5 = arith.constant 0 : index
    %c0_6 = arith.constant 0 : index
    %c0_7 = arith.constant 0 : index
    %c0_8 = arith.constant 0 : index
    %11 = vector.load %arg3[%c0_5, %c0_6, %c0_7, %c0_8] : memref<1x1x8x128xbf16, #tpu.memory_space<vmem>>, vector<1x1x8x128xbf16>
    %12 = vector.shape_cast %11 : vector<1x1x8x128xbf16> to vector<1x8x128xbf16>
    %13 = arith.extf %12 : vector<1x8x128xbf16> to vector<1x8x128xf32>
    %14 = vector.broadcast %7 : f32 to vector<1x8x128xf32>
    %15 = arith.mulf %13, %14 : vector<1x8x128xf32>
    %16 = arith.truncf %15 : vector<1x8x128xf32> to vector<1x8x128xbf16>
    %c0_9 = arith.constant 0 : index
    %c0_10 = arith.constant 0 : index
    %c0_11 = arith.constant 0 : index
    %c0_12 = arith.constant 0 : index
    %17 = vector.load %arg4[%c0_9, %c0_10, %c0_11, %c0_12] : memref<1x1x8x128xbf16, #tpu.memory_space<vmem>>, vector<1x1x8x128xbf16>
    %18 = vector.shape_cast %17 : vector<1x1x8x128xbf16> to vector<1x8x128xbf16>
    %19 = arith.extf %18 : vector<1x8x128xbf16> to vector<1x8x128xf32>
    %20 = vector.broadcast %10 : f32 to vector<1x8x128xf32>
    %21 = arith.mulf %19, %20 : vector<1x8x128xf32>
    %22 = arith.truncf %21 : vector<1x8x128xf32> to vector<1x8x128xbf16>
    %23 = tpu.concatenate %16, %4, %22 in 0 : vector<1x8x128xbf16>, vector<16x8x128xbf16>, vector<1x8x128xbf16> -> vector<18x8x128xbf16>
    %cst = arith.constant 0.000000e+00 : bf16
    %24 = vector.broadcast %cst : bf16 to vector<18x1x128xbf16>
    %25 = tpu.concatenate %24, %23, %24 in 1 : vector<18x1x128xbf16>, vector<18x8x128xbf16>, vector<18x1x128xbf16> -> vector<18x10x128xbf16>
    %26 = vector.extract_strided_slice %25 {offsets = [0, 0, 0], sizes = [18, 8, 128], strides = [1, 1, 1]} : vector<18x10x128xbf16> to vector<18x8x128xbf16>
    %27 = vector.extract_strided_slice %25 {offsets = [0, 1, 0], sizes = [18, 8, 128], strides = [1, 1, 1]} : vector<18x10x128xbf16> to vector<18x8x128xbf16>
    %28 = vector.extract_strided_slice %25 {offsets = [0, 2, 0], sizes = [18, 8, 128], strides = [1, 1, 1]} : vector<18x10x128xbf16> to vector<18x8x128xbf16>
    %29 = tpu.concatenate %26, %27, %28 in 2 : vector<18x8x128xbf16>, vector<18x8x128xbf16>, vector<18x8x128xbf16> -> vector<18x8x384xbf16>
    %30 = vector.extract_strided_slice %29 {offsets = [0, 0, 0], sizes = [16, 8, 384], strides = [1, 1, 1]} : vector<18x8x384xbf16> to vector<16x8x384xbf16>
    %31 = vector.shape_cast %30 : vector<16x8x384xbf16> to vector<128x384xbf16>
    %32 = vector.extract_strided_slice %29 {offsets = [1, 0, 0], sizes = [16, 8, 384], strides = [1, 1, 1]} : vector<18x8x384xbf16> to vector<16x8x384xbf16>
    %33 = vector.shape_cast %32 : vector<16x8x384xbf16> to vector<128x384xbf16>
    %34 = vector.extract_strided_slice %29 {offsets = [2, 0, 0], sizes = [16, 8, 384], strides = [1, 1, 1]} : vector<18x8x384xbf16> to vector<16x8x384xbf16>
    %35 = vector.shape_cast %34 : vector<16x8x384xbf16> to vector<128x384xbf16>
    %cst_13 = arith.constant 0.000000e+00 : f32
    %36 = vector.broadcast %cst_13 : f32 to vector<1x1x128xf32>
    %cst_14 = arith.constant 0.000000e+00 : f32
    %37 = vector.broadcast %cst_14 : f32 to vector<1x1x128xf32>
    %cst_15 = arith.constant 0.000000e+00 : f32
    %38 = vector.broadcast %cst_15 : f32 to vector<128x128xf32>
    %39 = vector.extract_strided_slice %31 {offsets = [0, 0], sizes = [128, 256], strides = [1, 1]} : vector<128x384xbf16> to vector<128x256xbf16>
    %c0_16 = arith.constant 0 : index
    %c0_17 = arith.constant 0 : index
    %c0_18 = arith.constant 0 : index
    %c0_19 = arith.constant 0 : index
    %c0_20 = arith.constant 0 : index
    %40 = vector.load %arg5[%c0_16, %c0_17, %c0_18, %c0_19, %c0_20] : memref<2x2x2x256x128xbf16, #tpu.memory_space<vmem>>, vector<1x1x1x256x128xbf16>
    %41 = vector.shape_cast %40 : vector<1x1x1x256x128xbf16> to vector<256x128xbf16>
    %cst_21 = arith.constant dense<0.000000e+00> : vector<128x128xf32>
    %42 = tpu.matmul %39, %41, %cst_21 {dimension_numbers = #tpu.dot_dimension_numbers<[1], [0], [0], [1], [0, 0, 1, 1], [], []>} : vector<128x256xbf16>, vector<256x128xbf16>, vector<128x128xf32> -> vector<128x128xf32>
    %43 = arith.addf %38, %42 : vector<128x128xf32>
    %44 = vector.extract_strided_slice %33 {offsets = [0, 0], sizes = [128, 256], strides = [1, 1]} : vector<128x384xbf16> to vector<128x256xbf16>
    %c0_22 = arith.constant 0 : index
    %c0_23 = arith.constant 0 : index
    %c1 = arith.constant 1 : index
    %c0_24 = arith.constant 0 : index
    %c0_25 = arith.constant 0 : index
    %45 = vector.load %arg5[%c0_22, %c0_23, %c1, %c0_24, %c0_25] : memref<2x2x2x256x128xbf16, #tpu.memory_space<vmem>>, vector<1x1x1x256x128xbf16>
    %46 = vector.shape_cast %45 : vector<1x1x1x256x128xbf16> to vector<256x128xbf16>
    %cst_26 = arith.constant dense<0.000000e+00> : vector<128x128xf32>
    %47 = tpu.matmul %44, %46, %cst_26 {dimension_numbers = #tpu.dot_dimension_numbers<[1], [0], [0], [1], [0, 0, 1, 1], [], []>} : vector<128x256xbf16>, vector<256x128xbf16>, vector<128x128xf32> -> vector<128x128xf32>
    %48 = arith.addf %43, %47 : vector<128x128xf32>
    %cst_27 = arith.constant dense<0.000000e+00> : vector<128xf32>
    %49 = vector.multi_reduction <add>, %48, %cst_27 [0] : vector<128x128xf32> to vector<128xf32>
    %50 = vector.shape_cast %49 : vector<128xf32> to vector<1x128xf32>
    %51 = vector.shape_cast %50 : vector<1x128xf32> to vector<1x1x128xf32>
    %52 = arith.addf %36, %51 : vector<1x1x128xf32>
    %53 = arith.mulf %48, %48 : vector<128x128xf32>
    %cst_28 = arith.constant dense<0.000000e+00> : vector<128xf32>
    %54 = vector.multi_reduction <add>, %53, %cst_28 [0] : vector<128x128xf32> to vector<128xf32>
    %55 = vector.shape_cast %54 : vector<128xf32> to vector<1x128xf32>
    %56 = vector.shape_cast %55 : vector<1x128xf32> to vector<1x1x128xf32>
    %57 = arith.addf %37, %56 : vector<1x1x128xf32>
    %58 = vector.shape_cast %48 : vector<128x128xf32> to vector<16x8x128xf32>
    %59 = arith.truncf %58 : vector<16x8x128xf32> to vector<16x8x128xbf16>
    %c0_29 = arith.constant 0 : index
    %c0_30 = arith.constant 0 : index
    %c0_31 = arith.constant 0 : index
    %c0_32 = arith.constant 0 : index
    %c0_33 = arith.constant 0 : index
    %c0_34 = arith.constant 0 : index
    %60 = vector.load %arg6[%c0_29, %c0_30, %c0_31, %c0_32, %c0_33, %c0_34] : memref<1x2x2x16x8x128xbf16, #tpu.memory_space<vmem>>, vector<1x1x1x16x8x128xbf16>
    %61 = vector.shape_cast %60 : vector<1x1x1x16x8x128xbf16> to vector<16x8x128xbf16>
    %62 = vector.shape_cast %59 : vector<16x8x128xbf16> to vector<1x1x1x16x8x128xbf16>
    tpu.vector_store %arg6[%c0_29, %c0_30, %c0_31, %c0_32, %c0_33, %c0_34], %62 {strides = array<i32>} : memref<1x2x2x16x8x128xbf16, #tpu.memory_space<vmem>>, vector<1x1x1x16x8x128xbf16>,
    %cst_35 = arith.constant 0.000000e+00 : f32
    %63 = vector.broadcast %cst_35 : f32 to vector<128x128xf32>
    %64 = vector.extract_strided_slice %31 {offsets = [0, 128], sizes = [128, 256], strides = [1, 1]} : vector<128x384xbf16> to vector<128x256xbf16>
    %c0_36 = arith.constant 0 : index
    %c1_37 = arith.constant 1 : index
    %c0_38 = arith.constant 0 : index
    %c0_39 = arith.constant 0 : index
    %c0_40 = arith.constant 0 : index
    %65 = vector.load %arg5[%c0_36, %c1_37, %c0_38, %c0_39, %c0_40] : memref<2x2x2x256x128xbf16, #tpu.memory_space<vmem>>, vector<1x1x1x256x128xbf16>
    %66 = vector.shape_cast %65 : vector<1x1x1x256x128xbf16> to vector<256x128xbf16>
    %cst_41 = arith.constant dense<0.000000e+00> : vector<128x128xf32>
    %67 = tpu.matmul %64, %66, %cst_41 {dimension_numbers = #tpu.dot_dimension_numbers<[1], [0], [0], [1], [0, 0, 1, 1], [], []>} : vector<128x256xbf16>, vector<256x128xbf16>, vector<128x128xf32> -> vector<128x128xf32>
    %68 = arith.addf %63, %67 : vector<128x128xf32>
    %69 = vector.extract_strided_slice %33 {offsets = [0, 128], sizes = [128, 256], strides = [1, 1]} : vector<128x384xbf16> to vector<128x256xbf16>
    %c0_42 = arith.constant 0 : index
    %c1_43 = arith.constant 1 : index
    %c1_44 = arith.constant 1 : index
    %c0_45 = arith.constant 0 : index
    %c0_46 = arith.constant 0 : index
    %70 = vector.load %arg5[%c0_42, %c1_43, %c1_44, %c0_45, %c0_46] : memref<2x2x2x256x128xbf16, #tpu.memory_space<vmem>>, vector<1x1x1x256x128xbf16>
    %71 = vector.shape_cast %70 : vector<1x1x1x256x128xbf16> to vector<256x128xbf16>
    %cst_47 = arith.constant dense<0.000000e+00> : vector<128x128xf32>
    %72 = tpu.matmul %69, %71, %cst_47 {dimension_numbers = #tpu.dot_dimension_numbers<[1], [0], [0], [1], [0, 0, 1, 1], [], []>} : vector<128x256xbf16>, vector<256x128xbf16>, vector<128x128xf32> -> vector<128x128xf32>
    %73 = arith.addf %68, %72 : vector<128x128xf32>
    %cst_48 = arith.constant dense<0.000000e+00> : vector<128xf32>
    %74 = vector.multi_reduction <add>, %73, %cst_48 [0] : vector<128x128xf32> to vector<128xf32>
    %75 = vector.shape_cast %74 : vector<128xf32> to vector<1x128xf32>
    %76 = vector.shape_cast %75 : vector<1x128xf32> to vector<1x1x128xf32>
    %77 = arith.addf %52, %76 : vector<1x1x128xf32>
    %78 = arith.mulf %73, %73 : vector<128x128xf32>
    %cst_49 = arith.constant dense<0.000000e+00> : vector<128xf32>
    %79 = vector.multi_reduction <add>, %78, %cst_49 [0] : vector<128x128xf32> to vector<128xf32>
    %80 = vector.shape_cast %79 : vector<128xf32> to vector<1x128xf32>
    %81 = vector.shape_cast %80 : vector<1x128xf32> to vector<1x1x128xf32>
    %82 = arith.addf %57, %81 : vector<1x1x128xf32>
    %83 = vector.shape_cast %73 : vector<128x128xf32> to vector<16x8x128xf32>
    %84 = arith.truncf %83 : vector<16x8x128xf32> to vector<16x8x128xbf16>
    %c0_50 = arith.constant 0 : index
    %c0_51 = arith.constant 0 : index
    %c1_52 = arith.constant 1 : index
    %c0_53 = arith.constant 0 : index
    %c0_54 = arith.constant 0 : index
    %c0_55 = arith.constant 0 : index
    %85 = vector.load %arg6[%c0_50, %c0_51, %c1_52, %c0_53, %c0_54, %c0_55] : memref<1x2x2x16x8x128xbf16, #tpu.memory_space<vmem>>, vector<1x1x1x16x8x128xbf16>
    %86 = vector.shape_cast %85 : vector<1x1x1x16x8x128xbf16> to vector<16x8x128xbf16>
    %87 = vector.shape_cast %84 : vector<16x8x128xbf16> to vector<1x1x1x16x8x128xbf16>
    tpu.vector_store %arg6[%c0_50, %c0_51, %c1_52, %c0_53, %c0_54, %c0_55], %87 {strides = array<i32>} : memref<1x2x2x16x8x128xbf16, #tpu.memory_space<vmem>>, vector<1x1x1x16x8x128xbf16>,
    %cst_56 = arith.constant 0.000000e+00 : f32
    %88 = vector.broadcast %cst_56 : f32 to vector<128x128xf32>
    %89 = vector.extract_strided_slice %33 {offsets = [0, 0], sizes = [128, 256], strides = [1, 1]} : vector<128x384xbf16> to vector<128x256xbf16>
    %c1_57 = arith.constant 1 : index
    %c0_58 = arith.constant 0 : index
    %c0_59 = arith.constant 0 : index
    %c0_60 = arith.constant 0 : index
    %c0_61 = arith.constant 0 : index
    %90 = vector.load %arg5[%c1_57, %c0_58, %c0_59, %c0_60, %c0_61] : memref<2x2x2x256x128xbf16, #tpu.memory_space<vmem>>, vector<1x1x1x256x128xbf16>
    %91 = vector.shape_cast %90 : vector<1x1x1x256x128xbf16> to vector<256x128xbf16>
    %cst_62 = arith.constant dense<0.000000e+00> : vector<128x128xf32>
    %92 = tpu.matmul %89, %91, %cst_62 {dimension_numbers = #tpu.dot_dimension_numbers<[1], [0], [0], [1], [0, 0, 1, 1], [], []>} : vector<128x256xbf16>, vector<256x128xbf16>, vector<128x128xf32> -> vector<128x128xf32>
    %93 = arith.addf %88, %92 : vector<128x128xf32>
    %94 = vector.extract_strided_slice %35 {offsets = [0, 0], sizes = [128, 256], strides = [1, 1]} : vector<128x384xbf16> to vector<128x256xbf16>
    %c1_63 = arith.constant 1 : index
    %c0_64 = arith.constant 0 : index
    %c1_65 = arith.constant 1 : index
    %c0_66 = arith.constant 0 : index
    %c0_67 = arith.constant 0 : index
    %95 = vector.load %arg5[%c1_63, %c0_64, %c1_65, %c0_66, %c0_67] : memref<2x2x2x256x128xbf16, #tpu.memory_space<vmem>>, vector<1x1x1x256x128xbf16>
    %96 = vector.shape_cast %95 : vector<1x1x1x256x128xbf16> to vector<256x128xbf16>
    %cst_68 = arith.constant dense<0.000000e+00> : vector<128x128xf32>
    %97 = tpu.matmul %94, %96, %cst_68 {dimension_numbers = #tpu.dot_dimension_numbers<[1], [0], [0], [1], [0, 0, 1, 1], [], []>} : vector<128x256xbf16>, vector<256x128xbf16>, vector<128x128xf32> -> vector<128x128xf32>
    %98 = arith.addf %93, %97 : vector<128x128xf32>
    %cst_69 = arith.constant dense<0.000000e+00> : vector<128xf32>
    %99 = vector.multi_reduction <add>, %98, %cst_69 [0] : vector<128x128xf32> to vector<128xf32>
    %100 = vector.shape_cast %99 : vector<128xf32> to vector<1x128xf32>
    %101 = vector.shape_cast %100 : vector<1x128xf32> to vector<1x1x128xf32>
    %102 = arith.addf %77, %101 : vector<1x1x128xf32>
    %103 = arith.mulf %98, %98 : vector<128x128xf32>
    %cst_70 = arith.constant dense<0.000000e+00> : vector<128xf32>
    %104 = vector.multi_reduction <add>, %103, %cst_70 [0] : vector<128x128xf32> to vector<128xf32>
    %105 = vector.shape_cast %104 : vector<128xf32> to vector<1x128xf32>
    %106 = vector.shape_cast %105 : vector<1x128xf32> to vector<1x1x128xf32>
    %107 = arith.addf %82, %106 : vector<1x1x128xf32>
    %108 = vector.shape_cast %98 : vector<128x128xf32> to vector<16x8x128xf32>
    %109 = arith.truncf %108 : vector<16x8x128xf32> to vector<16x8x128xbf16>
    %c0_71 = arith.constant 0 : index
    %c1_72 = arith.constant 1 : index
    %c0_73 = arith.constant 0 : index
    %c0_74 = arith.constant 0 : index
    %c0_75 = arith.constant 0 : index
    %c0_76 = arith.constant 0 : index
    %110 = vector.load %arg6[%c0_71, %c1_72, %c0_73, %c0_74, %c0_75, %c0_76] : memref<1x2x2x16x8x128xbf16, #tpu.memory_space<vmem>>, vector<1x1x1x16x8x128xbf16>
    %111 = vector.shape_cast %110 : vector<1x1x1x16x8x128xbf16> to vector<16x8x128xbf16>
    %112 = vector.shape_cast %109 : vector<16x8x128xbf16> to vector<1x1x1x16x8x128xbf16>
    tpu.vector_store %arg6[%c0_71, %c1_72, %c0_73, %c0_74, %c0_75, %c0_76], %112 {strides = array<i32>} : memref<1x2x2x16x8x128xbf16, #tpu.memory_space<vmem>>, vector<1x1x1x16x8x128xbf16>,
    %cst_77 = arith.constant 0.000000e+00 : f32
    %113 = vector.broadcast %cst_77 : f32 to vector<128x128xf32>
    %114 = vector.extract_strided_slice %33 {offsets = [0, 128], sizes = [128, 256], strides = [1, 1]} : vector<128x384xbf16> to vector<128x256xbf16>
    %c1_78 = arith.constant 1 : index
    %c1_79 = arith.constant 1 : index
    %c0_80 = arith.constant 0 : index
    %c0_81 = arith.constant 0 : index
    %c0_82 = arith.constant 0 : index
    %115 = vector.load %arg5[%c1_78, %c1_79, %c0_80, %c0_81, %c0_82] : memref<2x2x2x256x128xbf16, #tpu.memory_space<vmem>>, vector<1x1x1x256x128xbf16>
    %116 = vector.shape_cast %115 : vector<1x1x1x256x128xbf16> to vector<256x128xbf16>
    %cst_83 = arith.constant dense<0.000000e+00> : vector<128x128xf32>
    %117 = tpu.matmul %114, %116, %cst_83 {dimension_numbers = #tpu.dot_dimension_numbers<[1], [0], [0], [1], [0, 0, 1, 1], [], []>} : vector<128x256xbf16>, vector<256x128xbf16>, vector<128x128xf32> -> vector<128x128xf32>
    %118 = arith.addf %113, %117 : vector<128x128xf32>
    %119 = vector.extract_strided_slice %35 {offsets = [0, 128], sizes = [128, 256], strides = [1, 1]} : vector<128x384xbf16> to vector<128x256xbf16>
    %c1_84 = arith.constant 1 : index
    %c1_85 = arith.constant 1 : index
    %c1_86 = arith.constant 1 : index
    %c0_87 = arith.constant 0 : index
    %c0_88 = arith.constant 0 : index
    %120 = vector.load %arg5[%c1_84, %c1_85, %c1_86, %c0_87, %c0_88] : memref<2x2x2x256x128xbf16, #tpu.memory_space<vmem>>, vector<1x1x1x256x128xbf16>
    %121 = vector.shape_cast %120 : vector<1x1x1x256x128xbf16> to vector<256x128xbf16>
    %cst_89 = arith.constant dense<0.000000e+00> : vector<128x128xf32>
    %122 = tpu.matmul %119, %121, %cst_89 {dimension_numbers = #tpu.dot_dimension_numbers<[1], [0], [0], [1], [0, 0, 1, 1], [], []>} : vector<128x256xbf16>, vector<256x128xbf16>, vector<128x128xf32> -> vector<128x128xf32>
    %123 = arith.addf %118, %122 : vector<128x128xf32>
    %cst_90 = arith.constant dense<0.000000e+00> : vector<128xf32>
    %124 = vector.multi_reduction <add>, %123, %cst_90 [0] : vector<128x128xf32> to vector<128xf32>
    %125 = vector.shape_cast %124 : vector<128xf32> to vector<1x128xf32>
    %126 = vector.shape_cast %125 : vector<1x128xf32> to vector<1x1x128xf32>
    %127 = arith.addf %102, %126 : vector<1x1x128xf32>
    %128 = arith.mulf %123, %123 : vector<128x128xf32>
    %cst_91 = arith.constant dense<0.000000e+00> : vector<128xf32>
    %129 = vector.multi_reduction <add>, %128, %cst_91 [0] : vector<128x128xf32> to vector<128xf32>
    %130 = vector.shape_cast %129 : vector<128xf32> to vector<1x128xf32>
    %131 = vector.shape_cast %130 : vector<1x128xf32> to vector<1x1x128xf32>
    %132 = arith.addf %107, %131 : vector<1x1x128xf32>
    %133 = vector.shape_cast %123 : vector<128x128xf32> to vector<16x8x128xf32>
    %134 = arith.truncf %133 : vector<16x8x128xf32> to vector<16x8x128xbf16>
    %c0_92 = arith.constant 0 : index
    %c1_93 = arith.constant 1 : index
    %c1_94 = arith.constant 1 : index
    %c0_95 = arith.constant 0 : index
    %c0_96 = arith.constant 0 : index
    %c0_97 = arith.constant 0 : index
    %135 = vector.load %arg6[%c0_92, %c1_93, %c1_94, %c0_95, %c0_96, %c0_97] : memref<1x2x2x16x8x128xbf16, #tpu.memory_space<vmem>>, vector<1x1x1x16x8x128xbf16>
    %136 = vector.shape_cast %135 : vector<1x1x1x16x8x128xbf16> to vector<16x8x128xbf16>
    %137 = vector.shape_cast %134 : vector<16x8x128xbf16> to vector<1x1x1x16x8x128xbf16>
    tpu.vector_store %arg6[%c0_92, %c1_93, %c1_94, %c0_95, %c0_96, %c0_97], %137 {strides = array<i32>} : memref<1x2x2x16x8x128xbf16, #tpu.memory_space<vmem>>, vector<1x1x1x16x8x128xbf16>,
    %c0_98 = arith.constant 0 : index
    %c0_99 = arith.constant 0 : index
    %c0_100 = arith.constant 0 : index
    %138 = vector.load %arg7[%c0_98, %c0_99, %c0_100] : memref<1x1x128xf32, #tpu.memory_space<vmem>>, vector<1x1x128xf32>
    %139 = arith.addf %138, %127 : vector<1x1x128xf32>
    %c0_101 = arith.constant 0 : index
    %c0_102 = arith.constant 0 : index
    %c0_103 = arith.constant 0 : index
    %140 = vector.load %arg7[%c0_101, %c0_102, %c0_103] : memref<1x1x128xf32, #tpu.memory_space<vmem>>, vector<1x1x128xf32>
    tpu.vector_store %arg7[%c0_101, %c0_102, %c0_103], %139 {strides = array<i32>} : memref<1x1x128xf32, #tpu.memory_space<vmem>>, vector<1x1x128xf32>,
    %c0_104 = arith.constant 0 : index
    %c0_105 = arith.constant 0 : index
    %c0_106 = arith.constant 0 : index
    %141 = vector.load %arg8[%c0_104, %c0_105, %c0_106] : memref<1x1x128xf32, #tpu.memory_space<vmem>>, vector<1x1x128xf32>
    %142 = arith.addf %141, %132 : vector<1x1x128xf32>
    %c0_107 = arith.constant 0 : index
    %c0_108 = arith.constant 0 : index
    %c0_109 = arith.constant 0 : index
    %143 = vector.load %arg8[%c0_107, %c0_108, %c0_109] : memref<1x1x128xf32, #tpu.memory_space<vmem>>, vector<1x1x128xf32>
    tpu.vector_store %arg8[%c0_107, %c0_108, %c0_109], %142 {strides = array<i32>} : memref<1x1x128xf32, #tpu.memory_space<vmem>>, vector<1x1x128xf32>,
    return
  }
  func.func @transform_0(%arg0: i32, %arg1: i32) -> (i32, i32, i32, i32) {
    %c0_i32 = arith.constant 0 : i32
    %c0_i32_0 = arith.constant 0 : i32
    %c0_i32_1 = arith.constant 0 : i32
    return %arg0, %arg1, %c0_i32, %c0_i32_0 : i32, i32, i32, i32
  }
  func.func @transform_1(%arg0: i32, %arg1: i32) -> (i32, i32, i32, i32) {
    %c16_i32 = arith.constant 16 : i32
    %0 = arith.muli %arg1, %c16_i32 : i32
    %c1_i32 = arith.constant 1 : i32
    %1 = arith.subi %0, %c1_i32 : i32
    %c0_i32 = arith.constant 0 : i32
    %2 = arith.maxsi %1, %c0_i32 : i32
    %c0_i32_0 = arith.constant 0 : i32
    %c0_i32_1 = arith.constant 0 : i32
    %c0_i32_2 = arith.constant 0 : i32
    return %arg0, %2, %c0_i32_0, %c0_i32_1 : i32, i32, i32, i32
  }
  func.func @transform_2(%arg0: i32, %arg1: i32) -> (i32, i32, i32, i32) {
    %c16_i32 = arith.constant 16 : i32
    %0 = arith.muli %arg1, %c16_i32 : i32
    %c16_i32_0 = arith.constant 16 : i32
    %1 = arith.addi %0, %c16_i32_0 : i32
    %c31_i32 = arith.constant 31 : i32
    %2 = arith.minsi %1, %c31_i32 : i32
    %c0_i32 = arith.constant 0 : i32
    %c0_i32_1 = arith.constant 0 : i32
    %c0_i32_2 = arith.constant 0 : i32
    return %arg0, %2, %c0_i32, %c0_i32_1 : i32, i32, i32, i32
  }
  func.func @transform_3(%arg0: i32, %arg1: i32) -> (i32, i32, i32, i32, i32) {
    %c0_i32 = arith.constant 0 : i32
    %c0_i32_0 = arith.constant 0 : i32
    %c0_i32_1 = arith.constant 0 : i32
    %c0_i32_2 = arith.constant 0 : i32
    %c0_i32_3 = arith.constant 0 : i32
    %c0_i32_4 = arith.constant 0 : i32
    return %c0_i32, %c0_i32_0, %c0_i32_1, %c0_i32_2, %c0_i32_3 : i32, i32, i32, i32, i32
  }
  func.func @transform_4(%arg0: i32, %arg1: i32) -> (i32, i32, i32, i32, i32, i32) {
    %c0_i32 = arith.constant 0 : i32
    %c0_i32_0 = arith.constant 0 : i32
    %c0_i32_1 = arith.constant 0 : i32
    %c0_i32_2 = arith.constant 0 : i32
    %c0_i32_3 = arith.constant 0 : i32
    return %arg0, %c0_i32, %c0_i32_0, %arg1, %c0_i32_1, %c0_i32_2 : i32, i32, i32, i32, i32, i32
  }
  func.func @transform_5(%arg0: i32, %arg1: i32) -> (i32, i32, i32) {
    %c0_i32 = arith.constant 0 : i32
    %c0_i32_0 = arith.constant 0 : i32
    %c0_i32_1 = arith.constant 0 : i32
    return %arg0, %c0_i32, %c0_i32_0 : i32, i32, i32
  }
  func.func @transform_6(%arg0: i32, %arg1: i32) -> (i32, i32, i32) {
    %c0_i32 = arith.constant 0 : i32
    %c0_i32_0 = arith.constant 0 : i32
    %c0_i32_1 = arith.constant 0 : i32
    return %arg0, %c0_i32, %c0_i32_0 : i32, i32, i32
  }
}

</mosaic_0001>

<bundles_post_ra>
// kernel: tpu_custom_call.1
= control target key start
LH: loop header
LB: loop body
LE: loop exit
PB: predicated region body
PF: predicated region fallthrough
CT: control target
= control target key end

     0   :  { %s5981_s0 = inlined_call_operand.hbm [shape: bf16[1,32,8,128], index: 0, kind: input, shape index: {}]   ;;  %s5982_s1 = inlined_call_operand.hbm [shape: bf16[1,32,8,128], index: 1, kind: input, shape index: {}]   ;;  %s5983_s2 = inlined_call_operand.hbm [shape: bf16[1,32,8,128], index: 2, kind: input, shape index: {}]   ;;  %s5984_s3 = inlined_call_operand.hbm [shape: bf16[2,2,2,256,128], index: 3, kind: input, shape index: {}]   ;;  %s5985_s4 = inlined_call_operand.hbm [shape: bf16[1,2,2,32,8,128], index: 4, kind: output, shape index: {0}]   ;;  %s5986_s5 = inlined_call_operand.hbm [shape: f32[1,1,128], index: 5, kind: output, shape index: {1}]   ;;  %s5987_s6 = inlined_call_operand.hbm [shape: f32[1,1,128], index: 6, kind: output, shape index: {2}]  }
   0x1   :  { %6008 = sst [smem:[#allocation27_spill]] %s5982_s1 }
   0x2   :  { %6009 = sst [smem:[#allocation28_spill]] %s5984_s3 }
   0x3   :  { %6010 = sst [smem:[#allocation29_spill]] %s5985_s4 }
   0x4   :  { %6011 = sst [smem:[#allocation30_spill]] %s5986_s5 }
   0x5   :  { %6012 = sst [smem:[#allocation31_spill]] %s5987_s6 }
   0x6   :  { %12 = vsyncpa [#allocation3], 0 }
   0x7   :  { %14 = vsyncpa [#allocation3 + $0x1], 0 }
   0x8   :  { %15 = vsyncpa [#allocation6], 0 }
   0x9   :  { %17 = vsyncpa [#allocation6 + $0x1], 0 }
   0xa   :  { %18 = vsyncpa [#allocation9], 0 }
   0xb   :  { %19 = vsyncpa [#allocation4], 0 }
   0xc   :  { %21 = vsyncpa [#allocation4 + $0x1], 0 }
   0xd   :  { %22 = vsyncpa [#allocation12], 0  ;;  %s4988_s21 = smov 0   ;;  %s4990_s22 = smov 0  }
   0xe   :  { %s4992_s23 = smov 0   ;;  %s4994_s24 = smov 0  }
   0xf   :  { %s4996_s25 = smov 0   ;;  %s4998_s26 = smov 0  }
  0x10   :  { %s5000_s27 = smov 0   ;;  %s5002_s28 = smov 0  }
  0x11   :  { %s5004_s29 = smov 0   ;;  %s5006_s30 = smov 0  }
  0x12   :  { %s5008_s7 = smov 0   ;;  %s5010_s8 = smov 0  }
  0x13 LB: > { %6013 = sst [smem:[#allocation22_spill]] %s4907_s25  ;;  %s5049_s9 = sadd.s32 4294967295, %s4935_s8   ;;  %s4935_s8 = sphi %s5010_s8, %s28_s8   ;;  %s4931_s7 = sphi %s5008_s7, %s6076_s7   ;;  %s4927_s30 = sphi %s5006_s30, %s6075_s30   ;;  %s4923_s29 = sphi %s5004_s29, %s6085_s29   ;;  %s4919_s28 = sphi %s5002_s28, %s6084_s28   ;;  %s4915_s27 = sphi %s5000_s27, %s6083_s27   ;;  %s4911_s26 = sphi %s4998_s26, %s6082_s26   ;;  %s4907_s25 = sphi %s4996_s25, %s6081_s25   ;;  %s4903_s24 = sphi %s4994_s24, %s6080_s24   ;;  %s4899_s23 = sphi %s4992_s23, %s6079_s23   ;;  %s4895_s22 = sphi %s4990_s22, %s6078_s22   ;;  %s4891_s21 = sphi %s4988_s21, %s6077_s21  }
  0x14   : > { %6014 = sst [smem:[#allocation23_spill]] %s4927_s30  ;;  %s37_s10 = sadd.s32 1, %s4931_s7 }
  0x15   : > { %6015 = sst [smem:[#allocation24_spill]] %s4931_s7  ;;  %p38_p0 = scmp.ge.s32.totalorder %s37_s10, 2 }
  0x16   : > { %p5996_p1 = scmp.eq.s32.totalorder %s4935_s8, 0  ;;  %p5997_p2 = scmp.eq.s32.totalorder %s5049_s9, 0 }
  0x17   : > { %s3391_s11 = sshll.u32 %s4931_s7, 4  ;;  %s6087_s10 = smov (%p38_p0, %s37_s10), 0 }
  0x18   : > { %6016 = sst [smem:[#allocation25_spill]] %s6087_s10  ;;  %s3392_s12 = sadd.s32 4294967295, %s3391_s11 }
  0x19   : > { %s85_s13 = sadd.s32 1, %s4911_s26  ;;  %s45_s14 = ssub.s32 %s4931_s7, %s6087_s10 }
  0x1a   : > { %p74_p3 = scmp.gt.s32.totalorder %s3392_s12, 0  ;;  %p5060_p4 = scmp.eq.s32.totalorder %s45_s14, 0 }
  0x1b   : > { %s3393_s16 = sshll.u32 %s6087_s10, 4  ;;  %p92_p5 = scmp.ne.s32.totalorder %s4911_s26, %s4907_s25 }
  0x1c   : > { %s6017_s15 = scalar_select %p5060_p4, 1, 0 }
  0x1d   : > { %s6089_s12 = smov (!%p74_p3, %s3392_s12), 0  ;;  %s3394_s17 = sadd.s32 4294967295, %s3393_s16 }
  0x1e   : > { %p78_p6 = scmp.gt.s32.totalorder %s3394_s17, 0  ;;  %p98_p7 = scmp.ne.s32.totalorder %s4907_s25, %s4903_s24 }
  0x1f   : > { %p5071_p8 = por %p92_p5, %p5996_p1  ;;  %s5075_s19 = sadd.s32 16, %s3391_s11 }
  0x20   : > { %s6091_s17 = smov (!%p78_p6, %s3394_s17), 0  ;;  %p5079_p9 = por %p98_p7, %p5997_p2 }
  0x21   : > { %s81_s14 = ssub.s32 %s6089_s12, %s6091_s17  ;;  %s5084_s10 = sadd.s32 16, %s3393_s16 }
  0x22   : > { %s6019_s20 = scalar_select %p5079_p9, 1, 0 }
  0x23   : > { %p83_p11 = scmp.eq.s32.totalorder %s81_s14, 0  ;;  %p5995_p0 = scmp.lt.s32.totalorder %s4935_s8, 2 }
  0x24   : > { %6020 = sst [smem:[#allocation26_spill]] %s6019_s20  ;;  %s295_s11 = sand.u32 1, %s4935_s8  }
  0x25   : > { %s5089_s24 = scalar_select %p83_p11, %s4911_s26, %s85_s13  }
  0x26   : > { %s297_s6 = sand.u32 1, %s4911_s26   ;;  %s3406_s4 = sshll.u32 %s6089_s12, 6 }
  0x27   : > { %s3403_s5 = sshll.u32 %s297_s6, 2  ;;  %s6021_s1 = sld [smem:[#allocation27_spill]] }
  0x28   : > { %s299_s16 = scalar_lea.vmem [#allocation5], %s3403_s5  ;;  %p5103_p3 = pnand %p5995_p0, %p5071_p8 }
  0x29   : > { %s312_s17 = sshll.u32 %s299_s16, 4  ;;  %s5109_s6 = scalar_lea.sflag [#allocation6], %s295_s11  ;;  %s5107_s17 = int_to_ptr.vmem [resolvable:$true] %s312_s17 }
  0x2a   : > { %p4649_p6 = pneg %p5103_p3 }
  0x2d   : > { %s5097_s20 = scalar_lea.hbm %s6021_s1, %s3406_s4  ;;  %s4652_s30 = scalar_lea.hbm %s6021_s1, 2048 }
  0x2e   : > { %s4647_s4 = scalar_lea.hbm %s5097_s20, 64  ;;  %p4653_p8 = scmp.lt.u32.totalorder %s5097_s20, %s6021_s1 }
  0x2f   : > { %p4648_p5 = scmp.ne.s32.totalorder %s5097_s20, %s4647_s4  ;;  %p4654_p13 = scmp.lt.u32.totalorder %s4652_s30, %s4647_s4 }
  0x30   : > { %p4656_p10 = scmp.lt.u32.totalorder %s4647_s4, %s5097_s20 }
  0x31   : > { %p4650_p7 = pnand %p4649_p6, %p4648_p5  ;;  %p4655_p12 = por %p4654_p13, %p4653_p8 }
  0x33   : > { %p4651_p11 = pneg %p4650_p7  ;;  %p4657_p0 = por %p4656_p10, %p4655_p12 }
  0x35   : > { %p4658_p1 = pnand %p4657_p0, %p4651_p11 }
  0x37   : > { %4661 = shalt.err (!%p4658_p1)
}
  0x38   : > { %s4662_s14 = scalar_lea.vmem %s5107_s17, 64  ;;  %s4937_s11 = smov [#allocation5]  }
  0x39   : > { %p4663_p5 = scmp.ne.s32.totalorder %s5107_s17, %s4662_s14  ;;  %s4667_s16 = sshll.u32 %s4937_s11, 4  ;;  %s4668_s16 = int_to_ptr.vmem [resolvable:$false] %s4667_s16 }
  0x3a   : > { %s4669_s5 = scalar_lea.vmem %s4668_s16, 128  ;;  %p4670_p9 = scmp.lt.s32.totalorder %s5107_s17, %s4668_s16 }
  0x3b   : > { %p4665_p7 = pnand %p4663_p5, %p4649_p6  ;;  %p4671_p13 = scmp.lt.s32.totalorder %s4669_s5, %s4662_s14 }
  0x3d   : > { %p4666_p2 = pneg %p4665_p7  ;;  %p4672_p8 = por %p4671_p13, %p4670_p9 }
  0x3f   : > { %p4673_p10 = pnand %p4672_p8, %p4666_p2 }
  0x41   : > { %4676 = shalt.err (!%p4673_p10)
}
  0x42   : > { %4394 = dma.hbm_to_vmem [thread:$0]  (!%p5103_p3), %s5097_s20, 64, %s5107_s17, %s5109_s6  }
  0x43   : > { %p3397_p1 = scmp.ge.s32.totalorder %s4935_s8, 1  ;;  %p246_p12 = scmp.lt.s32.totalorder %s4935_s8, 3 }
  0x44   : > { %s4938_s25 = smov [#allocation8]   ;;  %p6024_p9 = scmp.eq.s32.totalorder %s5049_s9, 0 }
  0x45   : > { %p5139_p0 = pnand %p3397_p1, %p246_p12  ;;  %s258_s30 = sshll.u32 %s4938_s25, 4  ;;  %s259_s30 = int_to_ptr.vmem [resolvable:$true] %s258_s30 }
  0x46   : > { %s3390_s12 = sadd.s32 4294967294, %s4935_s8   ;;  %s6026_s3 = sld [smem:[#allocation28_spill]] }
  0x47   : > { %s6023_s4 = scalar_select %p5139_p0, 1, 0 }
  0x48   : > { %p4384_p2 = pneg %p5139_p0 }
  0x4a   : > { %p5147_p6 = pnand %p4384_p2, %p6024_p9 }
  0x4c   : > { %s4677_s18 = scalar_lea.hbm %s6026_s3, 16384  ;;  %p4679_p11 = pneg %p5147_p6 }
  0x4d   : > { %p4678_p3 = scmp.ne.s32.totalorder %s6026_s3, %s4677_s18  ;;  %p4684_p13 = scmp.lt.u32.totalorder %s4677_s18, %s6026_s3 }
  0x4f   : > { %p4680_p5 = pnand %p4679_p11, %p4678_p3 }
  0x51   : > { %p4681_p7 = pneg %p4680_p5 }
  0x53   : > { %p4686_p8 = pnand %p4684_p13, %p4681_p7 }
  0x55   : > { %4689 = shalt.err (!%p4686_p8)
}
  0x56   : > { %s4690_s25 = scalar_lea.vmem %s259_s30, 16384  ;;  %p4698_p2 = scmp.lt.s32.totalorder %s259_s30, %s259_s30 }
  0x57   : > { %p4691_p10 = scmp.ne.s32.totalorder %s259_s30, %s4690_s25  ;;  %p4699_p9 = scmp.lt.s32.totalorder %s4690_s25, %s4690_s25 }
  0x59   : > { %p4693_p1 = pnand %p4691_p10, %p4679_p11  ;;  %p4700_p0 = por %p4699_p9, %p4698_p2 }
  0x5b   : > { %p4694_p12 = pneg %p4693_p1 }
  0x5d   : > { %p4701_p4 = pnand %p4700_p0, %p4694_p12 }
  0x5f   : > { %4704 = shalt.err (!%p4701_p4)
}
  0x60   : > { %s6000_s20 = smov 64   ;;  %s6001_s17 = smov 4  }
  0x61   : > { %4387 = dma.hbm_to_vmem [thread:$0]  (!%p5147_p6), %s6026_s3, 16384, %s259_s30, [#allocation9], %s6000_s20, %s6000_s20, %s6001_s17  }
  0x62   : > { %s49_s11 = sadd.s32 1, %s4923_s29  ;;  %p56_p4 = scmp.ne.s32.totalorder %s4923_s29, %s4919_s28 }
  0x63   : > { %p6027_p0 = scmp.ne.s32.totalorder %s6017_s15, 0  ;;  %p6028_p3 = scmp.eq.s32.totalorder %s4935_s8, 0 }
  0x64   : > { %p62_p5 = scmp.ne.s32.totalorder %s4919_s28, %s4915_s27  ;;  %p6003_p7 = scmp.eq.s32.totalorder %s5049_s9, 1 }
  0x65   : > { %s5177_s16 = scalar_select %p6027_p0, %s4923_s29, %s49_s11  }
  0x66   : > { %p5181_p11 = por %p6028_p3, %p56_p4  ;;  %p187_p13 = scmp.eq.s32.totalorder %s3390_s12, 1 }
  0x67   : > { %p6030_p8 = scmp.eq.s32.totalorder %s5049_s9, 0  ;;  %s272_s30 = sand.u32 1, %s4923_s29  }
  0x68   : > { %p5197_p6 = por %p6003_p7, %p56_p4  ;;  %p5201_p1 = por %p187_p13, %p62_p5 }
  0x69   : > { %p5190_p10 = por %p6030_p8, %p62_p5  ;;  %s3400_s18 = sshll.u32 %s272_s30, 6 }
  0x6a   : > { %s6032_s15 = scalar_select %p5197_p6, 1, 0 }
  0x6b   : > { %s6033_s25 = scalar_select %p5201_p1, 1, 0 }
  0x6c   : > { %s3653_s14 = sshll.u32 %s4931_s7, 10  ;;  %s276_s17 = scalar_lea.vmem [#allocation2], %s3400_s18 }
  0x6d   : > { %s5209_s12 = scalar_lea.hbm %s5981_s0, %s3653_s14  ;;  %s285_s1 = sshll.u32 %s276_s17, 4  ;;  %s5211_s1 = int_to_ptr.vmem [resolvable:$true] %s285_s1 }
  0x6e   : > { %p6034_p12 = scmp.lt.s32.totalorder %s4935_s8, 2  ;;  %s5221_s7 = scalar_lea.sflag [#allocation3], %s272_s30 }
  0x6f   : > { %s4705_s20 = scalar_lea.hbm %s5209_s12, 1024  ;;  %s4710_s5 = scalar_lea.hbm %s5981_s0, 2048 }
  0x70   : > { %p5217_p2 = pnand %p6034_p12, %p5181_p11  ;;  %p4706_p9 = scmp.ne.s32.totalorder %s5209_s12, %s4705_s20 }
  0x71   : > { %p4711_p11 = scmp.lt.u32.totalorder %s5209_s12, %s5981_s0  ;;  %p4712_p5 = scmp.lt.u32.totalorder %s4710_s5, %s4705_s20 }
  0x72   : > { %p4707_p4 = pneg %p5217_p2  ;;  %p4714_p8 = scmp.lt.u32.totalorder %s4705_s20, %s5209_s12 }
  0x73   : > { %p4713_p13 = por %p4712_p5, %p4711_p11 }
  0x74   : > { %p4708_p0 = pnand %p4707_p4, %p4706_p9 }
  0x75   : > { %p4715_p12 = por %p4714_p8, %p4713_p13 }
  0x76   : > { %p4709_p3 = pneg %p4708_p0 }
  0x78   : > { %p4716_p7 = pnand %p4715_p12, %p4709_p3 }
  0x7a   : > { %4719 = shalt.err (!%p4716_p7)
}
  0x7b   : > { %s4720_s30 = scalar_lea.vmem %s5211_s1, 1024  ;;  %s4941_s17 = smov [#allocation2]  }
  0x7c   : > { %p4721_p9 = scmp.ne.s32.totalorder %s5211_s1, %s4720_s30  ;;  %s4725_s18 = sshll.u32 %s4941_s17, 4  ;;  %s4726_s18 = int_to_ptr.vmem [resolvable:$false] %s4725_s18 }
  0x7d   : > { %s4727_s14 = scalar_lea.vmem %s4726_s18, 2048  ;;  %p4728_p6 = scmp.lt.s32.totalorder %s5211_s1, %s4726_s18 }
  0x7e   : > { %p4723_p0 = pnand %p4721_p9, %p4707_p4  ;;  %p4729_p11 = scmp.lt.s32.totalorder %s4727_s14, %s4720_s30 }
  0x80   : > { %p4724_p1 = pneg %p4723_p0  ;;  %p4730_p5 = por %p4729_p11, %p4728_p6 }
  0x82   : > { %p4731_p13 = pnand %p4730_p5, %p4724_p1 }
  0x84   : > { %4734 = shalt.err (!%p4731_p13)
}
  0x85   : > { %s6036_s20 = smov 4   ;;  %s6037_s5 = smov 64  }
  0x86   : > { %4391 = dma.hbm_to_vmem [thread:$0]  (!%p5217_p2), %s5209_s12, 1024, %s5211_s1, %s5221_s7, %s6037_s5, %s6037_s5, %s6036_s20  }
  0x87   : > { %s121_s3 = sadd.s32 1, %s4899_s23  ;;  %p6038_p7 = scmp.lt.s32.totalorder %s5075_s19, 31 }
  0x88   : > { %p6039_p6 = scmp.lt.s32.totalorder %s5084_s10, 31  ;;  %p128_p1 = scmp.ne.s32.totalorder %s4899_s23, %s4895_s22 }
  0x89   : > { %s6093_s19 = smov (!%p6038_p7, %s5075_s19), 31  ;;  %p134_p4 = scmp.ne.s32.totalorder %s4895_s22, %s4891_s21 }
  0x8a   : > { %s6095_s10 = smov (!%p6039_p6, %s5084_s10), 31  ;;  %s321_s30 = sand.u32 1, %s4899_s23  }
  0x8b   : > { %s117_s11 = ssub.s32 %s6093_s19, %s6095_s10  ;;  %p6040_p8 = scmp.eq.s32.totalorder %s4935_s8, 0 }
  0x8c   : > { %p119_p3 = scmp.eq.s32.totalorder %s117_s11, 0  ;;  %p6041_p9 = scmp.eq.s32.totalorder %s5049_s9, 0 }
  0x8d   : > { %p130_p12 = por %p128_p1, %p6040_p8  ;;  %s3407_s18 = sshll.u32 %s321_s30, 2 }
  0x8e   : > { %p5268_p0 = por %p134_p4, %p6041_p9  ;;  %s3409_s7 = sshll.u32 %s6093_s19, 6 }
  0x8f   : > { %s5273_s1 = scalar_select %p119_p3, %s4899_s23, %s121_s3  }
  0x90   : > { %s6042_s17 = scalar_select %p5268_p0, 1, 0 }
  0x91   : > { %s5278_s20 = scalar_lea.hbm %s5983_s2, %s3409_s7  ;;  %s323_s21 = scalar_lea.vmem [#allocation7], %s3407_s18 }
  0x92   : > { %s336_s10 = sshll.u32 %s323_s21, 4  ;;  %p6043_p2 = scmp.lt.s32.totalorder %s4935_s8, 2  ;;  %s5280_s10 = int_to_ptr.vmem [resolvable:$true] %s336_s10 }
  0x93   : > { %s4735_s19 = scalar_lea.hbm %s5278_s20, 64  ;;  %s4740_s30 = scalar_lea.hbm %s5983_s2, 2048 }
  0x94   : > { %p5284_p11 = pnand %p6043_p2, %p130_p12  ;;  %p4736_p5 = scmp.ne.s32.totalorder %s5278_s20, %s4735_s19 }
  0x95   : > { %p4741_p1 = scmp.lt.u32.totalorder %s5278_s20, %s5983_s2  ;;  %p4742_p4 = scmp.lt.u32.totalorder %s4740_s30, %s4735_s19 }
  0x96   : > { %p4737_p13 = pneg %p5284_p11  ;;  %p4744_p8 = scmp.lt.u32.totalorder %s4735_s19, %s5278_s20 }
  0x97   : > { %p4743_p3 = por %p4742_p4, %p4741_p1 }
  0x98   : > { %p4738_p7 = pnand %p4737_p13, %p4736_p5 }
  0x99   : > { %p4745_p12 = por %p4744_p8, %p4743_p3 }
  0x9a   : > { %p4739_p6 = pneg %p4738_p7 }
  0x9c   : > { %p4746_p9 = pnand %p4745_p12, %p4739_p6 }
  0x9e   : > { %4749 = shalt.err (!%p4746_p9)
}
  0x9f   : > { %s4750_s12 = scalar_lea.vmem %s5280_s10, 64  ;;  %s4942_s14 = smov [#allocation7]  }
  0xa0   : > { %p4751_p2 = scmp.ne.s32.totalorder %s5280_s10, %s4750_s12  ;;  %s4755_s21 = sshll.u32 %s4942_s14, 4  ;;  %s4756_s21 = int_to_ptr.vmem [resolvable:$false] %s4755_s21 }
  0xa1   : > { %s4757_s3 = scalar_lea.vmem %s4756_s21, 128  ;;  %p4758_p0 = scmp.lt.s32.totalorder %s5280_s10, %s4756_s21 }
  0xa2   : > { %p4753_p5 = pnand %p4751_p2, %p4737_p13  ;;  %p4759_p1 = scmp.lt.s32.totalorder %s4757_s3, %s4750_s12 }
  0xa4   : > { %p4754_p7 = pneg %p4753_p5  ;;  %p4760_p4 = por %p4759_p1, %p4758_p0 }
  0xa6   : > { %p4761_p3 = pnand %p4760_p4, %p4754_p7 }
  0xa8   : > { %4764 = shalt.err (!%p4761_p3)
}
  0xa9   : > { %4397 = dma.hbm_to_vmem [thread:$0]  (!%p5284_p11), %s5278_s20, 64, %s5280_s10, %s5109_s6  }
  0xaa   : > { %p6045_p6 = scmp.ne.s32.totalorder %s6023_s4, 0 }
  0xab   : > { %s5317_s19 = sand.u32 (!%p6045_p6), 1, %s4919_s28  }
  0xac   : > { %345 = sbr.rel (%p6045_p6) target bundleno = 812 (0x32c), region = 36  ;;  %s3411_s11 = sshll.u32 (!%p6045_p6), %s5317_s19, 6 }
  0xad   : > { %s348_s30 = scalar_lea.sflag (!%p6045_p6), [#allocation3], %s5317_s19  ;;  %s5321_s18 = scalar_lea.vmem (!%p6045_p6), [#allocation2], %s3411_s11 }
  0xb3   : > { %4866 = dma.done.wait (%p5190_p10), %s348_s30, 1024  }
  0xb4   : > { %4868 = vsyncadd (%p5190_p10), %s348_s30, 4294966272  ;;  %s6046_s6 = sld [smem:[#allocation22_spill]]  ;;  %s6047_s20 = sld [smem:[#allocation26_spill]] }
  0xb5   : > { %s356_s4 = sand.u32 1, %s5049_s9  }
  0xb6   : > { %s357_s7 = scalar_lea.sflag [#allocation6], %s356_s4 }
  0xba   : > { %s358_s10 = sand.u32 1, %s6046_s6   ;;  %p6048_p0 = scmp.ne.s32.totalorder %s6047_s20, 0 }
  0xbb   : > { %s5329_s5 = sshll.u32 %s358_s10, 2 }
  0xbc   : > { %s360_s12 = scalar_lea.vmem [#allocation5], %s5329_s5 }
  0xbd   : > { %4870 = dma.done.wait (%p6048_p0), %s357_s7, 64  }
  0xbe   : > { %4872 = vsyncadd (%p6048_p0), %s357_s7, 4294967232  ;;  %s367_s14 = sand.u32 1, %s4895_s22   ;;  %p6049_p10 = scmp.ne.s32.totalorder %s6042_s17, 0 }
  0xbf   : > { %s5337_s13 = sshll.u32 %s367_s14, 2 }
  0xc0   : > { %s369_s21 = scalar_lea.vmem [#allocation7], %s5337_s13 }
  0xc1   : > { %4874 = dma.done.wait (%p6049_p10), %s357_s7, 64  }
  0xc2   : > { %4876 = vsyncadd (%p6049_p10), %s357_s7, 4294967232  ;;  %p6050_p11 = scmp.eq.s32.totalorder %s5049_s9, 0 }
  0xc4   : > { %4878 = dma.done.wait (%p6050_p11), [#allocation9], 16384   ;;  %p6051_p13 = pmov %p6050_p11 }
  0xc5   : > { %s3415_s3 = sshll.u32 %s5317_s19, 8  ;;  %s6052_s30 = sld [smem:[#allocation23_spill]] }
  0xc6   : > { %4880 = vsyncadd (%p6051_p13), [#allocation9], 4294950912  ;;  %s5349_s11 = scalar_lea.vmem [#allocation10], %s3415_s3 }
  0xcb   : > { %p3416_p8 = scmp.ne.s32.totalorder %s6052_s30, 0 }
  0xcc   : > { %v4943_v0 = vmov (!%p3416_p8), 0.0  }
  0xcd   : > { %426 = sbr.rel (%p3416_p8) target bundleno = 212 (0xd4), region = 56  ;;  %427 = vst [vmem:[#allocation11] sm:$0x1] (!%p3416_p8), %v4943_v0  ;;  %428 = vst [vmem:[#allocation13] sm:$0x1] (!%p3416_p8), %v4943_v0 }
  0xd4 PF: > { %v4519_v1 = vld [vmem:[#allocation8 + $0xc0] sm:$0xff]   ;;  %v4523_v5 = vld [vmem:[#allocation8 + $0xc8] sm:$0xff]   ;;  %v4527_v9 = vld [vmem:[#allocation8 + $0xd0] sm:$0xff]   ;;  %s6053_s17 = sld [smem:[#allocation23_spill]]  ;;  %vm605_vm0 = vcmask 1040384   ;;  %vm626_vm1 = vcmask 1044480  }
  0xd5   : > { %v4520_v2 = vld [vmem:[#allocation8 + $0x40] sm:$0xff]   ;;  %3846 = vmatprep.subr.bf16.mxu0 %v4519_v1  ;;  %v4524_v6 = vld [vmem:[#allocation8 + $0x48] sm:$0xff]   ;;  %v4528_v10 = vld [vmem:[#allocation8 + $0x50] sm:$0xff]   ;;  %vm606_vm2 = vsmask.f32 256  ;;  %s3150_s10 = scalar_lea.sflag [#allocation4], %s5317_s19 }
  0xd6   : > { %v4521_v3 = vld [vmem:[#allocation8 + $0x80] sm:$0xff]   ;;  %3910 = vmatprep.subr.bf16.mxu1 %v4520_v2  ;;  %v4525_v7 = vld [vmem:[#allocation8 + $0x88] sm:$0xff]   ;;  %v4529_v11 = vld [vmem:[#allocation8 + $0x90] sm:$0xff]   ;;  %vm627_vm3 = vsmask.f32 4352 }
  0xd7   : > { %v4522_v4 = vld [vmem:[#allocation8] sm:$0xff]   ;;  %3847 = vmatpush3.bf16.msra.mxu0 %v4521_v3  ;;  %v4526_v8 = vld [vmem:[#allocation8 + $0x8] sm:$0xff]   ;;  %v4530_v12 = vld [vmem:[#allocation8 + $0x10] sm:$0xff]  }
  0xd8   : > { %3911 = vmatpush3.bf16.msra.mxu1 %v4522_v4  ;;  %3848 = vmatprep.subr.bf16.mxu0 %v4523_v5  ;;  %v4531_v13 = vld [vmem:[#allocation8 + $0xd8] sm:$0xff]   ;;  %v4535_v17 = vld [vmem:[#allocation8 + $0xe0] sm:$0xff]   ;;  %v4539_v21 = vld [vmem:[#allocation8 + $0xe8] sm:$0xff]  }
  0xd9   : > { %3912 = vmatprep.subr.bf16.mxu1 %v4524_v6  ;;  %v4532_v14 = vld [vmem:[#allocation8 + $0x58] sm:$0xff]   ;;  %v4536_v18 = vld [vmem:[#allocation8 + $0x60] sm:$0xff]   ;;  %v4540_v22 = vld [vmem:[#allocation8 + $0x68] sm:$0xff]  }
  0xda   : > { %v4533_v15 = vld [vmem:[#allocation8 + $0x98] sm:$0xff]   ;;  %v4537_v19 = vld [vmem:[#allocation8 + $0xa0] sm:$0xff]   ;;  %v4541_v23 = vld [vmem:[#allocation8 + $0xa8] sm:$0xff]   ;;  %p445_p12 = scmp.gt.s32.totalorder %s6053_s17, 0  ;;  %p448_p9 = scmp.lt.s32.totalorder %s6053_s17, 1 }
  0xdb   : > { %3849 = vmatpush3.bf16.msra.mxu0 %v4525_v7  ;;  %v4534_v16 = vld [vmem:[#allocation8 + $0x18] sm:$0xff]   ;;  %v4538_v20 = vld [vmem:[#allocation8 + $0x20] sm:$0xff]   ;;  %v4542_v24 = vld [vmem:[#allocation8 + $0x28] sm:$0xff]  }
  0xdc   : > { %3913 = vmatpush3.bf16.msra.mxu1 %v4526_v8  ;;  %3850 = vmatprep.subr.bf16.mxu0 %v4527_v9  ;;  %v4543_v25 = vld [vmem:[#allocation8 + $0xf0] sm:$0xff]   ;;  %v4547_v29 = vld [vmem:[#allocation8 + $0xf8] sm:$0xff]   ;;  %s446_s6 = scalar_select %p445_p12, 1, 0  ;;  %vm5360_vm4 = vmand %vm605_vm0, %vm606_vm2 }
  0xdd   : > { %3914 = vmatprep.subr.bf16.mxu1 %v4528_v10  ;;  %v4544_v26 = vld [vmem:[#allocation8 + $0x70] sm:$0xff]   ;;  %v4548_v30 = vld [vmem:[#allocation8 + $0x78] sm:$0xff]   ;;  %v4551_v44 = vld [vmem:[#allocation8 + $0x1c0] sm:$0xff]  }
  0xde   : > { %v4545_v27 = vld [vmem:[#allocation8 + $0xb0] sm:$0xff]   ;;  %v4549_v31 = vld [vmem:[#allocation8 + $0xb8] sm:$0xff]   ;;  %s447_s20 = scvt.s32.f32 %s446_s6  ;;  %v4552_v45 = vld [vmem:[#allocation8 + $0x140] sm:$0xff]  }
  0xdf   : > { %3851 = vmatpush3.bf16.msra.mxu0 %v4529_v11  ;;  %v4546_v28 = vld [vmem:[#allocation8 + $0x30] sm:$0xff]   ;;  %v4550_v32 = vld [vmem:[#allocation8 + $0x38] sm:$0xff]   ;;  %vm5365_vm5 = vmand %vm626_vm1, %vm627_vm3 }
  0xe0   : > { %3915 = vmatpush3.bf16.msra.mxu1 %v4530_v12  ;;  %3852 = vmatprep.subr.bf16.mxu0 %v4531_v13  ;;  %v429_v33 = vld [vmem:[%s5321_s18] sm:$0xf]  ;;  %v430_v34 = vld [vmem:[%s5321_s18 + $0x4] sm:$0xf]  ;;  %v453_v49 = vstv %s447_s20  ;;  %v431_v53 = vld [vmem:[%s5321_s18 + $0x8] sm:$0xf] }
  0xe1   : > { %3916 = vmatprep.subr.bf16.mxu1 %v4532_v14  ;;  %v469_v35 = vshrl.u32 %v429_v33, 16  ;;  %v472_v36 = vshll.u32 %v429_v33, 16  ;;  %v476_v37 = vshrl.u32 %v430_v34, 16  ;;  %v479_v38 = vshll.u32 %v430_v34, 16  ;;  %v451_v39 = vld [vmem:[%s360_s12] sm:$0xf] }
  0xe2   : > { %v452_v43 = vunpack.c.l.bf16 %v451_v39  ;;  %v432_v54 = vld [vmem:[%s5321_s18 + $0xc] sm:$0xf]  ;;  %v483_v58 = vshrl.u32 %v431_v53, 16  ;;  %v486_v4 = vshll.u32 %v431_v53, 16  ;;  %v433_v14 = vld [vmem:[%s5321_s18 + $0x10] sm:$0xf] }
  0xe3   : > { %3853 = vmatpush3.bf16.msra.mxu0 %v4533_v15  ;;  %v471_v40 = vrot.slane %v469_v35, 7  ;;  %v478_v41 = vrot.slane %v476_v37, 7  ;;  %v490_v5 = vshrl.u32 %v432_v54, 16  ;;  %v493_v7 = vshll.u32 %v432_v54, 16  ;;  %v434_v15 = vld [vmem:[%s5321_s18 + $0x14] sm:$0xf] }
  0xe4   : > { %3917 = vmatpush3.bf16.msra.mxu1 %v4534_v16  ;;  %3854 = vmatprep.subr.bf16.mxu0 %v4535_v17  ;;  %v454_v50 = vmul.f32 %v453_v49, %v452_v43  ;;  %v485_v1 = vrot.slane %v483_v58, 7  ;;  %v4553_v17 = vld [vmem:[#allocation8 + $0x180] sm:$0xff]   ;;  %v500_v33 = vshll.u32 %v433_v14, 16 }
  0xe5   : > { %3918 = vmatprep.subr.bf16.mxu1 %v4536_v18  ;;  %v474_v46 = vor.u32 %v472_v36, %v471_v40  ;;  %v481_v47 = vor.u32 %v479_v38, %v478_v41  ;;  %v492_v11 = vrot.slane %v490_v5, 7  ;;  %v4559_v41 = vld [vmem:[#allocation8 + $0x1d0] sm:$0xff]   ;;  %v4554_v53 = vld [vmem:[#allocation8 + $0x100] sm:$0xff]  }
  0xe6   : > { %v455_v57 = vpack.c.bf16 %v454_v50, %v454_v50  ;;  %v488_v10 = vor.u32 %v486_v4, %v485_v1  ;;  %v4561_v4 = vld [vmem:[#allocation8 + $0x190] sm:$0xff]  }
  0xe7   : > { %3855 = vmatpush3.bf16.msra.mxu0 %v4537_v19  ;;  %v609_v51 = vsel %vm5360_vm4, 0, %v474_v46  ;;  %v610_v52 = vsel %vm5360_vm4, 0, %v481_v47  ;;  %v495_v18 = vor.u32 %v493_v7, %v492_v11 }
  0xe8   : > { %3919 = vmatpush3.bf16.msra.mxu1 %v4538_v20  ;;  %3856 = vmatprep.subr.bf16.mxu0 %v4539_v21  ;;  %v5377_v55 = vsel %vm5365_vm5, %v609_v51, 0  ;;  %v5381_v56 = vsel %vm5365_vm5, %v610_v52, 0  ;;  %v462_v63 = vshrl.u32 %v455_v57, 16  ;;  %v465_v0 = vshll.u32 %v455_v57, 16  ;;  %v435_v51 = vld [vmem:[%s5321_s18 + $0x18] sm:$0xf] }
  0xe9   : > { %3920 = vmatprep.subr.bf16.mxu1 %v4540_v22  ;;  %v655_v59 = vshrl.u32 %v5377_v55, 16  ;;  %v657_v60 = vshll.u32 %v5377_v55, 16  ;;  %v662_v61 = vshrl.u32 %v5381_v56, 16  ;;  %v664_v62 = vshll.u32 %v5381_v56, 16  ;;  %v4555_v22 = vld [vmem:[#allocation8 + $0x1c8] sm:$0xff]  }
  0xea   : > { %v464_v6 = vrot.slane %v462_v63, 7  ;;  %v5389_v13 = vcombine.low %v5377_v55, %v5381_v56  ;;  %v611_v19 = vsel %vm5360_vm4, 0, %v488_v10  ;;  %v792_v37 = vrot.slane %v5377_v55, 1  ;;  %v436_v52 = vld [vmem:[%s5321_s18 + $0x1c] sm:$0xf]  ;;  %v4563_v10 = vld [vmem:[#allocation8 + $0x1d8] sm:$0xff]  }
  0xeb   : > { %3857 = vmatpush3.bf16.msra.mxu0 %v4541_v23  ;;  %v659_v2 = vrot.slane %v657_v60, 1  ;;  %v666_v3 = vrot.slane %v664_v62, 1  ;;  %v5401_v21 = vsel %vm5365_vm5, %v611_v19, 0  ;;  %v497_v23 = vshrl.u32 %v433_v14, 16  ;;  %v4560_v14 = vld [vmem:[#allocation8 + $0x150] sm:$0xff]  }
  0xec   : > { %3921 = vmatpush3.bf16.msra.mxu1 %v4542_v24  ;;  %3858 = vmatprep.subr.bf16.mxu0 %v4543_v25  ;;  %v467_v12 = vor.u32 %v465_v0, %v464_v6  ;;  %v504_v24 = vshrl.u32 %v434_v15, 16  ;;  %v514_v63 = vshll.u32 %v435_v51, 16  ;;  %v518_v0 = vshrl.u32 %v436_v52, 16  ;;  %v4558_v6 = vld [vmem:[#allocation8 + $0x108] sm:$0xff]  }
  0xed   : > { %3922 = vmatprep.subr.bf16.mxu1 %v4544_v26  ;;  %v660_v8 = vor.u32 %v659_v2, %v655_v59  ;;  %v667_v9 = vor.u32 %v666_v3, %v662_v61  ;;  %v612_v26 = vsel %vm5360_vm4, 0, %v495_v18  ;;  %v499_v39 = vrot.slane %v497_v23, 7  ;;  %v4556_v61 = vld [vmem:[#allocation8 + $0x148] sm:$0xff]   ;;  %v437_v23 = vld [vmem:[%s5321_s18 + $0x20] sm:$0xf] }
  0xee   : > { %v608_v20 = vsel %vm5360_vm4, 0, %v467_v12  ;;  %v506_v40 = vrot.slane %v504_v24, 7  ;;  %v511_v59 = vshrl.u32 %v435_v51, 16  ;;  %v520_v19 = vrot.slane %v518_v0, 7 }
  0xef   : > { %3859 = vmatpush3.bf16.msra.mxu0 %v4545_v27  ;;  %v5393_v16 = vcombine.low %v660_v8, %v667_v9  ;;  %v5406_v25 = vsel %vm5365_vm5, %v608_v20, 0  ;;  %v669_v27 = vshrl.u32 %v5401_v21, 16  ;;  %v502_v50 = vor.u32 %v500_v33, %v499_v39 }
  0xf0   : > { %3923 = vmatpush3.bf16.msra.mxu1 %v4546_v28  ;;  %3860 = vmatprep.subr.bf16.mxu0 %v4547_v29  ;;  %v671_v28 = vshll.u32 %v5401_v21, 16  ;;  %v4557_v29 = vld [vmem:[#allocation8 + $0x188] sm:$0xff]   ;;  %v3449_v47 = vcombine.low %v5406_v25, %v5377_v55  ;;  %v513_v5 = vrot.slane %v511_v59, 7  ;;  %v521_v20 = vshll.u32 %v436_v52, 16  ;;  %v4591_v55 = vld [vmem:[#allocation8 + $0x2d0] sm:$0xff]  }
  0xf1   : > { %3924 = vmatprep.subr.bf16.mxu1 %v4548_v30  ;;  %1088 = vmatprep.mubr.bf16.mxu0 %v5393_v16  ;;  %v648_v30 = vshrl.u32 %v5406_v25, 16  ;;  %v613_v62 = vsel %vm5360_vm4, 0, %v502_v50 }
  0xf2   : > { %v673_v34 = vrot.slane %v671_v28, 1  ;;  %v5442_v3 = vsel %vm5365_vm5, %v613_v62, 0  ;;  %v525_v28 = vshrl.u32 %v437_v23, 16  ;;  %v523_v33 = vor.u32 %v521_v20, %v520_v19 }
  0xf3   : > { %3861 = vmatpush3.bf16.msra.mxu0 %v4549_v31  ;;  %v650_v31 = vshll.u32 %v5406_v25, 16 }
  0xf4   : > { %3925 = vmatpush3.bf16.msra.mxu1 %v4550_v32  ;;  %3974 = vmatprep.subr.bf16.mxu0 %v4551_v44  ;;  %v5417_v32 = vsel %vm5365_vm5, %v612_v26, 0  ;;  %v674_v43 = vor.u32 %v673_v34, %v669_v27  ;;  %v438_v27 = vld [vmem:[%s5321_s18 + $0x24] sm:$0xf] }
  0xf5   : > { %4038 = vmatprep.subr.bf16.mxu1 %v4552_v45  ;;  %v676_v35 = vshrl.u32 %v5417_v32, 16  ;;  %v678_v36 = vshll.u32 %v5417_v32, 16  ;;  %v652_v38 = vrot.slane %v650_v31, 1  ;;  %v507_v45 = vshll.u32 %v434_v15, 16  ;;  %v4562_v31 = vld [vmem:[#allocation8 + $0x110] sm:$0xff]  }
  0xf6   : > { %1089 = vmatmul.mubr.bf16.vlgmr.msra.gmra.mrb[0].mxu0 %v5389_v13  ;;  %v5426_v49 = vcombine.low %v5401_v21, %v5417_v32  ;;  %v5430_v57 = vcombine.low %v667_v9, %v674_v43  ;;  %v685_v9 = vshll.u32 %v5442_v3, 16  ;;  %v516_v15 = vor.u32 %v514_v63, %v513_v5  ;;  %v440_v5 = vld [vmem:[%s5321_s18 + $0x2c] sm:$0xf] }
  0xf7   : > { %3975 = vmatpush3.bf16.msra.mxu0 %v4553_v17  ;;  %v680_v44 = vrot.slane %v678_v36, 1  ;;  %v653_v46 = vor.u32 %v652_v38, %v648_v30  ;;  %v509_v58 = vor.u32 %v507_v45, %v506_v40  ;;  %v5457_v17 = vcombine.low %v5381_v56, %v5401_v21 }
  0xf8   : > { %3976 = vmatprep.subr.bf16.mxu0 %v4555_v22  ;;  %v687_v18 = vrot.slane %v685_v9, 1  ;;  %v4565_v22 = vld [vmem:[#allocation8 + $0x198] sm:$0xff]   ;;  %v615_v26 = vsel %vm5360_vm4, 0, %v516_v15  ;;  %v527_v45 = vrot.slane %v525_v28, 7  ;;  %v4571_v15 = vld [vmem:[#allocation8 + $0x1e8] sm:$0xff]  }
  0xf9   : > { %v681_v54 = vor.u32 %v680_v44, %v676_v35  ;;  %v5432_v60 = vcombine.low %v653_v46, %v660_v8  ;;  %v614_v2 = vsel %vm5360_vm4, 0, %v509_v58  ;;  %v683_v8 = vshrl.u32 %v5442_v3, 16  ;;  %v4569_v58 = vld [vmem:[#allocation8 + $0x1a0] sm:$0xff]  }
  0xfa   : > { %v5447_v7 = vsel %vm5365_vm5, %v614_v2, 0  ;;  %v5466_v34 = vsel %vm5365_vm5, %v615_v26, 0  ;;  %v532_v35 = vshrl.u32 %v438_v27, 16  ;;  %v616_v44 = vsel %vm5360_vm4, 0, %v523_v33  ;;  %v4568_v2 = vld [vmem:[#allocation8 + $0x160] sm:$0xff]  }
  0xfb   : > { %3977 = vmatpush3.bf16.msra.mxu0 %v4557_v29  ;;  %v5436_v1 = vcombine.low %v674_v43, %v681_v54  ;;  %1313 = vmatprep.mubr.bf16.mxu1 %v5432_v60  ;;  %v690_v11 = vshrl.u32 %v5447_v7, 16  ;;  %v692_v12 = vshll.u32 %v5447_v7, 16  ;;  %v528_v29 = vshll.u32 %v437_v23, 16  ;;  %v4570_v23 = vld [vmem:[#allocation8 + $0x120] sm:$0xff]  }
  0xfc   : > { %3978 = vmatprep.subr.bf16.mxu0 %v4559_v41  ;;  %1314 = vmatmul.mubr.bf16.vlgmr.msra.gmra.mrb[0].mxu1 %v3449_v47  ;;  %v688_v30 = vor.u32 %v687_v18, %v683_v8  ;;  %v5470_v38 = vcombine.low %v5442_v3, %v5447_v7  ;;  %v697_v39 = vshrl.u32 %v5466_v34, 16  ;;  %v699_v40 = vshll.u32 %v5466_v34, 16  ;;  %v4564_v41 = vld [vmem:[#allocation8 + $0x158] sm:$0xff]   ;;  %v4567_v47 = vld [vmem:[#allocation8 + $0x1e0] sm:$0xff]  }
  0xfd   : > { %1096 = vmatprep.mubr.bf16.mxu0 %v5436_v1  ;;  %4039 = vmatpush3.bf16.msra.mxu1 %v4554_v53  ;;  %v694_v24 = vrot.slane %v692_v12, 1  ;;  %v534_v46 = vrot.slane %v532_v35, 7  ;;  %v5482_v51 = vsel %vm5365_vm5, %v616_v44, 0  ;;  %v535_v53 = vshll.u32 %v438_v27, 16  ;;  %v4573_v35 = vld [vmem:[#allocation8 + $0x1a8] sm:$0xff]   ;;  %v4575_v44 = vld [vmem:[#allocation8 + $0x1f0] sm:$0xff]  }
  0xfe   : > { %1321 = vmatprep.mubr.bf16.mxu1 %v5430_v57  ;;  %1097 = vmatmul.mubr.bf16.gmra.mrb[4].mxu0 %v5426_v49  ;;  %v5474_v43 = vcombine.low %v681_v54, %v688_v30  ;;  %v701_v52 = vrot.slane %v699_v40, 1  ;;  %v704_v54 = vshrl.u32 %v5482_v51, 16  ;;  %v706_v59 = vshll.u32 %v5482_v51, 16 }
  0xff   : > { %4040 = vmatprep.subr.bf16.mxu1 %v4556_v61  ;;  %3979 = vmatpush3.bf16.msra.mxu0 %v4561_v4  ;;  %v695_v36 = vor.u32 %v694_v24, %v690_v11  ;;  %v4566_v61 = vld [vmem:[#allocation8 + $0x118] sm:$0xff]   ;;  %v530_v62 = vor.u32 %v528_v29, %v527_v45  ;;  %v537_v0 = vor.u32 %v535_v53, %v534_v46  ;;  %v549_v40 = vshll.u32 %v440_v5, 16  ;;  %v442_v53 = vld [vmem:[%s5321_s18 + $0x34] sm:$0xf] }
 0x100   : > { %3980 = vmatprep.subr.bf16.mxu0 %v4563_v10  ;;  %v702_v63 = vor.u32 %v701_v52, %v697_v39  ;;  %v439_v4 = vld [vmem:[%s5321_s18 + $0x28] sm:$0xf]  ;;  %v5508_v24 = vcombine.low %v5417_v32, %v5442_v3  ;;  %v5518_v39 = vcombine.low %v5466_v34, %v5482_v51  ;;  %v441_v52 = vld [vmem:[%s5321_s18 + $0x30] sm:$0xf] }
 0x101   : > { %4041 = vmatpush3.bf16.msra.mxu1 %v4558_v6  ;;  %v5478_v50 = vcombine.low %v688_v30, %v695_v36  ;;  %v708_v6 = vrot.slane %v706_v59, 1  ;;  %v617_v8 = vsel %vm5360_vm4, 0, %v530_v62  ;;  %v539_v9 = vshrl.u32 %v439_v4, 16 }
 0x102   : > { %4042 = vmatprep.subr.bf16.mxu1 %v4560_v14  ;;  %v542_v10 = vshll.u32 %v439_v4, 16  ;;  %v618_v11 = vsel %vm5360_vm4, 0, %v537_v0  ;;  %v5498_v12 = vsel %vm5365_vm5, %v617_v8, 0  ;;  %v546_v14 = vshrl.u32 %v440_v5, 16 }
 0x103   : > { %3981 = vmatpush3.bf16.msra.mxu0 %v4565_v22  ;;  %1104 = vmatprep.mubr.bf16.mxu0 %v5478_v50  ;;  %v709_v18 = vor.u32 %v708_v6, %v704_v54  ;;  %v5502_v19 = vsel %vm5365_vm5, %v618_v11, 0  ;;  %v711_v20 = vshrl.u32 %v5498_v12, 16  ;;  %v713_v22 = vshll.u32 %v5498_v12, 16 }
 0x104   : > { %1322 = vmatmul.mubr.bf16.gmra.mrb[4].mxu1 %v5457_v17  ;;  %3982 = vmatprep.subr.bf16.mxu0 %v4567_v47  ;;  %v5510_v26 = vcombine.low %v695_v36, %v702_v63  ;;  %v718_v27 = vshrl.u32 %v5502_v19, 16  ;;  %v720_v28 = vshll.u32 %v5502_v19, 16  ;;  %v548_v33 = vrot.slane %v546_v14, 7  ;;  %v4574_v47 = vld [vmem:[#allocation8 + $0x128] sm:$0xff]  }
 0x105   : > { %1329 = vmatprep.mubr.bf16.mxu1 %v5474_v43  ;;  %4043 = vmatpush3.bf16.msra.mxu1 %v4562_v31  ;;  %v5514_v29 = vcombine.low %v702_v63, %v709_v18  ;;  %v715_v30 = vrot.slane %v713_v22, 1  ;;  %v541_v31 = vrot.slane %v539_v9, 7  ;;  %v553_v59 = vshrl.u32 %v441_v52, 16  ;;  %v4577_v9 = vld [vmem:[#allocation8 + $0x1b0] sm:$0xff]  }
 0x106   : > { %1105 = vmatmul.mubr.bf16.gmra.mrb[8].mxu0 %v5470_v38  ;;  %4044 = vmatprep.subr.bf16.mxu1 %v4564_v41  ;;  %v722_v36 = vrot.slane %v720_v28, 1  ;;  %v4572_v41 = vld [vmem:[#allocation8 + $0x168] sm:$0xff]   ;;  %v551_v54 = vor.u32 %v549_v40, %v548_v33  ;;  %v560_v63 = vshrl.u32 %v442_v53, 16  ;;  %v563_v0 = vshll.u32 %v442_v53, 16 }
 0x107   : > { %3983 = vmatpush3.bf16.msra.mxu0 %v4569_v58  ;;  %1112 = vmatprep.mubr.bf16.mxu0 %v5514_v29  ;;  %v716_v45 = vor.u32 %v715_v30, %v711_v20  ;;  %v544_v46 = vor.u32 %v542_v10, %v541_v31  ;;  %v555_v8 = vrot.slane %v553_v59, 7  ;;  %v5547_v20 = vcombine.low %v5447_v7, %v5466_v34  ;;  %v4580_v59 = vld [vmem:[#allocation8 + $0x178] sm:$0xff]  }
 0x108   : > { %3984 = vmatprep.subr.bf16.mxu0 %v4571_v15  ;;  %v5524_v58 = vor.u32 %v722_v36, %v718_v27  ;;  %v620_v5 = vsel %vm5360_vm4, 0, %v551_v54  ;;  %v4578_v15 = vld [vmem:[#allocation8 + $0x130] sm:$0xff]   ;;  %v5556_v30 = vcombine.low %v5498_v12, %v5502_v19  ;;  %v562_v33 = vrot.slane %v560_v63, 7  ;;  %v444_v36 = vld [vmem:[%s5321_s18 + $0x3c] sm:$0xf]  ;;  %v4579_v54 = vld [vmem:[#allocation8 + $0x1f8] sm:$0xff]  }
 0x109   : > { %4045 = vmatpush3.bf16.msra.mxu1 %v4566_v61  ;;  %v556_v61 = vshll.u32 %v441_v52, 16  ;;  %v619_v62 = vsel %vm5360_vm4, 0, %v544_v46  ;;  %v5541_v10 = vsel %vm5365_vm5, %v620_v5, 0  ;;  %v5552_v28 = vcombine.low %v709_v18, %v716_v45  ;;  %v4581_v5 = vld [vmem:[#allocation8 + $0x1b8] sm:$0xff]  }
 0x10a   : > { %4046 = vmatprep.subr.bf16.mxu1 %v4568_v2  ;;  %v4576_v2 = vld [vmem:[#allocation8 + $0x170] sm:$0xff]   ;;  %v5531_v4 = vcombine.low %v716_v45, %v5524_v58  ;;  %v5537_v6 = vsel %vm5365_vm5, %v619_v62, 0  ;;  %v732_v22 = vshrl.u32 %v5541_v10, 16  ;;  %v565_v53 = vor.u32 %v563_v0, %v562_v33 }
 0x10b   : > { %3985 = vmatpush3.bf16.msra.mxu0 %v4573_v35  ;;  %v725_v11 = vshrl.u32 %v5537_v6, 16  ;;  %v727_v14 = vshll.u32 %v5537_v6, 16  ;;  %v558_v27 = vor.u32 %v556_v61, %v555_v8  ;;  %v443_v35 = vld [vmem:[%s5321_s18 + $0x38] sm:$0xf]  ;;  %v574_v45 = vshrl.u32 %v444_v36, 16 }
 0x10c   : > { %1330 = vmatmul.mubr.bf16.gmra.mrb[8].mxu1 %v5508_v24  ;;  %3986 = vmatprep.subr.bf16.mxu0 %v4575_v44  ;;  %v567_v44 = vshrl.u32 %v443_v35, 16  ;;  %v570_v46 = vshll.u32 %v443_v35, 16  ;;  %v622_v63 = vsel %vm5360_vm4, 0, %v565_v53  ;;  %v793_v35 = vrot.slane %v5381_v56, 1  ;;  %v4584_v53 = vld [vmem:[#allocation8 + $0x240] sm:$0xff]   ;;  %v4597_v56 = vld [vmem:[#allocation8 + $0x298] sm:$0xff]  }
 0x10d   : > { %1337 = vmatprep.mubr.bf16.mxu1 %v5510_v26  ;;  %4047 = vmatpush3.bf16.msra.mxu1 %v4570_v23  ;;  %v734_v23 = vshll.u32 %v5541_v10, 16  ;;  %v729_v31 = vrot.slane %v727_v14, 1  ;;  %v577_v14 = vshll.u32 %v444_v36, 16  ;;  %s449_s18 = scalar_select %p448_p9, 1, 0 }
 0x10e   : > { %1113 = vmatmul.mubr.bf16.gmra.mrb[12].mxu0 %v5518_v39  ;;  %4048 = vmatprep.subr.bf16.mxu1 %v4572_v41  ;;  %v621_v41 = vsel %vm5360_vm4, 0, %v558_v27  ;;  %v569_v0 = vrot.slane %v567_v44, 7 }
 0x10f   : > { %1120 = vmatprep.mubr.bf16.mxu0 %v5531_v4  ;;  %3987 = vmatpush3.bf16.msra.mxu0 %v4577_v9  ;;  %v736_v40 = vrot.slane %v734_v23, 1  ;;  %v730_v52 = vor.u32 %v729_v31, %v725_v11  ;;  %v5564_v18 = vsel %vm5365_vm5, %v621_v41, 0  ;;  %v5577_v9 = vsel %vm5365_vm5, %v622_v63, 0  ;;  %s450_s4 = scvt.s32.f32 %s449_s18 }
 0x110   : > { %v739_v61 = vshrl.u32 %v5564_v18, 16  ;;  %v741_v62 = vshll.u32 %v5564_v18, 16  ;;  %3988 = vmatprep.subr.bf16.mxu0 %v4579_v54  ;;  %v746_v23 = vshrl.u32 %v5577_v9, 16  ;;  %v748_v27 = vshll.u32 %v5577_v9, 16 }
 0x111   : > { %4049 = vmatpush3.bf16.msra.mxu1 %v4574_v47  ;;  %v737_v47 = vor.u32 %v736_v40, %v732_v22  ;;  %v4582_v22 = vld [vmem:[#allocation8 + $0x138] sm:$0xff]   ;;  %v5583_v31 = vcombine.low %v5482_v51, %v5498_v12  ;;  %v5588_v36 = vcombine.low %v5524_v58, %v730_v52  ;;  %v5606_v58 = vcombine.low %v792_v37, %v793_v35 }
 0x112   : > { %4050 = vmatprep.subr.bf16.mxu1 %v4576_v2  ;;  %v576_v2 = vrot.slane %v574_v45, 7  ;;  %v743_v11 = vrot.slane %v741_v62, 1  ;;  %v750_v41 = vrot.slane %v748_v27, 1  ;;  %v5594_v45 = vcombine.low %v5537_v6, %v5541_v10 }
 0x113   : > { %v5573_v8 = vcombine.low %v730_v52, %v737_v47  ;;  %3989 = vmatpush3.bf16.msra.mxu0 %v4581_v5 }
 0x114   : > { %1338 = vmatmul.mubr.bf16.gmra.mrb[12].mxu1 %v5547_v20  ;;  %v579_v33 = vor.u32 %v577_v14, %v576_v2  ;;  %v744_v40 = vor.u32 %v743_v11, %v739_v61  ;;  %v751_v52 = vor.u32 %v750_v41, %v746_v23  ;;  %v5624_v23 = vcombine.low %v5502_v19, %v5537_v6 }
 0x115   : > { %1345 = vmatprep.mubr.bf16.mxu1 %v5552_v28  ;;  %4051 = vmatpush3.bf16.msra.mxu1 %v4578_v15  ;;  %v572_v15 = vor.u32 %v570_v46, %v569_v0  ;;  %v4583_v46 = vld [vmem:[#allocation8 + $0x2c0] sm:$0xff]   ;;  %v5633_v41 = vcombine.low %v5564_v18, %v5577_v9 }
 0x116   : > { %1121 = vmatmul.mubr.bf16.gmra.mrb[16].mxu0 %v5556_v30  ;;  %4052 = vmatprep.subr.bf16.mxu1 %v4580_v59  ;;  %v624_v54 = vsel %vm5360_vm4, 0, %v579_v33  ;;  %v5618_v5 = vcombine.low %v744_v40, %v751_v52  ;;  %v6007_v33 = vrot.slane %v5466_v34, 1 }
 0x117   : > { %1128 = vmatprep.mubr.bf16.mxu0 %v5573_v8  ;;  %v623_v44 = vsel %vm5360_vm4, 0, %v572_v15  ;;  %v5610_v61 = vsel %vm5365_vm5, %v624_v54, 0  ;;  %4102 = vmatprep.subr.bf16.mxu0 %v4583_v46  ;;  %v5628_v15 = vcombine.low %v737_v47, %v744_v40  ;;  %v801_v47 = vrot.slane %v5502_v19, 1 }
 0x118   : > { %v5600_v59 = vsel %vm5365_vm5, %v623_v44, 0  ;;  %v760_v0 = vshrl.u32 %v5610_v61, 16  ;;  %v762_v2 = vshll.u32 %v5610_v61, 16  ;;  %v799_v44 = vrot.slane %v5482_v51, 1 }
 0x119   : > { %4053 = vmatpush3.bf16.msra.mxu1 %v4582_v22  ;;  %v753_v62 = vshrl.u32 %v5600_v59, 16  ;;  %v755_v63 = vshll.u32 %v5600_v59, 16  ;;  %v5660_v19 = vcombine.low %v5541_v10, %v5564_v18 }
 0x11a   : > { %4166 = vmatprep.subr.bf16.mxu1 %v4584_v53  ;;  %v764_v14 = vrot.slane %v762_v2, 1  ;;  %v800_v53 = vrot.slane %v5498_v12, 1  ;;  %v5643_v54 = vcombine.low %v6007_v33, %v799_v44  ;;  %v803_v12 = vrot.slane %v5541_v10, 1  ;;  %v4593_v33 = vld [vmem:[#allocation8 + $0x290] sm:$0xff]  }
 0x11b   : > { %v757_v11 = vrot.slane %v755_v63, 1 }
 0x11c   : > { %1346 = vmatmul.mubr.bf16.gmra.mrb[16].mxu1 %v5583_v31  ;;  %v5626_v27 = vor.u32 %v764_v14, %v760_v0  ;;  %v5647_v40 = vcombine.low %v799_v44, %v800_v53  ;;  %v5651_v51 = vcombine.low %v800_v53, %v801_v47  ;;  %v804_v0 = vrot.slane %v5564_v18, 1 }
 0x11d   : > { %1353 = vmatprep.mubr.bf16.mxu1 %v5588_v36  ;;  %v758_v22 = vor.u32 %v757_v11, %v753_v62  ;;  %v802_v62 = vrot.slane %v5537_v6, 1  ;;  %v805_v6 = vrot.slane %v5577_v9, 1  ;;  %v6006_v44 = vrot.slane %v5600_v59, 1 }
 0x11e   : > { %1129 = vmatmul.mubr.bf16.gmra.mrb[20].mxu0 %v5594_v45  ;;  %v5667_v14 = vcombine.low %v803_v12, %v804_v0  ;;  %v5672_v53 = vcombine.low %v5600_v59, %v5610_v61  ;;  %v791_v18 = vrot.slane %v5406_v25, 1  ;;  %v4587_v25 = vld [vmem:[#allocation8 + $0x2c8] sm:$0xff]  }
 0x11f   : > { %1136 = vmatprep.mubr.bf16.mxu0 %v5618_v5  ;;  %v5637_v46 = vcombine.low %v758_v22, %v5626_v27  ;;  %v5655_v63 = vcombine.low %v801_v47, %v802_v62  ;;  %v5662_v2 = vcombine.low %v802_v62, %v803_v12  ;;  %v5665_v11 = vcombine.low %v751_v52, %v758_v22 }
 0x120   : > { %v5674_v47 = vcombine.low %v804_v0, %v805_v6  ;;  %v5678_v10 = vcombine.low %v805_v6, %v6006_v44  ;;  %v794_v52 = vrot.slane %v5401_v21, 1  ;;  %v795_v22 = vrot.slane %v5417_v32, 1  ;;  %v4585_v0 = vld [vmem:[#allocation8 + $0x280] sm:$0xff]   ;;  %v4589_v32 = vld [vmem:[#allocation8 + $0x288] sm:$0xff]  }
 0x121   : > { %v5689_v62 = vcombine.low %v5577_v9, %v5600_v59  ;;  %v3505_v12 = vcombine.low %v791_v18, %v792_v37  ;;  %v796_v21 = vrot.slane %v5442_v3, 1  ;;  %v797_v9 = vrot.slane %v5447_v7, 1  ;;  %v4586_v37 = vld [vmem:[#allocation8 + $0x200] sm:$0xff]   ;;  %v4588_v44 = vld [vmem:[#allocation8 + $0x248] sm:$0xff]   ;;  %v4595_v3 = vld [vmem:[#allocation8 + $0x2d8] sm:$0xff]  }
 0x122   : > { %v5693_v6 = vcombine.low %v794_v52, %v795_v22  ;;  %v5702_v18 = vcombine.low %v793_v35, %v794_v52  ;;  %v4590_v7 = vld [vmem:[#allocation8 + $0x208] sm:$0xff]   ;;  %v4599_v35 = vld [vmem:[#allocation8 + $0x2e0] sm:$0xff]  }
 0x123   : > { %v5710_v52 = vcombine.low %v795_v22, %v796_v21  ;;  %v4605_v22 = vld [vmem:[#allocation8 + $0x2a8] sm:$0xff]  }
 0x124   : > { %1354 = vmatmul.mubr.bf16.gmra.mrb[20].mxu1 %v5624_v23 }
 0x125   : > { %1361 = vmatprep.mubr.bf16.mxu1 %v5628_v15 }
 0x126   : > { %1137 = vmatmul.mubr.bf16.gmra.mrb[24].mxu0 %v5633_v41 }
 0x127   : > { %1144 = vmatprep.mubr.bf16.mxu0 %v5637_v46 }
 0x12c   : > { %1362 = vmatmul.mubr.bf16.gmra.mrb[24].mxu1 %v5660_v19 }
 0x12d   : > { %1369 = vmatprep.mubr.bf16.mxu1 %v5665_v11 }
 0x12e   : > { %1145 = vmatmul.mubr.bf16.gmra.mrb[28].mxu0 %v5672_v53 }
 0x12f   : > { %1680 = vmatprep.mubr.bf16.mxu0 %v5606_v58 }
 0x134   : > { %1370 = vmatmul.mubr.bf16.gmra.mrb[28].mxu1 %v5689_v62 }
 0x135   : > { %1889 = vmatprep.mubr.bf16.mxu1 %v3505_v12  ;;  %v5704_v12 = vcombine.low %v796_v21, %v797_v9  ;;  %v4607_v21 = vld [vmem:[#allocation8 + $0x2f0] sm:$0xff]  }
 0x136   : > { %1681 = vmatmul.mubr.bf16.vlgmr.msra.gmra.mrb[32].mxu0 %v5393_v16 }
 0x137   : > { %4103 = vmatpush3.bf16.msra.mxu0 %v4585_v0  ;;  %1688 = vmatprep.mubr.bf16.mxu0 %v5693_v6  ;;  %v4592_v0 = vld [vmem:[#allocation8 + $0x250] sm:$0xff]  }
 0x138   : > { %4104 = vmatprep.subr.bf16.mxu0 %v4587_v25  ;;  %v4596_v25 = vld [vmem:[#allocation8 + $0x258] sm:$0xff]  }
 0x13b   : > { %4105 = vmatpush3.bf16.msra.mxu0 %v4589_v32  ;;  %v4601_v32 = vld [vmem:[#allocation8 + $0x2a0] sm:$0xff]  }
 0x13c   : > { %1890 = vmatmul.mubr.bf16.vlgmr.msra.gmra.mrb[32].mxu1 %v5432_v60  ;;  %4106 = vmatprep.subr.bf16.mxu0 %v4591_v55  ;;  %v4594_v60 = vld [vmem:[#allocation8 + $0x210] sm:$0xff]   ;;  %v4603_v55 = vld [vmem:[#allocation8 + $0x2e8] sm:$0xff]  }
 0x13d   : > { %4167 = vmatpush3.bf16.msra.mxu1 %v4586_v37  ;;  %1897 = vmatprep.mubr.bf16.mxu1 %v5702_v18  ;;  %v6058_v37 = vrot.slane %v5466_v34, 1  ;;  %v4608_v34 = vld [vmem:[#allocation8 + $0x270] sm:$0xff]  }
 0x13e   : > { %1689 = vmatmul.mubr.bf16.gmra.mrb[36].mxu0 %v5436_v1  ;;  %4168 = vmatprep.subr.bf16.mxu1 %v4588_v44  ;;  %v4598_v44 = vld [vmem:[#allocation8 + $0x218] sm:$0xff]  }
 0x13f   : > { %1696 = vmatprep.mubr.bf16.mxu0 %v5704_v12  ;;  %4107 = vmatpush3.bf16.msra.mxu0 %v4593_v33  ;;  %v4600_v33 = vld [vmem:[#allocation8 + $0x260] sm:$0xff]  }
 0x140   : > { %4108 = vmatprep.subr.bf16.mxu0 %v4595_v3  ;;  %v5718_v3 = vcombine.low %v797_v9, %v6058_v37  ;;  %v4613_v9 = vld [vmem:[#allocation8 + $0x2b8] sm:$0xff]  }
 0x141   : > { %4169 = vmatpush3.bf16.msra.mxu1 %v4590_v7  ;;  %v4602_v7 = vld [vmem:[#allocation8 + $0x220] sm:$0xff]  }
 0x142   : > { %4170 = vmatprep.subr.bf16.mxu1 %v4592_v0  ;;  %v4604_v0 = vld [vmem:[#allocation8 + $0x268] sm:$0xff]  }
 0x143   : > { %4109 = vmatpush3.bf16.msra.mxu0 %v4597_v56  ;;  %v4609_v56 = vld [vmem:[#allocation8 + $0x2b0] sm:$0xff]  }
 0x144   : > { %1898 = vmatmul.mubr.bf16.gmra.mrb[36].mxu1 %v5430_v57  ;;  %4110 = vmatprep.subr.bf16.mxu0 %v4599_v35  ;;  %v4611_v35 = vld [vmem:[#allocation8 + $0x2f8] sm:$0xff]  }
 0x145   : > { %1905 = vmatprep.mubr.bf16.mxu1 %v5710_v52  ;;  %4171 = vmatpush3.bf16.msra.mxu1 %v4594_v60  ;;  %v4606_v60 = vld [vmem:[#allocation8 + $0x228] sm:$0xff]  }
 0x146   : > { %1697 = vmatmul.mubr.bf16.gmra.mrb[40].mxu0 %v5478_v50  ;;  %4172 = vmatprep.subr.bf16.mxu1 %v4596_v25  ;;  %v4615_v25 = vld [vmem:[#allocation8 + $0x3c0] sm:$0xff]  }
 0x147   : > { %1704 = vmatprep.mubr.bf16.mxu0 %v5643_v54  ;;  %4111 = vmatpush3.bf16.msra.mxu0 %v4601_v32  ;;  %v4610_v32 = vld [vmem:[#allocation8 + $0x230] sm:$0xff]  }
 0x148   : > { %4112 = vmatprep.subr.bf16.mxu0 %v4603_v55  ;;  %v4612_v55 = vld [vmem:[#allocation8 + $0x278] sm:$0xff]  }
 0x149   : > { %4173 = vmatpush3.bf16.msra.mxu1 %v4598_v44  ;;  %v4614_v44 = vld [vmem:[#allocation8 + $0x238] sm:$0xff]  }
 0x14a   : > { %4174 = vmatprep.subr.bf16.mxu1 %v4600_v33  ;;  %v4616_v33 = vld [vmem:[#allocation8 + $0x340] sm:$0xff]  }
 0x14b   : > { %4113 = vmatpush3.bf16.msra.mxu0 %v4605_v22  ;;  %v807_v22 = vrot.slane %v5610_v61, 1 }
 0x14c   : > { %1906 = vmatmul.mubr.bf16.gmra.mrb[40].mxu1 %v5474_v43  ;;  %4114 = vmatprep.subr.bf16.mxu0 %v4607_v21  ;;  %v6059_v21 = vrot.slane %v5600_v59, 1  ;;  %v4617_v59 = vld [vmem:[#allocation8 + $0x380] sm:$0xff]  }
 0x14d   : > { %1913 = vmatprep.mubr.bf16.mxu1 %v5718_v3  ;;  %4175 = vmatpush3.bf16.msra.mxu1 %v4602_v7  ;;  %v4619_v7 = vld [vmem:[#allocation8 + $0x3c8] sm:$0xff]  }
 0x14e   : > { %1705 = vmatmul.mubr.bf16.gmra.mrb[44].mxu0 %v5514_v29  ;;  %4176 = vmatprep.subr.bf16.mxu1 %v4604_v0  ;;  %v5737_v37 = vcombine.low %v6059_v21, %v807_v22  ;;  %v456_v0 = vld [vmem:[%s369_s21] sm:$0xf] }
 0x14f   : > { %1712 = vmatprep.mubr.bf16.mxu0 %v5651_v51  ;;  %4115 = vmatpush3.bf16.msra.mxu0 %v4609_v56  ;;  %v4621_v56 = vld [vmem:[#allocation8 + $0x388] sm:$0xff]   ;;  %v4629_v21 = vld [vmem:[#allocation8 + $0x398] sm:$0xff]  }
 0x150   : > { %4116 = vmatprep.subr.bf16.mxu0 %v4611_v35  ;;  %v4623_v35 = vld [vmem:[#allocation8 + $0x3d0] sm:$0xff]  }
 0x151   : > { %4177 = vmatpush3.bf16.msra.mxu1 %v4606_v60  ;;  %v4618_v60 = vld [vmem:[#allocation8 + $0x300] sm:$0xff]  }
 0x152   : > { %4178 = vmatprep.subr.bf16.mxu1 %v4608_v34  ;;  %v457_v34 = vunpack.c.l.bf16 %v456_v0  ;;  %v4628_v0 = vld [vmem:[#allocation8 + $0x358] sm:$0xff]  }
 0x153   : > { %4117 = vmatpush3.bf16.msra.mxu0 %v4613_v9  ;;  %v4620_v9 = vld [vmem:[#allocation8 + $0x348] sm:$0xff]  }
 0x154   : > { %1914 = vmatmul.mubr.bf16.gmra.mrb[44].mxu1 %v5510_v26  ;;  %4230 = vmatprep.subr.bf16.mxu0 %v4615_v25  ;;  %v458_v25 = vstv %s450_s4 }
 0x155   : > { %1921 = vmatprep.mubr.bf16.mxu1 %v5647_v40  ;;  %4179 = vmatpush3.bf16.msra.mxu1 %v4610_v32  ;;  %v4625_v32 = vld [vmem:[#allocation8 + $0x390] sm:$0xff]  }
 0x156   : > { %1713 = vmatmul.mubr.bf16.gmra.mrb[48].mxu0 %v5531_v4  ;;  %4180 = vmatprep.subr.bf16.mxu1 %v4612_v55  ;;  %v4627_v55 = vld [vmem:[#allocation8 + $0x3d8] sm:$0xff]  }
 0x157   : > { %1720 = vmatprep.mubr.bf16.mxu0 %v5662_v2 }
 0x159   : > { %4181 = vmatpush3.bf16.msra.mxu1 %v4614_v44  ;;  %v459_v44 = vmul.f32 %v458_v25, %v457_v34  ;;  %v4632_v34 = vld [vmem:[#allocation8 + $0x360] sm:$0xff]   ;;  %v4639_v25 = vld [vmem:[#allocation8 + $0x3f0] sm:$0xff]  }
 0x15a   : > { %4294 = vmatprep.subr.bf16.mxu1 %v4616_v33  ;;  %v4624_v33 = vld [vmem:[#allocation8 + $0x350] sm:$0xff]  }
 0x15c   : > { %1922 = vmatmul.mubr.bf16.gmra.mrb[48].mxu1 %v5552_v28 }
 0x15d   : > { %1929 = vmatprep.mubr.bf16.mxu1 %v5655_v63 }
 0x15e   : > { %1721 = vmatmul.mubr.bf16.gmra.mrb[52].mxu0 %v5573_v8 }
 0x15f   : > { %1728 = vmatprep.mubr.bf16.mxu0 %v5674_v47 }
 0x164   : > { %1930 = vmatmul.mubr.bf16.gmra.mrb[52].mxu1 %v5588_v36 }
 0x165   : > { %1937 = vmatprep.mubr.bf16.mxu1 %v5667_v14 }
 0x166   : > { %1729 = vmatmul.mubr.bf16.gmra.mrb[56].mxu0 %v5618_v5 }
 0x167   : > { %1736 = vmatprep.mubr.bf16.mxu0 %v5737_v37 }
 0x16c   : > { %1938 = vmatmul.mubr.bf16.gmra.mrb[56].mxu1 %v5628_v15 }
 0x16d   : > { %1945 = vmatprep.mubr.bf16.mxu1 %v5678_v10 }
 0x16e   : > { %1737 = vmatmul.mubr.bf16.gmra.mrb[60].mxu0 %v5637_v46 }
 0x16f   : > { %2245 = vmatprep.mubr.bf16.mxu0 %v5430_v57 }
 0x174   : > { %1946 = vmatmul.mubr.bf16.gmra.mrb[60].mxu1 %v5665_v11 }
 0x175   : > { %2438 = vmatprep.mubr.bf16.mxu1 %v5393_v16 }
 0x176   : > { %2246 = vmatmul.mubr.bf16.vlgmr.msra.gmra.mrb[64].mxu0 %v5457_v17  ;;  %v4622_v17 = vld [vmem:[#allocation8 + $0x308] sm:$0xff]  }
 0x177   : > { %4231 = vmatpush3.bf16.msra.mxu0 %v4617_v59  ;;  %2253 = vmatprep.mubr.bf16.mxu0 %v5474_v43  ;;  %v4631_v59 = vld [vmem:[#allocation8 + $0x3e0] sm:$0xff]  }
 0x178   : > { %4232 = vmatprep.subr.bf16.mxu0 %v4619_v7  ;;  %v4626_v7 = vld [vmem:[#allocation8 + $0x310] sm:$0xff]  }
 0x17b   : > { %4233 = vmatpush3.bf16.msra.mxu0 %v4621_v56  ;;  %v4633_v56 = vld [vmem:[#allocation8 + $0x3a0] sm:$0xff]  }
 0x17c   : > { %2439 = vmatmul.mubr.bf16.vlgmr.msra.gmra.mrb[64].mxu1 %v5389_v13  ;;  %4234 = vmatprep.subr.bf16.mxu0 %v4623_v35  ;;  %v460_v13 = vpack.c.bf16 %v459_v44, %v459_v44  ;;  %v4635_v35 = vld [vmem:[#allocation8 + $0x3e8] sm:$0xff]   ;;  %v4641_v44 = vld [vmem:[#allocation8 + $0x3b0] sm:$0xff]  }
 0x17d   : > { %4295 = vmatpush3.bf16.msra.mxu1 %v4618_v60  ;;  %2446 = vmatprep.mubr.bf16.mxu1 %v5436_v1 }
 0x17e   : > { %2254 = vmatmul.mubr.bf16.gmra.mrb[68].mxu0 %v5508_v24  ;;  %4296 = vmatprep.subr.bf16.mxu1 %v4620_v9  ;;  %v4630_v24 = vld [vmem:[#allocation8 + $0x318] sm:$0xff]   ;;  %v581_v60 = vshrl.u32 %v460_v13, 16  ;;  %v4637_v9 = vld [vmem:[#allocation8 + $0x3a8] sm:$0xff]  }
 0x17f   : > { %2261 = vmatprep.mubr.bf16.mxu0 %v5510_v26  ;;  %4235 = vmatpush3.bf16.msra.mxu0 %v4625_v32  ;;  %v4634_v32 = vld [vmem:[#allocation8 + $0x320] sm:$0xff]  }
 0x180   : > { %4236 = vmatprep.subr.bf16.mxu0 %v4627_v55  ;;  %v584_v55 = vshll.u32 %v460_v13, 16  ;;  %v4642_v13 = vld [vmem:[#allocation8 + $0x330] sm:$0xff]  }
 0x181   : > { %4297 = vmatpush3.bf16.msra.mxu1 %v4622_v17  ;;  %v4636_v17 = vld [vmem:[#allocation8 + $0x368] sm:$0xff]  }
 0x182   : > { %4298 = vmatprep.subr.bf16.mxu1 %v4624_v33  ;;  %v4638_v33 = vld [vmem:[#allocation8 + $0x328] sm:$0xff]  }
 0x183   : > { %4237 = vmatpush3.bf16.msra.mxu0 %v4629_v21 }
 0x184   : > { %2447 = vmatmul.mubr.bf16.gmra.mrb[68].mxu1 %v5426_v49  ;;  %4238 = vmatprep.subr.bf16.mxu0 %v4631_v59  ;;  %v583_v49 = vrot.slane %v581_v60, 7  ;;  %v4640_v59 = vld [vmem:[#allocation8 + $0x370] sm:$0xff]  }
 0x185   : > { %2454 = vmatprep.mubr.bf16.mxu1 %v5478_v50  ;;  %4299 = vmatpush3.bf16.msra.mxu1 %v4626_v7  ;;  %v4645_v7 = vld [vmem:[#allocation8 + $0x3b8] sm:$0xff]  }
 0x186   : > { %2262 = vmatmul.mubr.bf16.gmra.mrb[72].mxu0 %v5547_v20  ;;  %4300 = vmatprep.subr.bf16.mxu1 %v4628_v0  ;;  %v4643_v20 = vld [vmem:[#allocation8 + $0x3f8] sm:$0xff]   ;;  %v586_v21 = vor.u32 %v584_v55, %v583_v49 }
 0x187   : > { %2269 = vmatprep.mubr.bf16.mxu0 %v5552_v28  ;;  %4239 = vmatpush3.bf16.msra.mxu0 %v4633_v56  ;;  %v4644_v0 = vld [vmem:[#allocation8 + $0x378] sm:$0xff]  }
 0x188   : > { %4240 = vmatprep.subr.bf16.mxu0 %v4635_v35  ;;  %v4646_v56 = vld [vmem:[#allocation8 + $0x338] sm:$0xff]  }
 0x189   : > { %4301 = vmatpush3.bf16.msra.mxu1 %v4630_v24 }
 0x18a   : > { %4302 = vmatprep.subr.bf16.mxu1 %v4632_v34 }
 0x18b   : > { %4241 = vmatpush3.bf16.msra.mxu0 %v4637_v9 }
 0x18c   : > { %2455 = vmatmul.mubr.bf16.gmra.mrb[72].mxu1 %v5470_v38  ;;  %4242 = vmatprep.subr.bf16.mxu0 %v4639_v25  ;;  %v625_v38 = vsel %vm5360_vm4, 0, %v586_v21 }
 0x18d   : > { %2462 = vmatprep.mubr.bf16.mxu1 %v5514_v29  ;;  %4303 = vmatpush3.bf16.msra.mxu1 %v4634_v32 }
 0x18e   : > { %2270 = vmatmul.mubr.bf16.gmra.mrb[76].mxu0 %v5583_v31  ;;  %4304 = vmatprep.subr.bf16.mxu1 %v4636_v17  ;;  %v5771_v31 = vsel %vm5365_vm5, %v625_v38, 0 }
 0x18f   : > { %2277 = vmatprep.mubr.bf16.mxu0 %v5588_v36  ;;  %4243 = vmatpush3.bf16.msra.mxu0 %v4641_v44  ;;  %v769_v42 = vshll.u32 %v5771_v31, 16  ;;  %v767_v35 = vshrl.u32 %v5771_v31, 16 }
 0x190   : > { %4244 = vmatprep.subr.bf16.mxu0 %v4643_v20 }
 0x191   : > { %4305 = vmatpush3.bf16.msra.mxu1 %v4638_v33  ;;  %v771_v24 = vrot.slane %v769_v42, 1 }
 0x192   : > { %4306 = vmatprep.subr.bf16.mxu1 %v4640_v59 }
 0x193   : > { %4245 = vmatpush3.bf16.msra.mxu0 %v4645_v7  ;;  %v772_v48 = vor.u32 %v771_v24, %v767_v35 }
 0x194   : > { %2463 = vmatmul.mubr.bf16.gmra.mrb[76].mxu1 %v5518_v39 }
 0x195   : > { %2470 = vmatprep.mubr.bf16.mxu1 %v5531_v4  ;;  %4307 = vmatpush3.bf16.msra.mxu1 %v4642_v13  ;;  %v5783_v39 = vcombine.low %v5626_v27, %v772_v48  ;;  %v808_v13 = vrot.slane %v5771_v31, 1 }
 0x196   : > { %2278 = vmatmul.mubr.bf16.gmra.mrb[80].mxu0 %v5624_v23  ;;  %4308 = vmatprep.subr.bf16.mxu1 %v4644_v0 }
 0x197   : > { %2285 = vmatprep.mubr.bf16.mxu0 %v5628_v15 }
 0x199   : > { %4309 = vmatpush3.bf16.msra.mxu1 %v4646_v56 }
 0x19c   : > { %2471 = vmatmul.mubr.bf16.gmra.mrb[80].mxu1 %v5556_v30  ;;  %v3545_v30 = vcombine.low %v5610_v61, %v5771_v31  ;;  %v3595_v31 = vcombine.low %v807_v22, %v808_v13 }
 0x19d   : > { %2478 = vmatprep.mubr.bf16.mxu1 %v5573_v8 }
 0x19e   : > { %2286 = vmatmul.mubr.bf16.gmra.mrb[84].mxu0 %v5660_v19 }
 0x19f   : > { %2293 = vmatprep.mubr.bf16.mxu0 %v5665_v11 }
 0x1a4   : > { %2479 = vmatmul.mubr.bf16.gmra.mrb[84].mxu1 %v5594_v45 }
 0x1a5   : > { %2486 = vmatprep.mubr.bf16.mxu1 %v5618_v5 }
 0x1a6   : > { %2294 = vmatmul.mubr.bf16.gmra.mrb[88].mxu0 %v5689_v62 }
 0x1a7   : > { %2301 = vmatprep.mubr.bf16.mxu0 %v5783_v39 }
 0x1ac   : > { %2487 = vmatmul.mubr.bf16.gmra.mrb[88].mxu1 %v5633_v41 }
 0x1ad   : > { %2494 = vmatprep.mubr.bf16.mxu1 %v5637_v46 }
 0x1ae   : > { %2302 = vmatmul.mubr.bf16.gmra.mrb[92].mxu0 %v3545_v30 }
 0x1af   : > { %2792 = vmatprep.mubr.bf16.mxu0 %v5702_v18 }
 0x1b4   : > { %2495 = vmatmul.mubr.bf16.gmra.mrb[92].mxu1 %v5672_v53 }
 0x1b5   : > { %2985 = vmatprep.mubr.bf16.mxu1 %v5606_v58 }
 0x1b6   : > { %2793 = vmatmul.mubr.bf16.vlgmr.msra.gmra.mrb[96].mxu0 %v5430_v57 }
 0x1b7   : > { %2800 = vmatprep.mubr.bf16.mxu0 %v5710_v52 }
 0x1bc   : > { %2986 = vmatmul.mubr.bf16.vlgmr.msra.gmra.mrb[96].mxu1 %v5393_v16 }
 0x1bd   : > { %2993 = vmatprep.mubr.bf16.mxu1 %v5693_v6 }
 0x1be   : > { %2801 = vmatmul.mubr.bf16.gmra.mrb[100].mxu0 %v5474_v43 }
 0x1bf   : > { %2808 = vmatprep.mubr.bf16.mxu0 %v5718_v3 }
 0x1c4   : > { %2994 = vmatmul.mubr.bf16.gmra.mrb[100].mxu1 %v5436_v1 }
 0x1c5   : > { %3001 = vmatprep.mubr.bf16.mxu1 %v5704_v12 }
 0x1c6   : > { %2809 = vmatmul.mubr.bf16.gmra.mrb[104].mxu0 %v5510_v26 }
 0x1c7   : > { %2816 = vmatprep.mubr.bf16.mxu0 %v5647_v40 }
 0x1c9   : > { %v3862_v45 = vpop.f32.mrb[0].mxu0 }
 0x1ca   : > { %v3863_v58 = vpop.f32.mrb[1].mxu0 }
 0x1cb   : > { %v3864_v57 = vadd.f32 %v3863_v58, %v3862_v45  ;;  %v3865_v23 = vpop.f32.mrb[2].mxu0 }
 0x1cc   : > { %v3866_v27 = vpop.f32.mrb[3].mxu0  ;;  %3002 = vmatmul.mubr.bf16.gmra.mrb[104].mxu1 %v5478_v50 }
 0x1cd   : > { %v3867_v16 = vadd.f32 %v3866_v27, %v3865_v23  ;;  %3009 = vmatprep.mubr.bf16.mxu1 %v5643_v54 }
 0x1ce   : > { %2817 = vmatmul.mubr.bf16.gmra.mrb[108].mxu0 %v5552_v28 }
 0x1cf   : > { %v3926_v43 = vpop.f32.mrb[0].mxu1  ;;  %2824 = vmatprep.mubr.bf16.mxu0 %v5655_v63 }
 0x1d0   : > { %v3927_v1 = vpop.f32.mrb[1].mxu1 }
 0x1d1   : > { %v3928_v41 = vadd.f32 %v3927_v1, %v3926_v43  ;;  %v3929_v26 = vpop.f32.mrb[2].mxu1  ;;  %v3868_v19 = vpop.f32.mrb[4].mxu0 }
 0x1d2   : > { %v3930_v53 = vpop.f32.mrb[3].mxu1  ;;  %v3869_v62 = vpop.f32.mrb[5].mxu0 }
 0x1d3   : > { %v1316_v40 = vadd.f32 %v3928_v41, %v3864_v57  ;;  %v3931_v6 = vadd.f32 %v3930_v53, %v3929_v26  ;;  %v3870_v18 = vadd.f32 %v3869_v62, %v3868_v19  ;;  %v3871_v12 = vpop.f32.mrb[6].mxu0 }
 0x1d4   : > { %3010 = vmatmul.mubr.bf16.gmra.mrb[108].mxu1 %v5514_v29  ;;  %v3872_v50 = vpop.f32.mrb[7].mxu0 }
 0x1d5   : > { %v1319_v54 = vadd.f32 %v3931_v6, %v3867_v16  ;;  %v3873_v52 = vadd.f32 %v3872_v50, %v3871_v12  ;;  %3017 = vmatprep.mubr.bf16.mxu1 %v5651_v51  ;;  %v1400_v28 = vmul.f32 %v1316_v40, %v1316_v40 }
 0x1d6   : > { %2825 = vmatmul.mubr.bf16.gmra.mrb[112].mxu0 %v5588_v36 }
 0x1d7   : > { %v1378_v63 = vadd.f32 %v1319_v54, %v1316_v40  ;;  %v1401_v3 = vmul.f32 %v1319_v54, %v1319_v54  ;;  %v3658_v60 = vpack.c.bf16 %v1319_v54, %v1316_v40  ;;  %v3932_v34 = vpop.f32.mrb[4].mxu1  ;;  %2832 = vmatprep.mubr.bf16.mxu0 %v5667_v14 }
 0x1d8   : > { %v3933_v9 = vpop.f32.mrb[5].mxu1 }
 0x1d9   : > { %v1416_v25 = vadd.f32 %v1401_v3, %v1400_v28  ;;  %3659 = vst [vmem:[%s5349_s11] sm:$0xff] %v3658_v60   ;;  %v3934_v32 = vadd.f32 %v3933_v9, %v3932_v34  ;;  %v3935_v49 = vpop.f32.mrb[6].mxu1  ;;  %v3874_v29 = vpop.f32.mrb[8].mxu0 }
 0x1da   : > { %v3936_v55 = vpop.f32.mrb[7].mxu1  ;;  %v3875_v17 = vpop.f32.mrb[9].mxu0 }
 0x1db   : > { %v1324_v44 = vadd.f32 %v3934_v32, %v3870_v18  ;;  %v3937_v20 = vadd.f32 %v3936_v55, %v3935_v49  ;;  %v3876_v51 = vadd.f32 %v3875_v17, %v3874_v29  ;;  %v3877_v33 = vpop.f32.mrb[10].mxu0 }
 0x1dc   : > { %3018 = vmatmul.mubr.bf16.gmra.mrb[112].mxu1 %v5531_v4  ;;  %v3878_v36 = vpop.f32.mrb[11].mxu0 }
 0x1dd   : > { %v1379_v21 = vadd.f32 %v1378_v63, %v1324_v44  ;;  %v1402_v59 = vmul.f32 %v1324_v44, %v1324_v44  ;;  %v1327_v7 = vadd.f32 %v3937_v20, %v3873_v52  ;;  %v3879_v14 = vadd.f32 %v3878_v36, %v3877_v33  ;;  %3025 = vmatprep.mubr.bf16.mxu1 %v5662_v2 }
 0x1de   : > { %2833 = vmatmul.mubr.bf16.gmra.mrb[116].mxu0 %v5628_v15 }
 0x1df   : > { %v1417_v38 = vadd.f32 %v1416_v25, %v1402_v59  ;;  %v1380_v0 = vadd.f32 %v1379_v21, %v1327_v7  ;;  %v1403_v56 = vmul.f32 %v1327_v7, %v1327_v7  ;;  %v3663_v42 = vpack.c.bf16 %v1327_v7, %v1324_v44  ;;  %v3938_v35 = vpop.f32.mrb[8].mxu1  ;;  %2840 = vmatprep.mubr.bf16.mxu0 %v5678_v10 }
 0x1e0   : > { %v3939_v4 = vpop.f32.mrb[9].mxu1 }
 0x1e1   : > { %v1418_v24 = vadd.f32 %v1417_v38, %v1403_v56  ;;  %3815 = vst [vmem:[%s5349_s11 + $0x8] sm:$0xff] %v3663_v42   ;;  %v3940_v48 = vadd.f32 %v3939_v4, %v3938_v35  ;;  %v3941_v30 = vpop.f32.mrb[10].mxu1  ;;  %v3880_v45 = vpop.f32.mrb[12].mxu0 }
 0x1e2   : > { %v3942_v58 = vpop.f32.mrb[11].mxu1  ;;  %v3881_v57 = vpop.f32.mrb[13].mxu0 }
 0x1e3   : > { %v1332_v2 = vadd.f32 %v3940_v48, %v3876_v51  ;;  %v3943_v23 = vadd.f32 %v3942_v58, %v3941_v30  ;;  %v3882_v15 = vadd.f32 %v3881_v57, %v3880_v45  ;;  %v3883_v27 = vpop.f32.mrb[14].mxu0 }
 0x1e4   : > { %3026 = vmatmul.mubr.bf16.gmra.mrb[116].mxu1 %v5573_v8  ;;  %v3884_v16 = vpop.f32.mrb[15].mxu0 }
 0x1e5   : > { %v1381_v10 = vadd.f32 %v1380_v0, %v1332_v2  ;;  %v1404_v43 = vmul.f32 %v1332_v2, %v1332_v2  ;;  %v1335_v1 = vadd.f32 %v3943_v23, %v3879_v14  ;;  %v3885_v41 = vadd.f32 %v3884_v16, %v3883_v27  ;;  %3033 = vmatprep.mubr.bf16.mxu1 %v5674_v47 }
 0x1e6   : > { %2841 = vmatmul.mubr.bf16.gmra.mrb[120].mxu0 %v5665_v11 }
 0x1e7   : > { %v1419_v26 = vadd.f32 %v1418_v24, %v1404_v43  ;;  %v1382_v19 = vadd.f32 %v1381_v10, %v1335_v1  ;;  %v1405_v53 = vmul.f32 %v1335_v1, %v1335_v1  ;;  %v3668_v62 = vpack.c.bf16 %v1335_v1, %v1332_v2  ;;  %v3944_v40 = vpop.f32.mrb[12].mxu1  ;;  %2848 = vmatprep.mubr.bf16.mxu0 %v3595_v31 }
 0x1e8   : > { %v3945_v61 = vpop.f32.mrb[13].mxu1 }
 0x1e9   : > { %v1420_v22 = vadd.f32 %v1419_v26, %v1405_v53  ;;  %3816 = vst [vmem:[%s5349_s11 + $0x10] sm:$0xff] %v3668_v62   ;;  %v3946_v8 = vadd.f32 %v3945_v61, %v3944_v40  ;;  %v3947_v6 = vpop.f32.mrb[14].mxu1  ;;  %v3886_v18 = vpop.f32.mrb[16].mxu0 }
 0x1ea   : > { %v3948_v12 = vpop.f32.mrb[15].mxu1  ;;  %v3887_v50 = vpop.f32.mrb[17].mxu0 }
 0x1eb   : > { %v1340_v54 = vadd.f32 %v3946_v8, %v3882_v15  ;;  %v3949_v52 = vadd.f32 %v3948_v12, %v3947_v6  ;;  %v3888_v28 = vadd.f32 %v3887_v50, %v3886_v18  ;;  %v3889_v47 = vpop.f32.mrb[18].mxu0 }
 0x1ec   : > { %3034 = vmatmul.mubr.bf16.gmra.mrb[120].mxu1 %v5618_v5  ;;  %v3890_v11 = vpop.f32.mrb[19].mxu0 }
 0x1ed   : > { %v1383_v63 = vadd.f32 %v1382_v19, %v1340_v54  ;;  %v1406_v3 = vmul.f32 %v1340_v54, %v1340_v54  ;;  %v1343_v60 = vadd.f32 %v3949_v52, %v3885_v41  ;;  %v3891_v34 = vadd.f32 %v3890_v11, %v3889_v47  ;;  %3041 = vmatprep.mubr.bf16.mxu1 %v5737_v37 }
 0x1ee   : > { %2849 = vmatmul.mubr.bf16.gmra.mrb[124].mxu0 %v5783_v39 }
 0x1ef   : > { %v1421_v9 = vadd.f32 %v1420_v22, %v1406_v3  ;;  %v1384_v25 = vadd.f32 %v1383_v63, %v1343_v60  ;;  %v1407_v32 = vmul.f32 %v1343_v60, %v1343_v60  ;;  %v3673_v49 = vpack.c.bf16 %v1343_v60, %v1340_v54  ;;  %v3950_v29 = vpop.f32.mrb[16].mxu1 }
 0x1f0   : > { %v3951_v55 = vpop.f32.mrb[17].mxu1 }
 0x1f1   : > { %v1422_v17 = vadd.f32 %v1421_v9, %v1407_v32  ;;  %3817 = vst [vmem:[%s5349_s11 + $0x18] sm:$0xff] %v3673_v49   ;;  %v3952_v44 = vadd.f32 %v3951_v55, %v3950_v29  ;;  %v3953_v20 = vpop.f32.mrb[18].mxu1  ;;  %v3892_v5 = vpop.f32.mrb[20].mxu0 }
 0x1f2   : > { %v3954_v51 = vpop.f32.mrb[19].mxu1  ;;  %v3893_v33 = vpop.f32.mrb[21].mxu0 }
 0x1f3   : > { %v1348_v36 = vadd.f32 %v3952_v44, %v3888_v28  ;;  %v3955_v21 = vadd.f32 %v3954_v51, %v3953_v20  ;;  %v3894_v59 = vadd.f32 %v3893_v33, %v3892_v5  ;;  %v3895_v37 = vpop.f32.mrb[22].mxu0 }
 0x1f4   : > { %3042 = vmatmul.mubr.bf16.gmra.mrb[124].mxu1 %v5637_v46  ;;  %v3896_v39 = vpop.f32.mrb[23].mxu0 }
 0x1f5   : > { %v1385_v7 = vadd.f32 %v1384_v25, %v1348_v36  ;;  %v1408_v14 = vmul.f32 %v1348_v36, %v1348_v36  ;;  %v1351_v13 = vadd.f32 %v3955_v21, %v3891_v34  ;;  %v3897_v38 = vadd.f32 %v3896_v39, %v3895_v37 }
 0x1f7   : > { %v1423_v0 = vadd.f32 %v1422_v17, %v1408_v14  ;;  %v1386_v56 = vadd.f32 %v1385_v7, %v1351_v13  ;;  %v1409_v42 = vmul.f32 %v1351_v13, %v1351_v13  ;;  %v3678_v35 = vpack.c.bf16 %v1351_v13, %v1348_v36  ;;  %v3956_v4 = vpop.f32.mrb[20].mxu1 }
 0x1f8   : > { %v3957_v24 = vpop.f32.mrb[21].mxu1 }
 0x1f9   : > { %v1424_v48 = vadd.f32 %v1423_v0, %v1409_v42  ;;  %3818 = vst [vmem:[%s5349_s11 + $0x20] sm:$0xff] %v3678_v35   ;;  %v3958_v30 = vadd.f32 %v3957_v24, %v3956_v4  ;;  %v3959_v45 = vpop.f32.mrb[22].mxu1  ;;  %v3898_v58 = vpop.f32.mrb[24].mxu0 }
 0x1fa   : > { %v3960_v57 = vpop.f32.mrb[23].mxu1  ;;  %v3899_v2 = vpop.f32.mrb[25].mxu0 }
 0x1fb   : > { %v1356_v23 = vadd.f32 %v3958_v30, %v3894_v59  ;;  %v3961_v46 = vadd.f32 %v3960_v57, %v3959_v45  ;;  %v3900_v15 = vadd.f32 %v3899_v2, %v3898_v58  ;;  %v3901_v27 = vpop.f32.mrb[26].mxu0 }
 0x1fc   : > { %v3902_v31 = vpop.f32.mrb[27].mxu0 }
 0x1fd   : > { %v1387_v16 = vadd.f32 %v1386_v56, %v1356_v23  ;;  %v1410_v10 = vmul.f32 %v1356_v23, %v1356_v23  ;;  %v1359_v43 = vadd.f32 %v3961_v46, %v3897_v38  ;;  %v3903_v1 = vadd.f32 %v3902_v31, %v3901_v27 }
 0x1ff   : > { %v1425_v41 = vadd.f32 %v1424_v48, %v1410_v10  ;;  %v1388_v26 = vadd.f32 %v1387_v16, %v1359_v43  ;;  %v1411_v19 = vmul.f32 %v1359_v43, %v1359_v43  ;;  %v3683_v53 = vpack.c.bf16 %v1359_v43, %v1356_v23  ;;  %v3962_v62 = vpop.f32.mrb[24].mxu1 }
 0x200   : > { %v3963_v40 = vpop.f32.mrb[25].mxu1 }
 0x201   : > { %v1426_v61 = vadd.f32 %v1425_v41, %v1411_v19  ;;  %3819 = vst [vmem:[%s5349_s11 + $0x28] sm:$0xff] %v3683_v53   ;;  %v3964_v22 = vadd.f32 %v3963_v40, %v3962_v62  ;;  %v3965_v8 = vpop.f32.mrb[26].mxu1  ;;  %v3904_v6 = vpop.f32.mrb[28].mxu0 }
 0x202   : > { %v3966_v18 = vpop.f32.mrb[27].mxu1  ;;  %v3905_v12 = vpop.f32.mrb[29].mxu0 }
 0x203   : > { %v1364_v50 = vadd.f32 %v3964_v22, %v3900_v15  ;;  %v3967_v54 = vadd.f32 %v3966_v18, %v3965_v8  ;;  %v3906_v52 = vadd.f32 %v3905_v12, %v3904_v6  ;;  %v3907_v28 = vpop.f32.mrb[30].mxu0 }
 0x204   : > { %v3908_v47 = vpop.f32.mrb[31].mxu0 }
 0x205   : > { %v1389_v11 = vadd.f32 %v1388_v26, %v1364_v50  ;;  %v1412_v63 = vmul.f32 %v1364_v50, %v1364_v50  ;;  %v1367_v3 = vadd.f32 %v3967_v54, %v3903_v1  ;;  %v3909_v60 = vadd.f32 %v3908_v47, %v3907_v28 }
 0x207   : > { %v1427_v34 = vadd.f32 %v1426_v61, %v1412_v63  ;;  %v1390_v9 = vadd.f32 %v1389_v11, %v1367_v3  ;;  %v1413_v25 = vmul.f32 %v1367_v3, %v1367_v3  ;;  %v3688_v32 = vpack.c.bf16 %v1367_v3, %v1364_v50  ;;  %v3968_v49 = vpop.f32.mrb[28].mxu1 }
 0x208   : > { %v3969_v29 = vpop.f32.mrb[29].mxu1 }
 0x209   : > { %v1428_v55 = vadd.f32 %v1427_v34, %v1413_v25  ;;  %3820 = vst [vmem:[%s5349_s11 + $0x30] sm:$0xff] %v3688_v32   ;;  %v3970_v17 = vadd.f32 %v3969_v29, %v3968_v49  ;;  %v3971_v44 = vpop.f32.mrb[30].mxu1  ;;  %v3990_v20 = vpop.f32.mrb[32].mxu0 }
 0x20a   : > { %v3972_v5 = vpop.f32.mrb[31].mxu1  ;;  %v3991_v51 = vpop.f32.mrb[33].mxu0 }
 0x20b   : > { %v1372_v33 = vadd.f32 %v3970_v17, %v3906_v52  ;;  %v3973_v36 = vadd.f32 %v3972_v5, %v3971_v44  ;;  %v3992_v21 = vadd.f32 %v3991_v51, %v3990_v20  ;;  %v3993_v59 = vpop.f32.mrb[34].mxu0 }
 0x20c   : > { %v3994_v37 = vpop.f32.mrb[35].mxu0 }
 0x20d   : > { %v1391_v39 = vadd.f32 %v1390_v9, %v1372_v33  ;;  %v1414_v7 = vmul.f32 %v1372_v33, %v1372_v33  ;;  %v1375_v14 = vadd.f32 %v3973_v36, %v3909_v60  ;;  %v3995_v13 = vadd.f32 %v3994_v37, %v3993_v59 }
 0x20f   : > { %v1429_v38 = vadd.f32 %v1428_v55, %v1414_v7  ;;  %v5835_v0 = vadd.f32 %v1391_v39, %v1375_v14  ;;  %v1415_v56 = vmul.f32 %v1375_v14, %v1375_v14  ;;  %v3693_v42 = vpack.c.bf16 %v1375_v14, %v1372_v33  ;;  %v4054_v35 = vpop.f32.mrb[32].mxu1 }
 0x210   : > { %v4055_v4 = vpop.f32.mrb[33].mxu1 }
 0x211   : > { %v5837_v24 = vadd.f32 %v1429_v38, %v1415_v56  ;;  %3821 = vst [vmem:[%s5349_s11 + $0x38] sm:$0xff] %v3693_v42   ;;  %v4056_v48 = vadd.f32 %v4055_v4, %v4054_v35  ;;  %v4057_v30 = vpop.f32.mrb[34].mxu1  ;;  %v3996_v45 = vpop.f32.mrb[36].mxu0 }
 0x212   : > { %v4058_v58 = vpop.f32.mrb[35].mxu1  ;;  %v3997_v57 = vpop.f32.mrb[37].mxu0 }
 0x213   : > { %v1892_v2 = vadd.f32 %v4056_v48, %v3992_v21  ;;  %v4059_v23 = vadd.f32 %v4058_v58, %v4057_v30  ;;  %v3999_v46 = vpop.f32.mrb[38].mxu0  ;;  %v3998_v15 = vadd.f32 %v3997_v57, %v3996_v45 }
 0x214   : > { %v4000_v27 = vpop.f32.mrb[39].mxu0 }
 0x215   : > { %v1895_v31 = vadd.f32 %v4059_v23, %v3995_v13  ;;  %v4001_v16 = vadd.f32 %v4000_v27, %v3999_v46  ;;  %v1976_v10 = vmul.f32 %v1892_v2, %v1892_v2 }
 0x217   : > { %v1954_v43 = vadd.f32 %v1895_v31, %v1892_v2  ;;  %v1977_v1 = vmul.f32 %v1895_v31, %v1895_v31  ;;  %v4060_v41 = vpop.f32.mrb[36].mxu1  ;;  %v3698_v26 = vpack.c.bf16 %v1895_v31, %v1892_v2 }
 0x218   : > { %v4061_v19 = vpop.f32.mrb[37].mxu1 }
 0x219   : > { %v1992_v53 = vadd.f32 %v1977_v1, %v1976_v10  ;;  %v4062_v62 = vadd.f32 %v4061_v19, %v4060_v41  ;;  %v4063_v40 = vpop.f32.mrb[38].mxu1  ;;  %v4002_v61 = vpop.f32.mrb[40].mxu0  ;;  %3822 = vst [vmem:[%s5349_s11 + $0x40] sm:$0xff] %v3698_v26  }
 0x21a   : > { %v4064_v22 = vpop.f32.mrb[39].mxu1  ;;  %v4003_v8 = vpop.f32.mrb[41].mxu0 }
 0x21b   : > { %v1900_v6 = vadd.f32 %v4062_v62, %v3998_v15  ;;  %v4065_v18 = vadd.f32 %v4064_v22, %v4063_v40  ;;  %v4005_v12 = vpop.f32.mrb[42].mxu0  ;;  %v4004_v50 = vadd.f32 %v4003_v8, %v4002_v61 }
 0x21c   : > { %v4006_v54 = vpop.f32.mrb[43].mxu0 }
 0x21d   : > { %v1955_v52 = vadd.f32 %v1954_v43, %v1900_v6  ;;  %v1978_v28 = vmul.f32 %v1900_v6, %v1900_v6  ;;  %v1903_v47 = vadd.f32 %v4065_v18, %v4001_v16  ;;  %v4007_v11 = vadd.f32 %v4006_v54, %v4005_v12 }
 0x21f   : > { %v1993_v63 = vadd.f32 %v1992_v53, %v1978_v28  ;;  %v1956_v3 = vadd.f32 %v1955_v52, %v1903_v47  ;;  %v1979_v60 = vmul.f32 %v1903_v47, %v1903_v47  ;;  %v3703_v34 = vpack.c.bf16 %v1903_v47, %v1900_v6  ;;  %v4066_v9 = vpop.f32.mrb[40].mxu1 }
 0x220   : > { %v4067_v25 = vpop.f32.mrb[41].mxu1 }
 0x221   : > { %v1994_v32 = vadd.f32 %v1993_v63, %v1979_v60  ;;  %3823 = vst [vmem:[%s5349_s11 + $0x48] sm:$0xff] %v3703_v34   ;;  %v4068_v49 = vadd.f32 %v4067_v25, %v4066_v9  ;;  %v4069_v29 = vpop.f32.mrb[42].mxu1  ;;  %v4008_v55 = vpop.f32.mrb[44].mxu0 }
 0x222   : > { %v4070_v17 = vpop.f32.mrb[43].mxu1  ;;  %v4009_v44 = vpop.f32.mrb[45].mxu0 }
 0x223   : > { %v1908_v20 = vadd.f32 %v4068_v49, %v4004_v50  ;;  %v4071_v5 = vadd.f32 %v4070_v17, %v4069_v29  ;;  %v4010_v51 = vadd.f32 %v4009_v44, %v4008_v55  ;;  %v4011_v33 = vpop.f32.mrb[46].mxu0 }
 0x224   : > { %v4012_v36 = vpop.f32.mrb[47].mxu0 }
 0x225   : > { %v1957_v21 = vadd.f32 %v1956_v3, %v1908_v20  ;;  %v1980_v59 = vmul.f32 %v1908_v20, %v1908_v20  ;;  %v1911_v37 = vadd.f32 %v4071_v5, %v4007_v11  ;;  %v4013_v39 = vadd.f32 %v4012_v36, %v4011_v33 }
 0x227   : > { %v1995_v7 = vadd.f32 %v1994_v32, %v1980_v59  ;;  %v1958_v14 = vadd.f32 %v1957_v21, %v1911_v37  ;;  %v1981_v13 = vmul.f32 %v1911_v37, %v1911_v37  ;;  %v3708_v38 = vpack.c.bf16 %v1911_v37, %v1908_v20  ;;  %v4072_v56 = vpop.f32.mrb[44].mxu1 }
 0x228   : > { %v4073_v42 = vpop.f32.mrb[45].mxu1 }
 0x229   : > { %v1996_v35 = vadd.f32 %v1995_v7, %v1981_v13  ;;  %3824 = vst [vmem:[%s5349_s11 + $0x50] sm:$0xff] %v3708_v38   ;;  %v4074_v4 = vadd.f32 %v4073_v42, %v4072_v56  ;;  %v4075_v48 = vpop.f32.mrb[46].mxu1  ;;  %v4014_v30 = vpop.f32.mrb[48].mxu0 }
 0x22a   : > { %v4076_v45 = vpop.f32.mrb[47].mxu1  ;;  %v4015_v58 = vpop.f32.mrb[49].mxu0 }
 0x22b   : > { %v1916_v57 = vadd.f32 %v4074_v4, %v4010_v51  ;;  %v4077_v2 = vadd.f32 %v4076_v45, %v4075_v48  ;;  %v4016_v23 = vadd.f32 %v4015_v58, %v4014_v30  ;;  %v4017_v46 = vpop.f32.mrb[50].mxu0 }
 0x22c   : > { %v4018_v15 = vpop.f32.mrb[51].mxu0 }
 0x22d   : > { %v1959_v27 = vadd.f32 %v1958_v14, %v1916_v57  ;;  %v1982_v31 = vmul.f32 %v1916_v57, %v1916_v57  ;;  %v1919_v16 = vadd.f32 %v4077_v2, %v4013_v39  ;;  %v4019_v10 = vadd.f32 %v4018_v15, %v4017_v46 }
 0x22f   : > { %v1997_v43 = vadd.f32 %v1996_v35, %v1982_v31  ;;  %v1960_v1 = vadd.f32 %v1959_v27, %v1919_v16  ;;  %v1983_v41 = vmul.f32 %v1919_v16, %v1919_v16  ;;  %v3713_v26 = vpack.c.bf16 %v1919_v16, %v1916_v57  ;;  %v4078_v19 = vpop.f32.mrb[48].mxu1 }
 0x230   : > { %v4079_v53 = vpop.f32.mrb[49].mxu1 }
 0x231   : > { %v1998_v62 = vadd.f32 %v1997_v43, %v1983_v41  ;;  %3825 = vst [vmem:[%s5349_s11 + $0x58] sm:$0xff] %v3713_v26   ;;  %v4080_v40 = vadd.f32 %v4079_v53, %v4078_v19  ;;  %v4081_v61 = vpop.f32.mrb[50].mxu1  ;;  %v4020_v22 = vpop.f32.mrb[52].mxu0 }
 0x232   : > { %v4082_v8 = vpop.f32.mrb[51].mxu1  ;;  %v4021_v6 = vpop.f32.mrb[53].mxu0 }
 0x233   : > { %v1924_v18 = vadd.f32 %v4080_v40, %v4016_v23  ;;  %v4083_v12 = vadd.f32 %v4082_v8, %v4081_v61  ;;  %v4022_v50 = vadd.f32 %v4021_v6, %v4020_v22  ;;  %v4023_v54 = vpop.f32.mrb[54].mxu0  ;;  %v1431_v40 = vrot.slane %v5837_v24, 4 }
 0x234   : > { %v4024_v52 = vpop.f32.mrb[55].mxu0 }
 0x235   : > { %v1961_v28 = vadd.f32 %v1960_v1, %v1924_v18  ;;  %v1984_v47 = vmul.f32 %v1924_v18, %v1924_v18  ;;  %v1927_v11 = vadd.f32 %v4083_v12, %v4019_v10  ;;  %v4025_v63 = vadd.f32 %v4024_v52, %v4023_v54 }
 0x236   : > { %v1393_v1 = vrot.slane %v5835_v0, 4 }
 0x237   : > { %v1999_v3 = vadd.f32 %v1998_v62, %v1984_v47  ;;  %v1962_v60 = vadd.f32 %v1961_v28, %v1927_v11  ;;  %v1985_v34 = vmul.f32 %v1927_v11, %v1927_v11  ;;  %v3718_v9 = vpack.c.bf16 %v1927_v11, %v1924_v18  ;;  %v4084_v25 = vpop.f32.mrb[52].mxu1 }
 0x238   : > { %v4085_v32 = vpop.f32.mrb[53].mxu1  ;;  %v1394_v12 = vadd.f32 %v1393_v1, %v5835_v0 }
 0x239   : > { %v2000_v49 = vadd.f32 %v1999_v3, %v1985_v34  ;;  %3826 = vst [vmem:[%s5349_s11 + $0x60] sm:$0xff] %v3718_v9   ;;  %v4086_v29 = vadd.f32 %v4085_v32, %v4084_v25  ;;  %v4087_v55 = vpop.f32.mrb[54].mxu1  ;;  %v4026_v17 = vpop.f32.mrb[56].mxu0 }
 0x23a   : > { %v4088_v44 = vpop.f32.mrb[55].mxu1  ;;  %v4027_v20 = vpop.f32.mrb[57].mxu0  ;;  %v1395_v32 = vrot.slane %v1394_v12, 2 }
 0x23b   : > { %v1932_v5 = vadd.f32 %v4086_v29, %v4022_v50  ;;  %v4089_v51 = vadd.f32 %v4088_v44, %v4087_v55  ;;  %v4028_v33 = vadd.f32 %v4027_v20, %v4026_v17  ;;  %v4029_v36 = vpop.f32.mrb[58].mxu0 }
 0x23c   : > { %v4030_v21 = vpop.f32.mrb[59].mxu0 }
 0x23d   : > { %v1963_v59 = vadd.f32 %v1962_v60, %v1932_v5  ;;  %v1986_v37 = vmul.f32 %v1932_v5, %v1932_v5  ;;  %v1935_v39 = vadd.f32 %v4089_v51, %v4025_v63  ;;  %v4031_v7 = vadd.f32 %v4030_v21, %v4029_v36 }
 0x23e   : > { %v1432_v63 = vadd.f32 %v1431_v40, %v5837_v24  ;;  %v1396_v21 = vadd.f32 %v1395_v32, %v1394_v12 }
 0x23f   : > { %v2001_v14 = vadd.f32 %v2000_v49, %v1986_v37  ;;  %v1964_v13 = vadd.f32 %v1963_v59, %v1935_v39  ;;  %v1987_v38 = vmul.f32 %v1935_v39, %v1935_v39  ;;  %v3723_v56 = vpack.c.bf16 %v1935_v39, %v1932_v5  ;;  %v4090_v42 = vpop.f32.mrb[56].mxu1 }
 0x240   : > { %v4091_v35 = vpop.f32.mrb[57].mxu1  ;;  %v1433_v44 = vrot.slane %v1432_v63, 2 }
 0x241   : > { %v2002_v4 = vadd.f32 %v2001_v14, %v1987_v38  ;;  %3827 = vst [vmem:[%s5349_s11 + $0x68] sm:$0xff] %v3723_v56   ;;  %v4092_v48 = vadd.f32 %v4091_v35, %v4090_v42  ;;  %v4093_v30 = vpop.f32.mrb[58].mxu1  ;;  %v4032_v45 = vpop.f32.mrb[60].mxu0 }
 0x242   : > { %v4094_v58 = vpop.f32.mrb[59].mxu1  ;;  %v4033_v57 = vpop.f32.mrb[61].mxu0  ;;  %v1434_v56 = vadd.f32 %v1433_v44, %v1432_v63 }
 0x243   : > { %v1940_v2 = vadd.f32 %v4092_v48, %v4028_v33  ;;  %v4095_v23 = vadd.f32 %v4094_v58, %v4093_v30  ;;  %v4034_v46 = vadd.f32 %v4033_v57, %v4032_v45  ;;  %v4035_v15 = vpop.f32.mrb[62].mxu0  ;;  %v1397_v45 = vrot.slane %v1396_v21, 1 }
 0x244   : > { %v4036_v27 = vpop.f32.mrb[63].mxu0 }
 0x245   : > { %v1965_v31 = vadd.f32 %v1964_v13, %v1940_v2  ;;  %v1988_v16 = vmul.f32 %v1940_v2, %v1940_v2  ;;  %v1943_v10 = vadd.f32 %v4095_v23, %v4031_v7  ;;  %v4037_v43 = vadd.f32 %v4036_v27, %v4035_v15 }
 0x247   : > { %v2003_v41 = vadd.f32 %v2002_v4, %v1988_v16  ;;  %v1966_v26 = vadd.f32 %v1965_v31, %v1943_v10  ;;  %v1989_v19 = vmul.f32 %v1943_v10, %v1943_v10  ;;  %v3728_v53 = vpack.c.bf16 %v1943_v10, %v1940_v2  ;;  %v4096_v62 = vpop.f32.mrb[60].mxu1 }
 0x248   : > { %v4097_v61 = vpop.f32.mrb[61].mxu1  ;;  %v1435_v31 = vrot.slane %v1434_v56, 1 }
 0x249   : > { %v2004_v22 = vadd.f32 %v2003_v41, %v1989_v19  ;;  %3828 = vst [vmem:[%s5349_s11 + $0x70] sm:$0xff] %v3728_v53   ;;  %v4098_v8 = vadd.f32 %v4097_v61, %v4096_v62  ;;  %v4099_v6 = vpop.f32.mrb[62].mxu1  ;;  %v4118_v18 = vpop.f32.mrb[64].mxu0  ;;  %v1398_v62 = vadd.f32 %v1397_v45, %v1396_v21 }
 0x24a   : > { %v4100_v50 = vpop.f32.mrb[63].mxu1  ;;  %v4119_v54 = vpop.f32.mrb[65].mxu0 }
 0x24b   : > { %v1948_v52 = vadd.f32 %v4098_v8, %v4034_v46  ;;  %v4101_v28 = vadd.f32 %v4100_v50, %v4099_v6  ;;  %v4120_v47 = vadd.f32 %v4119_v54, %v4118_v18  ;;  %v4121_v11 = vpop.f32.mrb[66].mxu0  ;;  %v1436_v50 = vadd.f32 %v1435_v31, %v1434_v56 }
 0x24c   : > { %v4122_v3 = vpop.f32.mrb[67].mxu0 }
 0x24d   : > { %v1967_v60 = vadd.f32 %v1966_v26, %v1948_v52  ;;  %v1990_v34 = vmul.f32 %v1948_v52, %v1948_v52  ;;  %v1951_v9 = vadd.f32 %v4101_v28, %v4037_v43  ;;  %v4123_v25 = vadd.f32 %v4122_v3, %v4121_v11 }
 0x24f   : > { %v2005_v49 = vadd.f32 %v2004_v22, %v1990_v34  ;;  %v1968_v29 = vadd.f32 %v1967_v60, %v1951_v9  ;;  %v1991_v55 = vmul.f32 %v1951_v9, %v1951_v9  ;;  %v3733_v17 = vpack.c.bf16 %v1951_v9, %v1948_v52  ;;  %v4182_v0 = vpop.f32.mrb[64].mxu1 }
 0x250   : > { %v4183_v20 = vpop.f32.mrb[65].mxu1 }
 0x251   : > { %v1969_v5 = vrot.slane %v1968_v29, 4  ;;  %v2006_v51 = vadd.f32 %v2005_v49, %v1991_v55  ;;  %3829 = vst [vmem:[%s5349_s11 + $0x78] sm:$0xff] %v3733_v17   ;;  %v4184_v33 = vadd.f32 %v4183_v20, %v4182_v0  ;;  %v4185_v36 = vpop.f32.mrb[66].mxu1  ;;  %v4124_v24 = vpop.f32.mrb[68].mxu0 }
 0x252   : > { %v4186_v59 = vpop.f32.mrb[67].mxu1  ;;  %v4125_v37 = vpop.f32.mrb[69].mxu0 }
 0x253   : > { %v1970_v39 = vadd.f32 %v1969_v5, %v1968_v29  ;;  %v2007_v7 = vrot.slane %v2006_v51, 4  ;;  %v2441_v14 = vadd.f32 %v4184_v33, %v4120_v47  ;;  %v4187_v13 = vadd.f32 %v4186_v59, %v4185_v36  ;;  %v4127_v38 = vpop.f32.mrb[70].mxu0 }
 0x254   : > { %v4126_v42 = vadd.f32 %v4125_v37, %v4124_v24  ;;  %v4128_v35 = vpop.f32.mrb[71].mxu0 }
 0x255   : > { %v1971_v4 = vrot.slane %v1970_v39, 2  ;;  %v2008_v48 = vadd.f32 %v2007_v7, %v2006_v51  ;;  %v2444_v30 = vadd.f32 %v4187_v13, %v4123_v25  ;;  %v2525_v58 = vmul.f32 %v2441_v14, %v2441_v14 }
 0x256   : > { %v4129_v57 = vadd.f32 %v4128_v35, %v4127_v38 }
 0x257   : > { %v1972_v2 = vadd.f32 %v1971_v4, %v1970_v39  ;;  %v2009_v23 = vrot.slane %v2008_v48, 2  ;;  %v2503_v46 = vadd.f32 %v2444_v30, %v2441_v14  ;;  %v2526_v15 = vmul.f32 %v2444_v30, %v2444_v30  ;;  %v4188_v27 = vpop.f32.mrb[68].mxu1 }
 0x258   : > { %v3738_v16 = vpack.c.bf16 %v2444_v30, %v2441_v14  ;;  %v4189_v10 = vpop.f32.mrb[69].mxu1 }
 0x259   : > { %v1973_v43 = vrot.slane %v1972_v2, 1  ;;  %v2010_v1 = vadd.f32 %v2009_v23, %v2008_v48  ;;  %v2541_v41 = vadd.f32 %v2526_v15, %v2525_v58  ;;  %v4190_v26 = vadd.f32 %v4189_v10, %v4188_v27  ;;  %v4191_v19 = vpop.f32.mrb[70].mxu1  ;;  %v4130_v53 = vpop.f32.mrb[72].mxu0 }
 0x25a   : > { %3830 = vst [vmem:[%s5349_s11 + $0x80] sm:$0xff] %v3738_v16   ;;  %v4192_v40 = vpop.f32.mrb[71].mxu1  ;;  %v4131_v61 = vpop.f32.mrb[73].mxu0 }
 0x25b   : > { %v1974_v22 = vadd.f32 %v1973_v43, %v1972_v2  ;;  %v2011_v8 = vrot.slane %v2010_v1, 1  ;;  %v2449_v6 = vadd.f32 %v4190_v26, %v4126_v42  ;;  %v4193_v18 = vadd.f32 %v4192_v40, %v4191_v19  ;;  %v4133_v12 = vpop.f32.mrb[74].mxu0 }
 0x25c   : > { %v4132_v54 = vadd.f32 %v4131_v61, %v4130_v53  ;;  %v4134_v52 = vpop.f32.mrb[75].mxu0 }
 0x25d   : > { %v5853_v28 = vadd.f32 %v1974_v22, %v1398_v62  ;;  %v2012_v47 = vadd.f32 %v2011_v8, %v2010_v1  ;;  %v2504_v11 = vadd.f32 %v2503_v46, %v2449_v6  ;;  %v2527_v63 = vmul.f32 %v2449_v6, %v2449_v6 }
 0x25e   : > { %v2452_v3 = vadd.f32 %v4193_v18, %v4129_v57  ;;  %v4135_v60 = vadd.f32 %v4134_v52, %v4133_v12 }
 0x25f   : > { %v5855_v34 = vadd.f32 %v2012_v47, %v1436_v50  ;;  %v2542_v9 = vadd.f32 %v2541_v41, %v2527_v63  ;;  %v4194_v25 = vpop.f32.mrb[72].mxu1 }
 0x260   : > { %v2505_v32 = vadd.f32 %v2504_v11, %v2452_v3  ;;  %v2528_v49 = vmul.f32 %v2452_v3, %v2452_v3  ;;  %v3743_v29 = vpack.c.bf16 %v2452_v3, %v2449_v6  ;;  %v4195_v55 = vpop.f32.mrb[73].mxu1 }
 0x261   : > { %v4196_v17 = vadd.f32 %v4195_v55, %v4194_v25  ;;  %v4197_v0 = vpop.f32.mrb[74].mxu1  ;;  %v4136_v44 = vpop.f32.mrb[76].mxu0 }
 0x262   : > { %v2543_v20 = vadd.f32 %v2542_v9, %v2528_v49  ;;  %3831 = vst [vmem:[%s5349_s11 + $0x88] sm:$0xff] %v3743_v29   ;;  %v4198_v5 = vpop.f32.mrb[75].mxu1  ;;  %v4137_v51 = vpop.f32.mrb[77].mxu0 }
 0x263   : > { %v2457_v33 = vadd.f32 %v4196_v17, %v4132_v54  ;;  %v4199_v36 = vadd.f32 %v4198_v5, %v4197_v0  ;;  %v4138_v24 = vadd.f32 %v4137_v51, %v4136_v44  ;;  %v4139_v21 = vpop.f32.mrb[78].mxu0 }
 0x264   : > { %v4140_v59 = vpop.f32.mrb[79].mxu0 }
 0x265   : > { %v2506_v37 = vadd.f32 %v2505_v32, %v2457_v33  ;;  %v2529_v39 = vmul.f32 %v2457_v33, %v2457_v33  ;;  %v2460_v7 = vadd.f32 %v4199_v36, %v4135_v60  ;;  %v4141_v14 = vadd.f32 %v4140_v59, %v4139_v21 }
 0x267   : > { %v2544_v13 = vadd.f32 %v2543_v20, %v2529_v39  ;;  %v2507_v38 = vadd.f32 %v2506_v37, %v2460_v7  ;;  %v2530_v56 = vmul.f32 %v2460_v7, %v2460_v7  ;;  %v3748_v42 = vpack.c.bf16 %v2460_v7, %v2457_v33  ;;  %v4200_v35 = vpop.f32.mrb[76].mxu1 }
 0x268   : > { %v4201_v4 = vpop.f32.mrb[77].mxu1 }
 0x269   : > { %v2545_v48 = vadd.f32 %v2544_v13, %v2530_v56  ;;  %3832 = vst [vmem:[%s5349_s11 + $0x90] sm:$0xff] %v3748_v42   ;;  %v4202_v30 = vadd.f32 %v4201_v4, %v4200_v35  ;;  %v4203_v45 = vpop.f32.mrb[78].mxu1  ;;  %v4142_v58 = vpop.f32.mrb[80].mxu0 }
 0x26a   : > { %v4204_v57 = vpop.f32.mrb[79].mxu1  ;;  %v4143_v2 = vpop.f32.mrb[81].mxu0 }
 0x26b   : > { %v2465_v23 = vadd.f32 %v4202_v30, %v4138_v24  ;;  %v4205_v46 = vadd.f32 %v4204_v57, %v4203_v45  ;;  %v4144_v15 = vadd.f32 %v4143_v2, %v4142_v58  ;;  %v4145_v27 = vpop.f32.mrb[82].mxu0 }
 0x26c   : > { %v4146_v31 = vpop.f32.mrb[83].mxu0 }
 0x26d   : > { %v2508_v16 = vadd.f32 %v2507_v38, %v2465_v23  ;;  %v2531_v10 = vmul.f32 %v2465_v23, %v2465_v23  ;;  %v2468_v43 = vadd.f32 %v4205_v46, %v4141_v14  ;;  %v4147_v1 = vadd.f32 %v4146_v31, %v4145_v27 }
 0x26f   : > { %v2546_v41 = vadd.f32 %v2545_v48, %v2531_v10  ;;  %v2509_v26 = vadd.f32 %v2508_v16, %v2468_v43  ;;  %v2532_v19 = vmul.f32 %v2468_v43, %v2468_v43  ;;  %v3753_v53 = vpack.c.bf16 %v2468_v43, %v2465_v23  ;;  %v4206_v62 = vpop.f32.mrb[80].mxu1 }
 0x270   : > { %v4207_v40 = vpop.f32.mrb[81].mxu1 }
 0x271   : > { %v2547_v61 = vadd.f32 %v2546_v41, %v2532_v19  ;;  %3833 = vst [vmem:[%s5349_s11 + $0x98] sm:$0xff] %v3753_v53   ;;  %v4208_v22 = vadd.f32 %v4207_v40, %v4206_v62  ;;  %v4209_v8 = vpop.f32.mrb[82].mxu1  ;;  %v4148_v6 = vpop.f32.mrb[84].mxu0 }
 0x272   : > { %v4210_v18 = vpop.f32.mrb[83].mxu1  ;;  %v4149_v12 = vpop.f32.mrb[85].mxu0 }
 0x273   : > { %v2473_v50 = vadd.f32 %v4208_v22, %v4144_v15  ;;  %v4211_v54 = vadd.f32 %v4210_v18, %v4209_v8  ;;  %v4150_v52 = vadd.f32 %v4149_v12, %v4148_v6  ;;  %v4151_v47 = vpop.f32.mrb[86].mxu0 }
 0x274   : > { %v4152_v11 = vpop.f32.mrb[87].mxu0 }
 0x275   : > { %v2510_v63 = vadd.f32 %v2509_v26, %v2473_v50  ;;  %v2533_v3 = vmul.f32 %v2473_v50, %v2473_v50  ;;  %v2476_v60 = vadd.f32 %v4211_v54, %v4147_v1  ;;  %v4153_v9 = vadd.f32 %v4152_v11, %v4151_v47 }
 0x277   : > { %v2548_v25 = vadd.f32 %v2547_v61, %v2533_v3  ;;  %v2511_v32 = vadd.f32 %v2510_v63, %v2476_v60  ;;  %v2534_v49 = vmul.f32 %v2476_v60, %v2476_v60  ;;  %v3758_v29 = vpack.c.bf16 %v2476_v60, %v2473_v50  ;;  %v4212_v55 = vpop.f32.mrb[84].mxu1 }
 0x278   : > { %v4213_v17 = vpop.f32.mrb[85].mxu1 }
 0x279   : > { %v2549_v0 = vadd.f32 %v2548_v25, %v2534_v49  ;;  %3834 = vst [vmem:[%s5349_s11 + $0xa0] sm:$0xff] %v3758_v29   ;;  %v4214_v44 = vadd.f32 %v4213_v17, %v4212_v55  ;;  %v4215_v20 = vpop.f32.mrb[86].mxu1  ;;  %v4154_v5 = vpop.f32.mrb[88].mxu0 }
 0x27a   : > { %v4216_v51 = vpop.f32.mrb[87].mxu1  ;;  %v4155_v33 = vpop.f32.mrb[89].mxu0 }
 0x27b   : > { %v2481_v36 = vadd.f32 %v4214_v44, %v4150_v52  ;;  %v4217_v24 = vadd.f32 %v4216_v51, %v4215_v20  ;;  %v4156_v21 = vadd.f32 %v4155_v33, %v4154_v5  ;;  %v4157_v59 = vpop.f32.mrb[90].mxu0 }
 0x27c   : > { %v4158_v37 = vpop.f32.mrb[91].mxu0 }
 0x27d   : > { %v2512_v39 = vadd.f32 %v2511_v32, %v2481_v36  ;;  %v2535_v7 = vmul.f32 %v2481_v36, %v2481_v36  ;;  %v2484_v14 = vadd.f32 %v4217_v24, %v4153_v9  ;;  %v4159_v13 = vadd.f32 %v4158_v37, %v4157_v59 }
 0x27f   : > { %v2550_v38 = vadd.f32 %v2549_v0, %v2535_v7  ;;  %v2513_v56 = vadd.f32 %v2512_v39, %v2484_v14  ;;  %v2536_v42 = vmul.f32 %v2484_v14, %v2484_v14  ;;  %v3763_v35 = vpack.c.bf16 %v2484_v14, %v2481_v36  ;;  %v4218_v4 = vpop.f32.mrb[88].mxu1 }
 0x280   : > { %v4219_v48 = vpop.f32.mrb[89].mxu1 }
 0x281   : > { %v2551_v30 = vadd.f32 %v2550_v38, %v2536_v42  ;;  %3835 = vst [vmem:[%s5349_s11 + $0xa8] sm:$0xff] %v3763_v35   ;;  %v4220_v45 = vadd.f32 %v4219_v48, %v4218_v4  ;;  %v4221_v58 = vpop.f32.mrb[90].mxu1  ;;  %v4160_v57 = vpop.f32.mrb[92].mxu0 }
 0x282   : > { %v4222_v2 = vpop.f32.mrb[91].mxu1  ;;  %v4161_v23 = vpop.f32.mrb[93].mxu0 }
 0x283   : > { %v2489_v46 = vadd.f32 %v4220_v45, %v4156_v21  ;;  %v4223_v15 = vadd.f32 %v4222_v2, %v4221_v58  ;;  %v4162_v27 = vadd.f32 %v4161_v23, %v4160_v57  ;;  %v4163_v31 = vpop.f32.mrb[94].mxu0 }
 0x284   : > { %v4164_v16 = vpop.f32.mrb[95].mxu0 }
 0x285   : > { %v2514_v10 = vadd.f32 %v2513_v56, %v2489_v46  ;;  %v2537_v43 = vmul.f32 %v2489_v46, %v2489_v46  ;;  %v2492_v1 = vadd.f32 %v4223_v15, %v4159_v13  ;;  %v4165_v41 = vadd.f32 %v4164_v16, %v4163_v31 }
 0x287   : > { %v2552_v26 = vadd.f32 %v2551_v30, %v2537_v43  ;;  %v2515_v19 = vadd.f32 %v2514_v10, %v2492_v1  ;;  %v2538_v53 = vmul.f32 %v2492_v1, %v2492_v1  ;;  %v3768_v62 = vpack.c.bf16 %v2492_v1, %v2489_v46  ;;  %v4224_v40 = vpop.f32.mrb[92].mxu1 }
 0x288   : > { %v4225_v61 = vpop.f32.mrb[93].mxu1 }
 0x289   : > { %v2553_v22 = vadd.f32 %v2552_v26, %v2538_v53  ;;  %3836 = vst [vmem:[%s5349_s11 + $0xb0] sm:$0xff] %v3768_v62   ;;  %v4226_v8 = vadd.f32 %v4225_v61, %v4224_v40  ;;  %v4227_v6 = vpop.f32.mrb[94].mxu1  ;;  %v4246_v18 = vpop.f32.mrb[96].mxu0 }
 0x28a   : > { %v4228_v12 = vpop.f32.mrb[95].mxu1  ;;  %v4247_v50 = vpop.f32.mrb[97].mxu0 }
 0x28b   : > { %v2497_v54 = vadd.f32 %v4226_v8, %v4162_v27  ;;  %v4229_v52 = vadd.f32 %v4228_v12, %v4227_v6  ;;  %v4248_v47 = vadd.f32 %v4247_v50, %v4246_v18  ;;  %v4249_v11 = vpop.f32.mrb[98].mxu0 }
 0x28c   : > { %v4250_v63 = vpop.f32.mrb[99].mxu0 }
 0x28d   : > { %v2516_v3 = vadd.f32 %v2515_v19, %v2497_v54  ;;  %v2539_v60 = vmul.f32 %v2497_v54, %v2497_v54  ;;  %v2500_v9 = vadd.f32 %v4229_v52, %v4165_v41  ;;  %v4251_v25 = vadd.f32 %v4250_v63, %v4249_v11 }
 0x28f   : > { %v2554_v32 = vadd.f32 %v2553_v22, %v2539_v60  ;;  %v2517_v49 = vadd.f32 %v2516_v3, %v2500_v9  ;;  %v2540_v29 = vmul.f32 %v2500_v9, %v2500_v9  ;;  %v3773_v55 = vpack.c.bf16 %v2500_v9, %v2497_v54  ;;  %v4310_v17 = vpop.f32.mrb[96].mxu1 }
 0x290   : > { %v4311_v0 = vpop.f32.mrb[97].mxu1 }
 0x291   : > { %v2518_v44 = vrot.slane %v2517_v49, 4  ;;  %v2555_v20 = vadd.f32 %v2554_v32, %v2540_v29  ;;  %3837 = vst [vmem:[%s5349_s11 + $0xb8] sm:$0xff] %v3773_v55   ;;  %v4312_v5 = vadd.f32 %v4311_v0, %v4310_v17  ;;  %v4313_v51 = vpop.f32.mrb[98].mxu1  ;;  %v4252_v33 = vpop.f32.mrb[100].mxu0 }
 0x292   : > { %v4314_v36 = vpop.f32.mrb[99].mxu1  ;;  %v4253_v24 = vpop.f32.mrb[101].mxu0 }
 0x293   : > { %v2519_v21 = vadd.f32 %v2518_v44, %v2517_v49  ;;  %v2556_v59 = vrot.slane %v2555_v20, 4  ;;  %v2988_v37 = vadd.f32 %v4312_v5, %v4248_v47  ;;  %v4315_v39 = vadd.f32 %v4314_v36, %v4313_v51  ;;  %v4255_v7 = vpop.f32.mrb[102].mxu0 }
 0x294   : > { %v4254_v14 = vadd.f32 %v4253_v24, %v4252_v33  ;;  %v4256_v13 = vpop.f32.mrb[103].mxu0 }
 0x295   : > { %v2520_v38 = vrot.slane %v2519_v21, 2  ;;  %v2557_v56 = vadd.f32 %v2556_v59, %v2555_v20  ;;  %v2991_v42 = vadd.f32 %v4315_v39, %v4251_v25  ;;  %v3072_v35 = vmul.f32 %v2988_v37, %v2988_v37 }
 0x296   : > { %v4257_v4 = vadd.f32 %v4256_v13, %v4255_v7 }
 0x297   : > { %v2521_v48 = vadd.f32 %v2520_v38, %v2519_v21  ;;  %v2558_v30 = vrot.slane %v2557_v56, 2  ;;  %v3050_v45 = vadd.f32 %v2991_v42, %v2988_v37  ;;  %v3073_v58 = vmul.f32 %v2991_v42, %v2991_v42  ;;  %v4316_v57 = vpop.f32.mrb[100].mxu1 }
 0x298   : > { %v3778_v2 = vpack.c.bf16 %v2991_v42, %v2988_v37  ;;  %v4317_v23 = vpop.f32.mrb[101].mxu1 }
 0x299   : > { %v2522_v46 = vrot.slane %v2521_v48, 1  ;;  %v2559_v15 = vadd.f32 %v2558_v30, %v2557_v56  ;;  %v3088_v27 = vadd.f32 %v3073_v58, %v3072_v35  ;;  %v4318_v31 = vadd.f32 %v4317_v23, %v4316_v57  ;;  %v4319_v16 = vpop.f32.mrb[102].mxu1  ;;  %v4258_v10 = vpop.f32.mrb[104].mxu0 }
 0x29a   : > { %3838 = vst [vmem:[%s5349_s11 + $0xc0] sm:$0xff] %v3778_v2   ;;  %v4320_v43 = vpop.f32.mrb[103].mxu1  ;;  %v4259_v1 = vpop.f32.mrb[105].mxu0 }
 0x29b   : > { %v2523_v41 = vadd.f32 %v2522_v46, %v2521_v48  ;;  %v2560_v26 = vrot.slane %v2559_v15, 1  ;;  %v2996_v19 = vadd.f32 %v4318_v31, %v4254_v14  ;;  %v4321_v53 = vadd.f32 %v4320_v43, %v4319_v16  ;;  %v4261_v62 = vpop.f32.mrb[106].mxu0 }
 0x29c   : > { %v4260_v40 = vadd.f32 %v4259_v1, %v4258_v10  ;;  %v4262_v61 = vpop.f32.mrb[107].mxu0 }
 0x29d   : > { %v5866_v22 = vadd.f32 %v2523_v41, %v5853_v28  ;;  %v2561_v8 = vadd.f32 %v2560_v26, %v2559_v15  ;;  %v3051_v6 = vadd.f32 %v3050_v45, %v2996_v19  ;;  %v3074_v18 = vmul.f32 %v2996_v19, %v2996_v19 }
 0x29e   : > { %v2999_v12 = vadd.f32 %v4321_v53, %v4257_v4  ;;  %v4263_v50 = vadd.f32 %v4262_v61, %v4261_v62 }
 0x29f   : > { %v5869_v54 = vadd.f32 %v2561_v8, %v5855_v34  ;;  %v3089_v52 = vadd.f32 %v3088_v27, %v3074_v18  ;;  %v4322_v47 = vpop.f32.mrb[104].mxu1 }
 0x2a0   : > { %v3052_v11 = vadd.f32 %v3051_v6, %v2999_v12  ;;  %v3075_v63 = vmul.f32 %v2999_v12, %v2999_v12  ;;  %v3783_v3 = vpack.c.bf16 %v2999_v12, %v2996_v19  ;;  %v4323_v60 = vpop.f32.mrb[105].mxu1 }
 0x2a1   : > { %v4324_v9 = vadd.f32 %v4323_v60, %v4322_v47  ;;  %v4325_v25 = vpop.f32.mrb[106].mxu1  ;;  %v4264_v32 = vpop.f32.mrb[108].mxu0 }
 0x2a2   : > { %v3090_v28 = vadd.f32 %v3089_v52, %v3075_v63  ;;  %3839 = vst [vmem:[%s5349_s11 + $0xc8] sm:$0xff] %v3783_v3   ;;  %v4326_v49 = vpop.f32.mrb[107].mxu1  ;;  %v4265_v29 = vpop.f32.mrb[109].mxu0 }
 0x2a3   : > { %v3004_v55 = vadd.f32 %v4324_v9, %v4260_v40  ;;  %v4327_v17 = vadd.f32 %v4326_v49, %v4325_v25  ;;  %v4266_v0 = vadd.f32 %v4265_v29, %v4264_v32  ;;  %v4267_v44 = vpop.f32.mrb[110].mxu0 }
 0x2a4   : > { %v4268_v34 = vpop.f32.mrb[111].mxu0 }
 0x2a5   : > { %v3053_v20 = vadd.f32 %v3052_v11, %v3004_v55  ;;  %v3076_v5 = vmul.f32 %v3004_v55, %v3004_v55  ;;  %v3007_v51 = vadd.f32 %v4327_v17, %v4263_v50  ;;  %v4269_v33 = vadd.f32 %v4268_v34, %v4267_v44 }
 0x2a7   : > { %v3091_v36 = vadd.f32 %v3090_v28, %v3076_v5  ;;  %v3054_v24 = vadd.f32 %v3053_v20, %v3007_v51  ;;  %v3077_v21 = vmul.f32 %v3007_v51, %v3007_v51  ;;  %v3788_v59 = vpack.c.bf16 %v3007_v51, %v3004_v55  ;;  %v4328_v37 = vpop.f32.mrb[108].mxu1 }
 0x2a8   : > { %v4329_v39 = vpop.f32.mrb[109].mxu1 }
 0x2a9   : > { %v3092_v7 = vadd.f32 %v3091_v36, %v3077_v21  ;;  %3840 = vst [vmem:[%s5349_s11 + $0xd0] sm:$0xff] %v3788_v59   ;;  %v4330_v14 = vadd.f32 %v4329_v39, %v4328_v37  ;;  %v4331_v13 = vpop.f32.mrb[110].mxu1  ;;  %v4270_v38 = vpop.f32.mrb[112].mxu0 }
 0x2aa   : > { %v4332_v56 = vpop.f32.mrb[111].mxu1  ;;  %v4271_v42 = vpop.f32.mrb[113].mxu0 }
 0x2ab   : > { %v3012_v35 = vadd.f32 %v4330_v14, %v4266_v0  ;;  %v4333_v4 = vadd.f32 %v4332_v56, %v4331_v13  ;;  %v4272_v48 = vadd.f32 %v4271_v42, %v4270_v38  ;;  %v4273_v30 = vpop.f32.mrb[114].mxu0 }
 0x2ac   : > { %v4274_v45 = vpop.f32.mrb[115].mxu0 }
 0x2ad   : > { %v3055_v58 = vadd.f32 %v3054_v24, %v3012_v35  ;;  %v3078_v57 = vmul.f32 %v3012_v35, %v3012_v35  ;;  %v3015_v2 = vadd.f32 %v4333_v4, %v4269_v33  ;;  %v4275_v23 = vadd.f32 %v4274_v45, %v4273_v30 }
 0x2af   : > { %v3093_v46 = vadd.f32 %v3092_v7, %v3078_v57  ;;  %v3056_v15 = vadd.f32 %v3055_v58, %v3015_v2  ;;  %v3079_v27 = vmul.f32 %v3015_v2, %v3015_v2  ;;  %v3793_v31 = vpack.c.bf16 %v3015_v2, %v3012_v35  ;;  %v4334_v16 = vpop.f32.mrb[112].mxu1 }
 0x2b0   : > { %v4335_v10 = vpop.f32.mrb[113].mxu1 }
 0x2b1   : > { %v3094_v43 = vadd.f32 %v3093_v46, %v3079_v27  ;;  %3841 = vst [vmem:[%s5349_s11 + $0xd8] sm:$0xff] %v3793_v31   ;;  %v4336_v1 = vadd.f32 %v4335_v10, %v4334_v16  ;;  %v4337_v41 = vpop.f32.mrb[114].mxu1  ;;  %v4276_v26 = vpop.f32.mrb[116].mxu0 }
 0x2b2   : > { %v4338_v19 = vpop.f32.mrb[115].mxu1  ;;  %v4277_v53 = vpop.f32.mrb[117].mxu0 }
 0x2b3   : > { %v3020_v62 = vadd.f32 %v4336_v1, %v4272_v48  ;;  %v4339_v40 = vadd.f32 %v4338_v19, %v4337_v41  ;;  %v4278_v61 = vadd.f32 %v4277_v53, %v4276_v26  ;;  %v4279_v8 = vpop.f32.mrb[118].mxu0 }
 0x2b4   : > { %v4280_v6 = vpop.f32.mrb[119].mxu0 }
 0x2b5   : > { %v3057_v18 = vadd.f32 %v3056_v15, %v3020_v62  ;;  %v3080_v12 = vmul.f32 %v3020_v62, %v3020_v62  ;;  %v3023_v50 = vadd.f32 %v4339_v40, %v4275_v23  ;;  %v4281_v52 = vadd.f32 %v4280_v6, %v4279_v8 }
 0x2b7   : > { %v3095_v47 = vadd.f32 %v3094_v43, %v3080_v12  ;;  %v3058_v11 = vadd.f32 %v3057_v18, %v3023_v50  ;;  %v3081_v63 = vmul.f32 %v3023_v50, %v3023_v50  ;;  %v3798_v3 = vpack.c.bf16 %v3023_v50, %v3020_v62  ;;  %v4340_v60 = vpop.f32.mrb[116].mxu1 }
 0x2b8   : > { %v4341_v9 = vpop.f32.mrb[117].mxu1 }
 0x2b9   : > { %v3096_v25 = vadd.f32 %v3095_v47, %v3081_v63  ;;  %3842 = vst [vmem:[%s5349_s11 + $0xe0] sm:$0xff] %v3798_v3   ;;  %v4342_v32 = vadd.f32 %v4341_v9, %v4340_v60  ;;  %v4343_v28 = vpop.f32.mrb[118].mxu1  ;;  %v4282_v49 = vpop.f32.mrb[120].mxu0 }
 0x2ba   : > { %v4344_v29 = vpop.f32.mrb[119].mxu1  ;;  %v4283_v55 = vpop.f32.mrb[121].mxu0 }
 0x2bb   : > { %v3028_v17 = vadd.f32 %v4342_v32, %v4278_v61  ;;  %v4345_v0 = vadd.f32 %v4344_v29, %v4343_v28  ;;  %v4284_v44 = vadd.f32 %v4283_v55, %v4282_v49  ;;  %v4285_v34 = vpop.f32.mrb[122].mxu0  ;;  %v3143_v55 = vld [vmem:[#allocation11] sm:$0x1] }
 0x2bc   : > { %v4286_v20 = vpop.f32.mrb[123].mxu0 }
 0x2bd   : > { %v3059_v5 = vadd.f32 %v3058_v11, %v3028_v17  ;;  %v3082_v51 = vmul.f32 %v3028_v17, %v3028_v17  ;;  %v3031_v33 = vadd.f32 %v4345_v0, %v4281_v52  ;;  %v4287_v36 = vadd.f32 %v4286_v20, %v4285_v34 }
 0x2bf   : > { %v3097_v24 = vadd.f32 %v3096_v25, %v3082_v51  ;;  %v3060_v21 = vadd.f32 %v3059_v5, %v3031_v33  ;;  %v3083_v59 = vmul.f32 %v3031_v33, %v3031_v33  ;;  %v3803_v37 = vpack.c.bf16 %v3031_v33, %v3028_v17  ;;  %v4346_v39 = vpop.f32.mrb[120].mxu1 }
 0x2c0   : > { %v4347_v7 = vpop.f32.mrb[121].mxu1 }
 0x2c1   : > { %v3098_v14 = vadd.f32 %v3097_v24, %v3083_v59  ;;  %3843 = vst [vmem:[%s5349_s11 + $0xe8] sm:$0xff] %v3803_v37   ;;  %v4348_v13 = vadd.f32 %v4347_v7, %v4346_v39  ;;  %v4349_v38 = vpop.f32.mrb[122].mxu1  ;;  %v4288_v56 = vpop.f32.mrb[124].mxu0 }
 0x2c2   : > { %v4350_v42 = vpop.f32.mrb[123].mxu1  ;;  %v4289_v35 = vpop.f32.mrb[125].mxu0 }
 0x2c3   : > { %v3036_v4 = vadd.f32 %v4348_v13, %v4284_v44  ;;  %v4351_v48 = vadd.f32 %v4350_v42, %v4349_v38  ;;  %v4290_v30 = vadd.f32 %v4289_v35, %v4288_v56  ;;  %v4291_v45 = vpop.f32.mrb[126].mxu0  ;;  %v3146_v44 = vld [vmem:[#allocation13] sm:$0x1] }
 0x2c4   : > { %v4292_v58 = vpop.f32.mrb[127].mxu0 }
 0x2c5   : > { %v3061_v57 = vadd.f32 %v3060_v21, %v3036_v4  ;;  %v3084_v2 = vmul.f32 %v3036_v4, %v3036_v4  ;;  %v3039_v23 = vadd.f32 %v4351_v48, %v4287_v36  ;;  %v4293_v46 = vadd.f32 %v4292_v58, %v4291_v45 }
 0x2c7   : > { %v3099_v15 = vadd.f32 %v3098_v14, %v3084_v2  ;;  %v3062_v27 = vadd.f32 %v3061_v57, %v3039_v23  ;;  %v3085_v31 = vmul.f32 %v3039_v23, %v3039_v23  ;;  %v3808_v16 = vpack.c.bf16 %v3039_v23, %v3036_v4  ;;  %v4352_v10 = vpop.f32.mrb[124].mxu1 }
 0x2c8   : > { %v4353_v43 = vpop.f32.mrb[125].mxu1 }
 0x2c9   : > { %v3100_v1 = vadd.f32 %v3099_v15, %v3085_v31  ;;  %3844 = vst [vmem:[%s5349_s11 + $0xf0] sm:$0xff] %v3808_v16   ;;  %v4354_v41 = vadd.f32 %v4353_v43, %v4352_v10  ;;  %v4355_v26 = vpop.f32.mrb[126].mxu1 }
 0x2ca   : > { %v4356_v19 = vpop.f32.mrb[127].mxu1 }
 0x2cb   : > { %v3044_v53 = vadd.f32 %v4354_v41, %v4290_v30  ;;  %v4357_v62 = vadd.f32 %v4356_v19, %v4355_v26 }
 0x2cd   : > { %v3063_v40 = vadd.f32 %v3062_v27, %v3044_v53  ;;  %v3086_v61 = vmul.f32 %v3044_v53, %v3044_v53  ;;  %v3047_v8 = vadd.f32 %v4357_v62, %v4293_v46 }
 0x2cf   : > { %v3101_v6 = vadd.f32 %v3100_v1, %v3086_v61  ;;  %v3064_v18 = vadd.f32 %v3063_v40, %v3047_v8  ;;  %v3087_v12 = vmul.f32 %v3047_v8, %v3047_v8  ;;  %v3813_v50 = vpack.c.bf16 %v3047_v8, %v3044_v53 }
 0x2d1   : > { %v3065_v52 = vrot.slane %v3064_v18, 4  ;;  %v3102_v47 = vadd.f32 %v3101_v6, %v3087_v12  ;;  %3845 = vst [vmem:[%s5349_s11 + $0xf8] sm:$0xff] %v3813_v50  }
 0x2d3   : > { %v3066_v11 = vadd.f32 %v3065_v52, %v3064_v18  ;;  %v3103_v63 = vrot.slane %v3102_v47, 4 }
 0x2d5   : > { %v3067_v3 = vrot.slane %v3066_v11, 2  ;;  %v3104_v60 = vadd.f32 %v3103_v63, %v3102_v47 }
 0x2d7   : > { %v3068_v9 = vadd.f32 %v3067_v3, %v3066_v11  ;;  %v3105_v25 = vrot.slane %v3104_v60, 2 }
 0x2d9   : > { %v3069_v32 = vrot.slane %v3068_v9, 1  ;;  %v3106_v28 = vadd.f32 %v3105_v25, %v3104_v60 }
 0x2db   : > { %v3070_v49 = vadd.f32 %v3069_v32, %v3068_v9  ;;  %v3107_v29 = vrot.slane %v3106_v28, 1 }
 0x2dd   : > { %v3071_v17 = vadd.f32 %v3070_v49, %v5866_v22  ;;  %v3108_v0 = vadd.f32 %v3107_v29, %v3106_v28 }
 0x2df   : > { %v3109_v34 = vadd.f32 %v3108_v0, %v5869_v54  ;;  %v3144_v20 = vadd.f32 %v3143_v55, %v3071_v17 }
 0x2e1   : > { %3145 = vst [vmem:[#allocation11] sm:$0x1] %v3144_v20  ;;  %v3147_v5 = vadd.f32 %v3146_v44, %v3109_v34 }
 0x2e3   : > { %3148 = vst [vmem:[#allocation13] sm:$0x1] %v3147_v5 }
 0x2e4   : > { %s3654_s5 = sshll.u32 %s6053_s17, 10  ;;  %s3181_s7 = sshll.u32 %s5349_s11, 4  ;;  %s3182_s7 = int_to_ptr.vmem [resolvable:$true] %s3181_s7 }
 0x2e5   : > { %s6060_s13 = sld [smem:[#allocation29_spill]]  ;;  %s4944_s3 = smov 1024  }
 0x2e6   : > { %p6061_p2 = scmp.ne.s32.totalorder %s6032_s15, 0  ;;  %s4945_s19 = smov 2048  }
 0x2e7   : > { %s4946_s30 = smov 16   ;;  %s4947_s6 = smov 64  }
 0x2e8   : > { %4368 = sst [smem:[#allocation15]] (%p6061_p2), %s4944_s3  ;;  %s4948_s11 = smov 4  }
 0x2e9   : > { %4369 = sst [smem:[#allocation15 + $0x1]] (%p6061_p2), %s4945_s19  ;;  %s4949_s17 = smov [#allocation14]  }
 0x2ea   : > { %4370 = sst [smem:[#allocation15 + $0x2]] (%p6061_p2), %s4946_s30  ;;  %s4950_s20 = smov 0  }
 0x2eb   : > { %s3164_s21 = scalar_lea.hbm %s6060_s13, %s3654_s5  ;;  %4371 = sst [smem:[#allocation15 + $0x3]] (%p6061_p2), %s4947_s6 }
 0x2ec   : > { %4372 = sst [smem:[#allocation15 + $0x4]] (%p6061_p2), %s4947_s6  ;;  %s4951_s18 = smov [#allocation11]  }
 0x2ed   : > { %4373 = sst [smem:[#allocation15 + $0x5]] (%p6061_p2), %s4948_s11  ;;  %s3210_s4 = sshll.u32 %s4951_s18, 4  ;;  %s3211_s4 = int_to_ptr.vmem [resolvable:$true] %s3210_s4 }
 0x2ee   : > { %4374 = dma.general (%p6061_p2), %s3182_s7, 4096, %s3164_s21, %s3150_s10, %s4949_s17, [#allocation15], %s4950_s20, 0  }
 0x2ef   : > { %s4952_s5 = smov [#allocation13]   ;;  %s4765_s14 = scalar_lea.vmem %s3211_s4, 16 }
 0x2f0   : > { %s3223_s12 = sshll.u32 %s4952_s5, 4  ;;  %p4766_p5 = scmp.ne.s32.totalorder %s3211_s4, %s4765_s14  ;;  %s3224_s12 = int_to_ptr.vmem [resolvable:$true] %s3223_s12 }
 0x2f1   : > { %p6062_p7 = scmp.eq.s32.totalorder %s5049_s9, 1  ;;  %s4771_s13 = scalar_lea.vmem %s3211_s4, 32 }
 0x2f2   : > { %p4772_p3 = scmp.lt.s32.totalorder %s3211_s4, %s3211_s4  ;;  %p4773_p6 = scmp.lt.s32.totalorder %s4771_s13, %s4765_s14 }
 0x2f3   : > { %p4767_p1 = pnand %p4766_p5, %p6062_p7 }
 0x2f4   : > { %p4774_p0 = por %p4773_p6, %p4772_p3 }
 0x2f5   : > { %p4768_p4 = pneg %p4767_p1 }
 0x2f7   : > { %p4775_p10 = pnand %p4774_p0, %p4768_p4 }
 0x2f9   : > { %4778 = shalt.err (!%p4775_p10)
}
 0x2fa   : > { %s6063_s10 = sld [smem:[#allocation30_spill]]  ;;  %p6064_p13 = pmov %p6062_p7 }
 0x300   : > { %s4779_s7 = scalar_lea.hbm %s6063_s10, 16 }
 0x301   : > { %p4780_p11 = scmp.ne.s32.totalorder %s6063_s10, %s4779_s7  ;;  %p4785_p9 = scmp.lt.u32.totalorder %s4779_s7, %s6063_s10 }
 0x303   : > { %p4781_p8 = pnand %p4780_p11, %p6064_p13 }
 0x305   : > { %p4782_p12 = pneg %p4781_p8 }
 0x307   : > { %p4787_p2 = pnand %p4785_p9, %p4782_p12 }
 0x309   : > { %4790 = shalt.err (!%p4787_p2)
}
 0x30a   : > { %p6065_p5 = pmov %p6062_p7  ;;  %s4791_s20 = scalar_lea.vmem %s3224_s12, 16 }
 0x30b   : > { %p4792_p7 = scmp.ne.s32.totalorder %s3224_s12, %s4791_s20  ;;  %s4797_s18 = scalar_lea.vmem %s3224_s12, 32 }
 0x30c   : > { %4376 = dma.vmem_to_hbm [thread:$0]  (%p6065_p5), %s3211_s4, 16, %s6063_s10, [#allocation12]  }
 0x30d   : > { %p6066_p1 = pmov %p6065_p5  ;;  %p4798_p6 = scmp.lt.s32.totalorder %s3224_s12, %s3224_s12 }
 0x30e   : > { %p4799_p0 = scmp.lt.s32.totalorder %s4797_s18, %s4791_s20 }
 0x30f   : > { %p4793_p4 = pnand %p4792_p7, %p6066_p1 }
 0x310   : > { %p4800_p10 = por %p4799_p0, %p4798_p6 }
 0x311   : > { %p4794_p3 = pneg %p4793_p4 }
 0x313   : > { %p4801_p11 = pnand %p4800_p10, %p4794_p3 }
 0x315   : > { %4804 = shalt.err (!%p4801_p11)
}
 0x316   : > { %s6067_s13 = sld [smem:[#allocation31_spill]]  ;;  %p6068_p8 = pmov %p6066_p1 }
 0x31c   : > { %s4805_s3 = scalar_lea.hbm %s6067_s13, 16 }
 0x31d   : > { %p4806_p13 = scmp.ne.s32.totalorder %s6067_s13, %s4805_s3  ;;  %p4811_p2 = scmp.lt.u32.totalorder %s4805_s3, %s6067_s13 }
 0x31f   : > { %p4807_p12 = pnand %p4806_p13, %p6068_p8 }
 0x321   : > { %p4808_p9 = pneg %p4807_p12 }
 0x323   : > { %p4813_p5 = pnand %p4811_p2, %p4808_p9 }
 0x325   : > { %4816 = shalt.err (!%p4813_p5)
}
 0x326   : > { %p6069_p7 = pmov %p6066_p1 }
 0x328   : > { %4378 = dma.vmem_to_hbm [thread:$0]  (%p6069_p7), %s3224_s12, 16, %s6067_s13, [#allocation12]  }
 0x329   : > { %4882 = dma.done.wait (%p6066_p1), [#allocation12], 32   ;;  %p6070_p4 = pmov %p6066_p1 }
 0x32b   : > { %4884 = vsyncadd (%p6070_p4), [#allocation12], 4294967264 }
 0x32c PF: > { %s3243_s6 = sand.u32 1, %s4915_s27   ;;  %p6071_p3 = scmp.ne.s32.totalorder %s6033_s25, 0 }
 0x32d   : > { %p6072_p6 = scmp.ge.s32.totalorder %s4935_s8, 2  ;;  %s3244_s11 = scalar_lea.sflag [#allocation4], %s3243_s6 }
 0x32f   : > { %p4399_p0 = pnand %p6072_p6, %p6071_p3 }
 0x331   : > { %4886 = dma.done.wait (!%p4399_p0), %s3244_s11, 4096  }
 0x332   : > { %4888 = vsyncadd (!%p4399_p0), %s3244_s11, 4294963200  ;;  %s28_s8 = sadd.s32 1, %s4935_s8   ;;  %s6073_s12 = sld [smem:[#allocation22_spill]] }
 0x333   : > { %p25_p10 = scmp.ge.s32.totalorder %s28_s8, 4   ;;  %s6074_s9 = smov %s5089_s24 }
 0x334   : > { %s6075_s30 = sld [smem:[#allocation24_spill]]  ;;  %s6076_s7 = sld [smem:[#allocation25_spill]] }
 0x335   : > { %s6077_s21 = smov %s4895_s22  ;;  %s6078_s22 = smov %s4899_s23 }
 0x336   : > { %s6079_s23 = smov %s5273_s1  ;;  %s6081_s25 = smov %s4911_s26 }
 0x337   : > { %s6082_s26 = smov %s6074_s9  ;;  %s6083_s27 = smov %s4919_s28 }
 0x338   : > { %s6080_s24 = smov %s6073_s12  ;;  %s6084_s28 = smov %s4923_s29 }
 0x339   : > { %s6085_s29 = smov %s5177_s16  ;;  %27 = sbr.rel (!%p25_p10) target bundleno = 19 (0x13), region = 146 }
 0x340   :  { %3249 = vsyncpa [#allocation3], 1 }
 0x341   :  { %3251 = vsyncpa [#allocation3 + $0x1], 1 }
 0x342   :  { %3252 = vsyncpa [#allocation6], 1 }
 0x343   :  { %3254 = vsyncpa [#allocation6 + $0x1], 1 }
 0x344   :  { %3255 = vsyncpa [#allocation9], 1 }
 0x345   :  { %3256 = vsyncpa [#allocation4], 1 }
 0x346   :  { %3258 = vsyncpa [#allocation4 + $0x1], 1 }
 0x347   :  { %3259 = vsyncpa [#allocation12], 1 }

</bundles_post_ra>
